<compile_context>
chip_gen: v6e
topology: v6e:2x2x1
jax: 0.10.0
libtpu: 0.0.40
codegen_flags: <defaults>
</compile_context>

<pallas_src>
import functools
import math

import jax
import jax.numpy as jnp
from jax.experimental import pallas as pl
from jax.experimental.pallas import tpu as pltpu


def _layer_norm(z, w, b, eps):
    mu = jnp.mean(z, axis=-1, keepdims=True)
    var = jnp.mean((z - mu) ** 2, axis=-1, keepdims=True)
    return (z - mu) * jax.lax.rsqrt(var + eps) * w + b


def fused_transformer_kernel(x_ref,
                             wq_ref, wk_ref, wv_ref, bq_ref, bk_ref, bv_ref,
                             wo_ref, bo_ref, ln1w_ref, ln1b_ref, ln2w_ref, ln2b_ref,
                             w1_ref, b1_ref, w2_ref, b2_ref,
                             y_ref, xs_ref, *, seq_len, eps, dff_tile):
    """Grid = (batch_shards, depth). One invocation = one encoder layer on one batch shard.

    The running activation (M, D) = (Bs*S, D) is carried across the depth axis in VMEM scratch.
    """
    layer = pl.program_id(1)
    last = pl.num_programs(1) - 1

    @pl.when(layer == 0)
    def _():
        xs_ref[...] = x_ref[...].astype(jnp.float32)       # load input once per batch shard

    xb = xs_ref[...]                                        # (M, D) f32
    M, D = xb.shape
    H, _, dh = wq_ref.shape
    Bs = M // seq_len
    scale = 1.0 / math.sqrt(dh)
    cdt = wq_ref.dtype                                      # bf16 (default) or f32 dot operands
    xc = xb.astype(cdt)

    # --- multi-head self-attention: per-head weights (no lane slices), per-batch scores ---
    o = jnp.zeros((M, D), jnp.float32)
    for h in range(H):                                      # static, small
        qh = jnp.dot(xc, wq_ref[h], preferred_element_type=jnp.float32) + bq_ref[h]
        kh = jnp.dot(xc, wk_ref[h], preferred_element_type=jnp.float32) + bk_ref[h]
        vh = jnp.dot(xc, wv_ref[h], preferred_element_type=jnp.float32) + bv_ref[h]
        qb = qh.reshape(Bs, seq_len, dh)                    # leading split of sublane dim (S%8==0)
        kb = kh.reshape(Bs, seq_len, dh)
        vb = vh.reshape(Bs, seq_len, dh)
        # batched attention: each batch element only attends within itself -> no mask needed
        s = jnp.einsum("bqd,bkd->bqk", qb, kb,
                       preferred_element_type=jnp.float32) * scale
        s = s - jnp.max(s, axis=-1, keepdims=True)
        p = jnp.exp(s)
        p = p / jnp.sum(p, axis=-1, keepdims=True)          # exact divide (bit-parity friendly)
        ab = jnp.einsum("bqk,bkd->bqd", p, vb, preferred_element_type=jnp.float32)
        # fold the head-concat straight into the output projection
        o = o + jnp.dot(ab.reshape(M, dh).astype(cdt), wo_ref[h],
                        preferred_element_type=jnp.float32)
    o = o + bo_ref[...]

    x1 = _layer_norm(xb + o, ln1w_ref[...], ln1b_ref[...], eps)

    # --- feed-forward, tiled along dff: full (M, dff) h1 never materialized ---
    x1c = x1.astype(cdt)
    dff = w1_ref.shape[1]
    ff = jnp.zeros((M, D), jnp.float32)
    for t in range(dff // dff_tile):                        # static, lane-/sublane-aligned slices
        lo = t * dff_tile
        h1 = jnp.dot(x1c, w1_ref[:, lo:lo + dff_tile],
                     preferred_element_type=jnp.float32) + b1_ref[:, lo:lo + dff_tile]
        h1 = jnp.maximum(h1, 0.0)                           # ReLU
        ff = ff + jnp.dot(h1.astype(cdt), w2_ref[lo:lo + dff_tile, :],
                          preferred_element_type=jnp.float32)
    ff = ff + b2_ref[...]

    y = _layer_norm(x1 + ff, ln2w_ref[...], ln2b_ref[...], eps)

    @pl.when(layer < last)
    def _():
        xs_ref[...] = y                                     # carry to next layer

    @pl.when(layer == last)
    def _():
        y_ref[...] = y.astype(y_ref.dtype)


_PARAM_NAMES = ("wq", "wk", "wv", "bq", "bk", "bv", "wo", "bo",
                "ln1w", "ln1b", "ln2w", "ln2b", "w1", "b1", "w2", "b2")
_MATMUL_WEIGHTS = frozenset({"wq", "wk", "wv", "wo", "w1", "w2"})


def _split_heads(p, num_heads):
    """Re-layout one layer's params head-major so the kernel never lane-slices dh-wide chunks."""
    D = p["wo"].shape[0]
    dh = D // num_heads
    wqkv, bqkv = p["wqkv"], p["bqkv"][0]

    def split_w(w):                                         # (D, D) -> (H, D, dh)
        return w.reshape(D, num_heads, dh).transpose(1, 0, 2)

    def split_b(b):                                         # (D,) -> (H, 1, dh)
        return b.reshape(num_heads, 1, dh)

    return {
        "wq": split_w(wqkv[:, :D]),
        "wk": split_w(wqkv[:, D:2 * D]),
        "wv": split_w(wqkv[:, 2 * D:]),
        "bq": split_b(bqkv[:D]),
        "bk": split_b(bqkv[D:2 * D]),
        "bv": split_b(bqkv[2 * D:]),
        "wo": p["wo"].reshape(num_heads, dh, D),            # rows are head-major already
        "bo": p["bo"], "ln1w": p["ln1w"], "ln1b": p["ln1b"],
        "ln2w": p["ln2w"], "ln2b": p["ln2b"],
        "w1": p["w1"], "b1": p["b1"], "w2": p["w2"], "b2": p["b2"],
    }


def temporal_transformer(x, layer_params, num_heads, *, eps=1e-5, batch_shards=1,
                         weight_dtype=jnp.bfloat16, dff_tile=512):
    """x: (B, S, D). batch_shards stays 1 unless per-shard M is large (it re-streams weights)."""
    B, S, D = x.shape
    depth = len(layer_params)
    assert B % batch_shards == 0 and D % num_heads == 0
    Bs = B // batch_shards
    M = Bs * S
    dff = layer_params[0]["w1"].shape[-1]
    if dff % dff_tile != 0:
        dff_tile = dff                                      # fall back to a single FF tile

    # Head-major re-layout, stack per-layer weights along a leading depth axis, cast the big
    # streamed matmul weights to bf16 (biases / LN params stay f32).
    per_layer = [_split_heads(p, num_heads) for p in layer_params]
    stacked = []
    for name in _PARAM_NAMES:
        a = jnp.stack([lp[name] for lp in per_layer])
        a = a.astype(weight_dtype if name in _MATMUL_WEIGHTS else jnp.float32)
        stacked.append(a)

    x_blk = x.reshape(batch_shards, M, D)

    def wspec(a):
        nz = a.ndim - 1
        return pl.BlockSpec((None,) + a.shape[1:],
                            lambda bh, l, _n=nz: (l,) + (0,) * _n)

    w_specs = [wspec(a) for a in stacked]

    # Advisory cost estimate (weights are re-streamed once per layer per batch shard).
    flops = depth * (2 * B * S * D * 3 * D                  # q/k/v projections
                     + 2 * B * S * D * D                    # output projection
                     + 4 * B * S * S * D                    # per-batch scores + p@v
                     + 4 * B * S * D * dff)                 # two FF matmuls
    transcendentals = depth * B * S * (num_heads * S + 4)
    weight_bytes = sum(int(a.size) * a.dtype.itemsize for a in stacked)
    bytes_accessed = 2 * x.size * x.dtype.itemsize + batch_shards * weight_bytes

    kern = functools.partial(fused_transformer_kernel,
                             seq_len=S, eps=eps, dff_tile=dff_tile)

    out = pl.pallas_call(
        kern,
        out_shape=jax.ShapeDtypeStruct((batch_shards, M, D), x.dtype),
        grid_spec=pltpu.PrefetchScalarGridSpec(
            num_scalar_prefetch=0,
            grid=(batch_shards, depth),
            in_specs=[pl.BlockSpec((None, M, D), lambda bh, l: (bh, 0, 0))] + w_specs,
            out_specs=pl.BlockSpec((None, M, D), lambda bh, l: (bh, 0, 0)),
            scratch_shapes=[pltpu.VMEM((M, D), jnp.float32)],
        ),
        compiler_params=pltpu.CompilerParams(
            dimension_semantics=("parallel", "arbitrary")),
        # NOTE: at large D/dff, also set vmem_limit_bytes and/or shrink dff_tile so the
        # double-buffered per-layer weight blocks fit v7x's 64 MiB VMEM.
        cost_estimate=pl.CostEstimate(flops=int(flops),
                                      transcendentals=int(transcendentals),
                                      bytes_accessed=int(bytes_accessed)),
    )(x_blk, *stacked)
    return out.reshape(B, S, D)


# ------------------------- parameter init (deterministic) -------------------------

def init_layer_params(key, dim, dff):
    ks = jax.random.split(key, 8)

    def wn(k, shape, scale):
        return jax.random.normal(k, shape, jnp.float32) * scale

    return {
        # stored pre-transposed: (in_features, out_features)
        "wqkv": wn(ks[0], (dim, 3 * dim), 1.0 / math.sqrt(dim)),
        "bqkv": wn(ks[1], (1, 3 * dim), 0.02),
        "wo":   wn(ks[2], (dim, dim), 1.0 / math.sqrt(dim)),
        "bo":   wn(ks[3], (1, dim), 0.02),
        "ln1w": jnp.ones((1, dim), jnp.float32),
        "ln1b": jnp.zeros((1, dim), jnp.float32),
        "ln2w": jnp.ones((1, dim), jnp.float32),
        "ln2b": jnp.zeros((1, dim), jnp.float32),
        "w1":   wn(ks[4], (dim, dff), 1.0 / math.sqrt(dim)),
        "b1":   wn(ks[5], (1, dff), 0.02),
        "w2":   wn(ks[6], (dff, dim), 1.0 / math.sqrt(dff)),
        "b2":   wn(ks[7], (1, dim), 0.02),
    }


# ------------------------- pure-JAX reference (for validation) -------------------------

def ref_encoder_layer(x, p, num_heads, *, eps=1e-5, dot_dtype=jnp.float32):
    B, S, D = x.shape
    dh = D // num_heads

    def mm(a, b):   # mirrors the kernel: weight-matmul operands in dot_dtype, f32 accumulation
        return jnp.dot(a.astype(dot_dtype), b.astype(dot_dtype),
                       preferred_element_type=jnp.float32)

    qkv = mm(x, p["wqkv"]) + p["bqkv"][0]
    q, k, v = qkv[..., :D], qkv[..., D:2 * D], qkv[..., 2 * D:]
    q = q.reshape(B, S, num_heads, dh).transpose(0, 2, 1, 3) / math.sqrt(dh)
    k = k.reshape(B, S, num_heads, dh).transpose(0, 2, 1, 3)
    v = v.reshape(B, S, num_heads, dh).transpose(0, 2, 1, 3)
    s = jnp.einsum("bhqd,bhkd->bhqk", q, k)
    a = jnp.einsum("bhqk,bhkd->bhqd", jax.nn.softmax(s, axis=-1), v)
    a = a.transpose(0, 2, 1, 3).reshape(B, S, D)
    o = mm(a, p["wo"]) + p["bo"][0]
    x1 = _layer_norm(x + o, p["ln1w"][0], p["ln1b"][0], eps)
    h1 = jnp.maximum(mm(x1, p["w1"]) + p["b1"][0], 0.0)
    ff = mm(h1, p["w2"]) + p["b2"][0]
    return _layer_norm(x1 + ff, p["ln2w"][0], p["ln2b"][0], eps)


def ref_temporal_transformer(x, layer_params, num_heads, dot_dtype=jnp.float32):
    for p in layer_params:
        x = ref_encoder_layer(x, p, num_heads, dot_dtype=dot_dtype)
    return x


if __name__ == "__main__":
    DIM, NUM_HEADS, DEPTH = 32, 4, 2
    DFF = 2048                       # PyTorch TransformerEncoderLayer default dim_feedforward
    B, S = 2, 8

    root = jax.random.PRNGKey(0)
    kx, kp = jax.random.split(root)
    x = jax.random.normal(kx, (B, S, DIM), jnp.float32)
    layer_params = [init_layer_params(k, DIM, DFF) for k in jax.random.split(kp, DEPTH)]

    with jax.default_matmul_precision("highest"):
        y_ref32 = jax.block_until_ready(ref_temporal_transformer(x, layer_params, NUM_HEADS))
        y_ref16 = jax.block_until_ready(
            ref_temporal_transformer(x, layer_params, NUM_HEADS, dot_dtype=jnp.bfloat16))

    # f32-weight path: validates the exact eval-mode forward of nn.TransformerEncoderLayer
    y32 = jax.block_until_ready(
        temporal_transformer(x, layer_params, NUM_HEADS, weight_dtype=jnp.float32))
    assert y32.shape == (B, S, DIM)
    err32 = float(jnp.max(jnp.abs(y32 - y_ref32)))
    assert err32 < 5e-3, err32

    # bf16-weight path (default, perf): validated against a bf16-matmul mirrored reference
    y16 = jax.block_until_ready(temporal_transformer(x, layer_params, NUM_HEADS))
    err16 = float(jnp.max(jnp.abs(y16 - y_ref16)))
    assert err16 < 1e-2, err16

    print("KERNEL_OK")
</pallas_src>

<mosaic_0001>
module attributes {stable_mosaic.version = 11 : i64} {
  func.func @fused_transformer_kernel(%arg0: i32, %arg1: i32, %arg2: memref<1x16x32xf32, #tpu.memory_space<vmem>>, %arg3: memref<1x4x32x8xf32, #tpu.memory_space<vmem>>, %arg4: memref<1x4x32x8xf32, #tpu.memory_space<vmem>>, %arg5: memref<1x4x32x8xf32, #tpu.memory_space<vmem>>, %arg6: memref<1x4x1x8xf32, #tpu.memory_space<vmem>>, %arg7: memref<1x4x1x8xf32, #tpu.memory_space<vmem>>, %arg8: memref<1x4x1x8xf32, #tpu.memory_space<vmem>>, %arg9: memref<1x4x8x32xf32, #tpu.memory_space<vmem>>, %arg10: memref<1x1x32xf32, #tpu.memory_space<vmem>>, %arg11: memref<1x1x32xf32, #tpu.memory_space<vmem>>, %arg12: memref<1x1x32xf32, #tpu.memory_space<vmem>>, %arg13: memref<1x1x32xf32, #tpu.memory_space<vmem>>, %arg14: memref<1x1x32xf32, #tpu.memory_space<vmem>>, %arg15: memref<1x32x2048xf32, #tpu.memory_space<vmem>>, %arg16: memref<1x1x2048xf32, #tpu.memory_space<vmem>>, %arg17: memref<1x2048x32xf32, #tpu.memory_space<vmem>>, %arg18: memref<1x1x32xf32, #tpu.memory_space<vmem>>, %arg19: memref<1x16x32xf32, #tpu.memory_space<vmem>>, %arg20: memref<16x32xf32, #tpu.memory_space<vmem>>) attributes {dimension_semantics = [#tpu.dimension_semantics<parallel>, #tpu.dimension_semantics<arbitrary>], iteration_bounds = array<i64: 1, 2>, scalar_prefetch = 0 : i64, scratch_operands = 1 : i64, tpu.core_type = #tpu.core_type<tc>, window_params = [{transform_indices = @transform_0, window_bounds = array<i64: 1, 16, 32>}, {transform_indices = @transform_1, window_bounds = array<i64: 1, 4, 32, 8>}, {transform_indices = @transform_2, window_bounds = array<i64: 1, 4, 32, 8>}, {transform_indices = @transform_3, window_bounds = array<i64: 1, 4, 32, 8>}, {transform_indices = @transform_4, window_bounds = array<i64: 1, 4, 1, 8>}, {transform_indices = @transform_5, window_bounds = array<i64: 1, 4, 1, 8>}, {transform_indices = @transform_6, window_bounds = array<i64: 1, 4, 1, 8>}, {transform_indices = @transform_7, window_bounds = array<i64: 1, 4, 8, 32>}, {transform_indices = @transform_8, window_bounds = array<i64: 1, 1, 32>}, {transform_indices = @transform_9, window_bounds = array<i64: 1, 1, 32>}, {transform_indices = @transform_10, window_bounds = array<i64: 1, 1, 32>}, {transform_indices = @transform_11, window_bounds = array<i64: 1, 1, 32>}, {transform_indices = @transform_12, window_bounds = array<i64: 1, 1, 32>}, {transform_indices = @transform_13, window_bounds = array<i64: 1, 32, 2048>}, {transform_indices = @transform_14, window_bounds = array<i64: 1, 1, 2048>}, {transform_indices = @transform_15, window_bounds = array<i64: 1, 2048, 32>}, {transform_indices = @transform_16, window_bounds = array<i64: 1, 1, 32>}, {transform_indices = @transform_17, window_bounds = array<i64: 1, 16, 32>}]} {
    %c0_i32 = arith.constant 0 : i32
    %0 = arith.cmpi eq, %arg1, %c0_i32 : i32
    %1 = arith.extui %0 : i1 to i32
    %c0_i32_0 = arith.constant 0 : i32
    %2 = arith.cmpi ne, %1, %c0_i32_0 : i32
    scf.if %2 {
      %c0_224 = arith.constant 0 : index
      %c0_225 = arith.constant 0 : index
      %c0_226 = arith.constant 0 : index
      %294 = vector.load %arg2[%c0_224, %c0_225, %c0_226] : memref<1x16x32xf32, #tpu.memory_space<vmem>>, vector<1x16x32xf32>
      %295 = vector.shape_cast %294 : vector<1x16x32xf32> to vector<16x32xf32>
      %c0_227 = arith.constant 0 : index
      %c0_228 = arith.constant 0 : index
      %296 = vector.load %arg20[%c0_227, %c0_228] : memref<16x32xf32, #tpu.memory_space<vmem>>, vector<16x32xf32>
      tpu.vector_store %arg20[%c0_227, %c0_228], %295 {strides = array<i32>} : memref<16x32xf32, #tpu.memory_space<vmem>>, vector<16x32xf32>,
    } else {
    }
    %c0 = arith.constant 0 : index
    %c0_1 = arith.constant 0 : index
    %3 = vector.load %arg20[%c0, %c0_1] : memref<16x32xf32, #tpu.memory_space<vmem>>, vector<16x32xf32>
    %cst = arith.constant 0.000000e+00 : f32
    %4 = vector.broadcast %cst : f32 to vector<16x32xf32>
    %c0_2 = arith.constant 0 : index
    %c0_3 = arith.constant 0 : index
    %c0_4 = arith.constant 0 : index
    %c0_5 = arith.constant 0 : index
    %5 = vector.load %arg3[%c0_2, %c0_3, %c0_4, %c0_5] : memref<1x4x32x8xf32, #tpu.memory_space<vmem>>, vector<1x1x32x8xf32>
    %6 = vector.shape_cast %5 : vector<1x1x32x8xf32> to vector<32x8xf32>
    %cst_6 = arith.constant dense<0.000000e+00> : vector<16x8xf32>
    %7 = tpu.matmul %3, %6, %cst_6 {dimension_numbers = #tpu.dot_dimension_numbers<[1], [0], [0], [1], [0, 0, 1, 1], [], []>} : vector<16x32xf32>, vector<32x8xf32>, vector<16x8xf32> -> vector<16x8xf32>
    %c0_7 = arith.constant 0 : index
    %c0_8 = arith.constant 0 : index
    %c0_9 = arith.constant 0 : index
    %c0_10 = arith.constant 0 : index
    %8 = vector.load %arg6[%c0_7, %c0_8, %c0_9, %c0_10] : memref<1x4x1x8xf32, #tpu.memory_space<vmem>>, vector<1x1x1x8xf32>
    %9 = vector.shape_cast %8 : vector<1x1x1x8xf32> to vector<1x8xf32>
    %10 = vector.broadcast %9 : vector<1x8xf32> to vector<16x8xf32>
    %11 = arith.addf %7, %10 : vector<16x8xf32>
    %c0_11 = arith.constant 0 : index
    %c0_12 = arith.constant 0 : index
    %c0_13 = arith.constant 0 : index
    %c0_14 = arith.constant 0 : index
    %12 = vector.load %arg4[%c0_11, %c0_12, %c0_13, %c0_14] : memref<1x4x32x8xf32, #tpu.memory_space<vmem>>, vector<1x1x32x8xf32>
    %13 = vector.shape_cast %12 : vector<1x1x32x8xf32> to vector<32x8xf32>
    %cst_15 = arith.constant dense<0.000000e+00> : vector<16x8xf32>
    %14 = tpu.matmul %3, %13, %cst_15 {dimension_numbers = #tpu.dot_dimension_numbers<[1], [0], [0], [1], [0, 0, 1, 1], [], []>} : vector<16x32xf32>, vector<32x8xf32>, vector<16x8xf32> -> vector<16x8xf32>
    %c0_16 = arith.constant 0 : index
    %c0_17 = arith.constant 0 : index
    %c0_18 = arith.constant 0 : index
    %c0_19 = arith.constant 0 : index
    %15 = vector.load %arg7[%c0_16, %c0_17, %c0_18, %c0_19] : memref<1x4x1x8xf32, #tpu.memory_space<vmem>>, vector<1x1x1x8xf32>
    %16 = vector.shape_cast %15 : vector<1x1x1x8xf32> to vector<1x8xf32>
    %17 = vector.broadcast %16 : vector<1x8xf32> to vector<16x8xf32>
    %18 = arith.addf %14, %17 : vector<16x8xf32>
    %c0_20 = arith.constant 0 : index
    %c0_21 = arith.constant 0 : index
    %c0_22 = arith.constant 0 : index
    %c0_23 = arith.constant 0 : index
    %19 = vector.load %arg5[%c0_20, %c0_21, %c0_22, %c0_23] : memref<1x4x32x8xf32, #tpu.memory_space<vmem>>, vector<1x1x32x8xf32>
    %20 = vector.shape_cast %19 : vector<1x1x32x8xf32> to vector<32x8xf32>
    %cst_24 = arith.constant dense<0.000000e+00> : vector<16x8xf32>
    %21 = tpu.matmul %3, %20, %cst_24 {dimension_numbers = #tpu.dot_dimension_numbers<[1], [0], [0], [1], [0, 0, 1, 1], [], []>} : vector<16x32xf32>, vector<32x8xf32>, vector<16x8xf32> -> vector<16x8xf32>
    %c0_25 = arith.constant 0 : index
    %c0_26 = arith.constant 0 : index
    %c0_27 = arith.constant 0 : index
    %c0_28 = arith.constant 0 : index
    %22 = vector.load %arg8[%c0_25, %c0_26, %c0_27, %c0_28] : memref<1x4x1x8xf32, #tpu.memory_space<vmem>>, vector<1x1x1x8xf32>
    %23 = vector.shape_cast %22 : vector<1x1x1x8xf32> to vector<1x8xf32>
    %24 = vector.broadcast %23 : vector<1x8xf32> to vector<16x8xf32>
    %25 = arith.addf %21, %24 : vector<16x8xf32>
    %26 = vector.shape_cast %11 : vector<16x8xf32> to vector<2x8x8xf32>
    %27 = vector.shape_cast %18 : vector<16x8xf32> to vector<2x8x8xf32>
    %28 = vector.shape_cast %25 : vector<16x8xf32> to vector<2x8x8xf32>
    "tpu.trace_start"() <{level = 10 : i32, message = "bqd,bkd->bqk"}> : () -> ()
    %cst_29 = arith.constant dense<0.000000e+00> : vector<2x8x8xf32>
    %29 = tpu.matmul %26, %27, %cst_29 {dimension_numbers = #tpu.dot_dimension_numbers<[2], [2], [1], [1], [0, 0, 0, 1, 1, 1], [0], [0]>} : vector<2x8x8xf32>, vector<2x8x8xf32>, vector<2x8x8xf32> -> vector<2x8x8xf32>
    "tpu.trace_stop"() : () -> ()
    %cst_30 = arith.constant 0.353553385 : f32
    %30 = vector.broadcast %cst_30 : f32 to vector<2x8x8xf32>
    %31 = arith.mulf %29, %30 : vector<2x8x8xf32>
    %cst_31 = arith.constant dense<0xFF800000> : vector<2x8xf32>
    %32 = vector.multi_reduction <maximumf>, %31, %cst_31 [2] : vector<2x8x8xf32> to vector<2x8xf32>
    %33 = vector.shape_cast %32 : vector<2x8xf32> to vector<2x8x1xf32>
    %34 = vector.broadcast %33 : vector<2x8x1xf32> to vector<2x8x8xf32>
    %35 = arith.subf %31, %34 : vector<2x8x8xf32>
    %36 = math.exp %35 : vector<2x8x8xf32>
    %cst_32 = arith.constant dense<0.000000e+00> : vector<2x8xf32>
    %37 = vector.multi_reduction <add>, %36, %cst_32 [2] : vector<2x8x8xf32> to vector<2x8xf32>
    %38 = vector.shape_cast %37 : vector<2x8xf32> to vector<2x8x1xf32>
    %39 = vector.broadcast %38 : vector<2x8x1xf32> to vector<2x8x8xf32>
    %40 = arith.divf %36, %39 : vector<2x8x8xf32>
    "tpu.trace_start"() <{level = 10 : i32, message = "bqk,bkd->bqd"}> : () -> ()
    %cst_33 = arith.constant dense<0.000000e+00> : vector<2x8x8xf32>
    %41 = tpu.matmul %40, %28, %cst_33 {dimension_numbers = #tpu.dot_dimension_numbers<[2], [1], [1], [2], [0, 0, 0, 1, 1, 2], [0], [0]>} : vector<2x8x8xf32>, vector<2x8x8xf32>, vector<2x8x8xf32> -> vector<2x8x8xf32>
    "tpu.trace_stop"() : () -> ()
    %42 = vector.shape_cast %41 : vector<2x8x8xf32> to vector<16x8xf32>
    %c0_34 = arith.constant 0 : index
    %c0_35 = arith.constant 0 : index
    %c0_36 = arith.constant 0 : index
    %c0_37 = arith.constant 0 : index
    %43 = vector.load %arg9[%c0_34, %c0_35, %c0_36, %c0_37] : memref<1x4x8x32xf32, #tpu.memory_space<vmem>>, vector<1x1x8x32xf32>
    %44 = vector.shape_cast %43 : vector<1x1x8x32xf32> to vector<8x32xf32>
    %cst_38 = arith.constant dense<0.000000e+00> : vector<16x32xf32>
    %45 = tpu.matmul %42, %44, %cst_38 {dimension_numbers = #tpu.dot_dimension_numbers<[1], [0], [0], [1], [0, 0, 1, 1], [], []>} : vector<16x8xf32>, vector<8x32xf32>, vector<16x32xf32> -> vector<16x32xf32>
    %46 = arith.addf %4, %45 : vector<16x32xf32>
    %c0_39 = arith.constant 0 : index
    %c1 = arith.constant 1 : index
    %c0_40 = arith.constant 0 : index
    %c0_41 = arith.constant 0 : index
    %47 = vector.load %arg3[%c0_39, %c1, %c0_40, %c0_41] : memref<1x4x32x8xf32, #tpu.memory_space<vmem>>, vector<1x1x32x8xf32>
    %48 = vector.shape_cast %47 : vector<1x1x32x8xf32> to vector<32x8xf32>
    %cst_42 = arith.constant dense<0.000000e+00> : vector<16x8xf32>
    %49 = tpu.matmul %3, %48, %cst_42 {dimension_numbers = #tpu.dot_dimension_numbers<[1], [0], [0], [1], [0, 0, 1, 1], [], []>} : vector<16x32xf32>, vector<32x8xf32>, vector<16x8xf32> -> vector<16x8xf32>
    %c0_43 = arith.constant 0 : index
    %c1_44 = arith.constant 1 : index
    %c0_45 = arith.constant 0 : index
    %c0_46 = arith.constant 0 : index
    %50 = vector.load %arg6[%c0_43, %c1_44, %c0_45, %c0_46] : memref<1x4x1x8xf32, #tpu.memory_space<vmem>>, vector<1x1x1x8xf32>
    %51 = vector.shape_cast %50 : vector<1x1x1x8xf32> to vector<1x8xf32>
    %52 = vector.broadcast %51 : vector<1x8xf32> to vector<16x8xf32>
    %53 = arith.addf %49, %52 : vector<16x8xf32>
    %c0_47 = arith.constant 0 : index
    %c1_48 = arith.constant 1 : index
    %c0_49 = arith.constant 0 : index
    %c0_50 = arith.constant 0 : index
    %54 = vector.load %arg4[%c0_47, %c1_48, %c0_49, %c0_50] : memref<1x4x32x8xf32, #tpu.memory_space<vmem>>, vector<1x1x32x8xf32>
    %55 = vector.shape_cast %54 : vector<1x1x32x8xf32> to vector<32x8xf32>
    %cst_51 = arith.constant dense<0.000000e+00> : vector<16x8xf32>
    %56 = tpu.matmul %3, %55, %cst_51 {dimension_numbers = #tpu.dot_dimension_numbers<[1], [0], [0], [1], [0, 0, 1, 1], [], []>} : vector<16x32xf32>, vector<32x8xf32>, vector<16x8xf32> -> vector<16x8xf32>
    %c0_52 = arith.constant 0 : index
    %c1_53 = arith.constant 1 : index
    %c0_54 = arith.constant 0 : index
    %c0_55 = arith.constant 0 : index
    %57 = vector.load %arg7[%c0_52, %c1_53, %c0_54, %c0_55] : memref<1x4x1x8xf32, #tpu.memory_space<vmem>>, vector<1x1x1x8xf32>
    %58 = vector.shape_cast %57 : vector<1x1x1x8xf32> to vector<1x8xf32>
    %59 = vector.broadcast %58 : vector<1x8xf32> to vector<16x8xf32>
    %60 = arith.addf %56, %59 : vector<16x8xf32>
    %c0_56 = arith.constant 0 : index
    %c1_57 = arith.constant 1 : index
    %c0_58 = arith.constant 0 : index
    %c0_59 = arith.constant 0 : index
    %61 = vector.load %arg5[%c0_56, %c1_57, %c0_58, %c0_59] : memref<1x4x32x8xf32, #tpu.memory_space<vmem>>, vector<1x1x32x8xf32>
    %62 = vector.shape_cast %61 : vector<1x1x32x8xf32> to vector<32x8xf32>
    %cst_60 = arith.constant dense<0.000000e+00> : vector<16x8xf32>
    %63 = tpu.matmul %3, %62, %cst_60 {dimension_numbers = #tpu.dot_dimension_numbers<[1], [0], [0], [1], [0, 0, 1, 1], [], []>} : vector<16x32xf32>, vector<32x8xf32>, vector<16x8xf32> -> vector<16x8xf32>
    %c0_61 = arith.constant 0 : index
    %c1_62 = arith.constant 1 : index
    %c0_63 = arith.constant 0 : index
    %c0_64 = arith.constant 0 : index
    %64 = vector.load %arg8[%c0_61, %c1_62, %c0_63, %c0_64] : memref<1x4x1x8xf32, #tpu.memory_space<vmem>>, vector<1x1x1x8xf32>
    %65 = vector.shape_cast %64 : vector<1x1x1x8xf32> to vector<1x8xf32>
    %66 = vector.broadcast %65 : vector<1x8xf32> to vector<16x8xf32>
    %67 = arith.addf %63, %66 : vector<16x8xf32>
    %68 = vector.shape_cast %53 : vector<16x8xf32> to vector<2x8x8xf32>
    %69 = vector.shape_cast %60 : vector<16x8xf32> to vector<2x8x8xf32>
    %70 = vector.shape_cast %67 : vector<16x8xf32> to vector<2x8x8xf32>
    "tpu.trace_start"() <{level = 10 : i32, message = "bqd,bkd->bqk"}> : () -> ()
    %cst_65 = arith.constant dense<0.000000e+00> : vector<2x8x8xf32>
    %71 = tpu.matmul %68, %69, %cst_65 {dimension_numbers = #tpu.dot_dimension_numbers<[2], [2], [1], [1], [0, 0, 0, 1, 1, 1], [0], [0]>} : vector<2x8x8xf32>, vector<2x8x8xf32>, vector<2x8x8xf32> -> vector<2x8x8xf32>
    "tpu.trace_stop"() : () -> ()
    %cst_66 = arith.constant 0.353553385 : f32
    %72 = vector.broadcast %cst_66 : f32 to vector<2x8x8xf32>
    %73 = arith.mulf %71, %72 : vector<2x8x8xf32>
    %cst_67 = arith.constant dense<0xFF800000> : vector<2x8xf32>
    %74 = vector.multi_reduction <maximumf>, %73, %cst_67 [2] : vector<2x8x8xf32> to vector<2x8xf32>
    %75 = vector.shape_cast %74 : vector<2x8xf32> to vector<2x8x1xf32>
    %76 = vector.broadcast %75 : vector<2x8x1xf32> to vector<2x8x8xf32>
    %77 = arith.subf %73, %76 : vector<2x8x8xf32>
    %78 = math.exp %77 : vector<2x8x8xf32>
    %cst_68 = arith.constant dense<0.000000e+00> : vector<2x8xf32>
    %79 = vector.multi_reduction <add>, %78, %cst_68 [2] : vector<2x8x8xf32> to vector<2x8xf32>
    %80 = vector.shape_cast %79 : vector<2x8xf32> to vector<2x8x1xf32>
    %81 = vector.broadcast %80 : vector<2x8x1xf32> to vector<2x8x8xf32>
    %82 = arith.divf %78, %81 : vector<2x8x8xf32>
    "tpu.trace_start"() <{level = 10 : i32, message = "bqk,bkd->bqd"}> : () -> ()
    %cst_69 = arith.constant dense<0.000000e+00> : vector<2x8x8xf32>
    %83 = tpu.matmul %82, %70, %cst_69 {dimension_numbers = #tpu.dot_dimension_numbers<[2], [1], [1], [2], [0, 0, 0, 1, 1, 2], [0], [0]>} : vector<2x8x8xf32>, vector<2x8x8xf32>, vector<2x8x8xf32> -> vector<2x8x8xf32>
    "tpu.trace_stop"() : () -> ()
    %84 = vector.shape_cast %83 : vector<2x8x8xf32> to vector<16x8xf32>
    %c0_70 = arith.constant 0 : index
    %c1_71 = arith.constant 1 : index
    %c0_72 = arith.constant 0 : index
    %c0_73 = arith.constant 0 : index
    %85 = vector.load %arg9[%c0_70, %c1_71, %c0_72, %c0_73] : memref<1x4x8x32xf32, #tpu.memory_space<vmem>>, vector<1x1x8x32xf32>
    %86 = vector.shape_cast %85 : vector<1x1x8x32xf32> to vector<8x32xf32>
    %cst_74 = arith.constant dense<0.000000e+00> : vector<16x32xf32>
    %87 = tpu.matmul %84, %86, %cst_74 {dimension_numbers = #tpu.dot_dimension_numbers<[1], [0], [0], [1], [0, 0, 1, 1], [], []>} : vector<16x8xf32>, vector<8x32xf32>, vector<16x32xf32> -> vector<16x32xf32>
    %88 = arith.addf %46, %87 : vector<16x32xf32>
    %c0_75 = arith.constant 0 : index
    %c2 = arith.constant 2 : index
    %c0_76 = arith.constant 0 : index
    %c0_77 = arith.constant 0 : index
    %89 = vector.load %arg3[%c0_75, %c2, %c0_76, %c0_77] : memref<1x4x32x8xf32, #tpu.memory_space<vmem>>, vector<1x1x32x8xf32>
    %90 = vector.shape_cast %89 : vector<1x1x32x8xf32> to vector<32x8xf32>
    %cst_78 = arith.constant dense<0.000000e+00> : vector<16x8xf32>
    %91 = tpu.matmul %3, %90, %cst_78 {dimension_numbers = #tpu.dot_dimension_numbers<[1], [0], [0], [1], [0, 0, 1, 1], [], []>} : vector<16x32xf32>, vector<32x8xf32>, vector<16x8xf32> -> vector<16x8xf32>
    %c0_79 = arith.constant 0 : index
    %c2_80 = arith.constant 2 : index
    %c0_81 = arith.constant 0 : index
    %c0_82 = arith.constant 0 : index
    %92 = vector.load %arg6[%c0_79, %c2_80, %c0_81, %c0_82] : memref<1x4x1x8xf32, #tpu.memory_space<vmem>>, vector<1x1x1x8xf32>
    %93 = vector.shape_cast %92 : vector<1x1x1x8xf32> to vector<1x8xf32>
    %94 = vector.broadcast %93 : vector<1x8xf32> to vector<16x8xf32>
    %95 = arith.addf %91, %94 : vector<16x8xf32>
    %c0_83 = arith.constant 0 : index
    %c2_84 = arith.constant 2 : index
    %c0_85 = arith.constant 0 : index
    %c0_86 = arith.constant 0 : index
    %96 = vector.load %arg4[%c0_83, %c2_84, %c0_85, %c0_86] : memref<1x4x32x8xf32, #tpu.memory_space<vmem>>, vector<1x1x32x8xf32>
    %97 = vector.shape_cast %96 : vector<1x1x32x8xf32> to vector<32x8xf32>
    %cst_87 = arith.constant dense<0.000000e+00> : vector<16x8xf32>
    %98 = tpu.matmul %3, %97, %cst_87 {dimension_numbers = #tpu.dot_dimension_numbers<[1], [0], [0], [1], [0, 0, 1, 1], [], []>} : vector<16x32xf32>, vector<32x8xf32>, vector<16x8xf32> -> vector<16x8xf32>
    %c0_88 = arith.constant 0 : index
    %c2_89 = arith.constant 2 : index
    %c0_90 = arith.constant 0 : index
    %c0_91 = arith.constant 0 : index
    %99 = vector.load %arg7[%c0_88, %c2_89, %c0_90, %c0_91] : memref<1x4x1x8xf32, #tpu.memory_space<vmem>>, vector<1x1x1x8xf32>
    %100 = vector.shape_cast %99 : vector<1x1x1x8xf32> to vector<1x8xf32>
    %101 = vector.broadcast %100 : vector<1x8xf32> to vector<16x8xf32>
    %102 = arith.addf %98, %101 : vector<16x8xf32>
    %c0_92 = arith.constant 0 : index
    %c2_93 = arith.constant 2 : index
    %c0_94 = arith.constant 0 : index
    %c0_95 = arith.constant 0 : index
    %103 = vector.load %arg5[%c0_92, %c2_93, %c0_94, %c0_95] : memref<1x4x32x8xf32, #tpu.memory_space<vmem>>, vector<1x1x32x8xf32>
    %104 = vector.shape_cast %103 : vector<1x1x32x8xf32> to vector<32x8xf32>
    %cst_96 = arith.constant dense<0.000000e+00> : vector<16x8xf32>
    %105 = tpu.matmul %3, %104, %cst_96 {dimension_numbers = #tpu.dot_dimension_numbers<[1], [0], [0], [1], [0, 0, 1, 1], [], []>} : vector<16x32xf32>, vector<32x8xf32>, vector<16x8xf32> -> vector<16x8xf32>
    %c0_97 = arith.constant 0 : index
    %c2_98 = arith.constant 2 : index
    %c0_99 = arith.constant 0 : index
    %c0_100 = arith.constant 0 : index
    %106 = vector.load %arg8[%c0_97, %c2_98, %c0_99, %c0_100] : memref<1x4x1x8xf32, #tpu.memory_space<vmem>>, vector<1x1x1x8xf32>
    %107 = vector.shape_cast %106 : vector<1x1x1x8xf32> to vector<1x8xf32>
    %108 = vector.broadcast %107 : vector<1x8xf32> to vector<16x8xf32>
    %109 = arith.addf %105, %108 : vector<16x8xf32>
    %110 = vector.shape_cast %95 : vector<16x8xf32> to vector<2x8x8xf32>
    %111 = vector.shape_cast %102 : vector<16x8xf32> to vector<2x8x8xf32>
    %112 = vector.shape_cast %109 : vector<16x8xf32> to vector<2x8x8xf32>
    "tpu.trace_start"() <{level = 10 : i32, message = "bqd,bkd->bqk"}> : () -> ()
    %cst_101 = arith.constant dense<0.000000e+00> : vector<2x8x8xf32>
    %113 = tpu.matmul %110, %111, %cst_101 {dimension_numbers = #tpu.dot_dimension_numbers<[2], [2], [1], [1], [0, 0, 0, 1, 1, 1], [0], [0]>} : vector<2x8x8xf32>, vector<2x8x8xf32>, vector<2x8x8xf32> -> vector<2x8x8xf32>
    "tpu.trace_stop"() : () -> ()
    %cst_102 = arith.constant 0.353553385 : f32
    %114 = vector.broadcast %cst_102 : f32 to vector<2x8x8xf32>
    %115 = arith.mulf %113, %114 : vector<2x8x8xf32>
    %cst_103 = arith.constant dense<0xFF800000> : vector<2x8xf32>
    %116 = vector.multi_reduction <maximumf>, %115, %cst_103 [2] : vector<2x8x8xf32> to vector<2x8xf32>
    %117 = vector.shape_cast %116 : vector<2x8xf32> to vector<2x8x1xf32>
    %118 = vector.broadcast %117 : vector<2x8x1xf32> to vector<2x8x8xf32>
    %119 = arith.subf %115, %118 : vector<2x8x8xf32>
    %120 = math.exp %119 : vector<2x8x8xf32>
    %cst_104 = arith.constant dense<0.000000e+00> : vector<2x8xf32>
    %121 = vector.multi_reduction <add>, %120, %cst_104 [2] : vector<2x8x8xf32> to vector<2x8xf32>
    %122 = vector.shape_cast %121 : vector<2x8xf32> to vector<2x8x1xf32>
    %123 = vector.broadcast %122 : vector<2x8x1xf32> to vector<2x8x8xf32>
    %124 = arith.divf %120, %123 : vector<2x8x8xf32>
    "tpu.trace_start"() <{level = 10 : i32, message = "bqk,bkd->bqd"}> : () -> ()
    %cst_105 = arith.constant dense<0.000000e+00> : vector<2x8x8xf32>
    %125 = tpu.matmul %124, %112, %cst_105 {dimension_numbers = #tpu.dot_dimension_numbers<[2], [1], [1], [2], [0, 0, 0, 1, 1, 2], [0], [0]>} : vector<2x8x8xf32>, vector<2x8x8xf32>, vector<2x8x8xf32> -> vector<2x8x8xf32>
    "tpu.trace_stop"() : () -> ()
    %126 = vector.shape_cast %125 : vector<2x8x8xf32> to vector<16x8xf32>
    %c0_106 = arith.constant 0 : index
    %c2_107 = arith.constant 2 : index
    %c0_108 = arith.constant 0 : index
    %c0_109 = arith.constant 0 : index
    %127 = vector.load %arg9[%c0_106, %c2_107, %c0_108, %c0_109] : memref<1x4x8x32xf32, #tpu.memory_space<vmem>>, vector<1x1x8x32xf32>
    %128 = vector.shape_cast %127 : vector<1x1x8x32xf32> to vector<8x32xf32>
    %cst_110 = arith.constant dense<0.000000e+00> : vector<16x32xf32>
    %129 = tpu.matmul %126, %128, %cst_110 {dimension_numbers = #tpu.dot_dimension_numbers<[1], [0], [0], [1], [0, 0, 1, 1], [], []>} : vector<16x8xf32>, vector<8x32xf32>, vector<16x32xf32> -> vector<16x32xf32>
    %130 = arith.addf %88, %129 : vector<16x32xf32>
    %c0_111 = arith.constant 0 : index
    %c3 = arith.constant 3 : index
    %c0_112 = arith.constant 0 : index
    %c0_113 = arith.constant 0 : index
    %131 = vector.load %arg3[%c0_111, %c3, %c0_112, %c0_113] : memref<1x4x32x8xf32, #tpu.memory_space<vmem>>, vector<1x1x32x8xf32>
    %132 = vector.shape_cast %131 : vector<1x1x32x8xf32> to vector<32x8xf32>
    %cst_114 = arith.constant dense<0.000000e+00> : vector<16x8xf32>
    %133 = tpu.matmul %3, %132, %cst_114 {dimension_numbers = #tpu.dot_dimension_numbers<[1], [0], [0], [1], [0, 0, 1, 1], [], []>} : vector<16x32xf32>, vector<32x8xf32>, vector<16x8xf32> -> vector<16x8xf32>
    %c0_115 = arith.constant 0 : index
    %c3_116 = arith.constant 3 : index
    %c0_117 = arith.constant 0 : index
    %c0_118 = arith.constant 0 : index
    %134 = vector.load %arg6[%c0_115, %c3_116, %c0_117, %c0_118] : memref<1x4x1x8xf32, #tpu.memory_space<vmem>>, vector<1x1x1x8xf32>
    %135 = vector.shape_cast %134 : vector<1x1x1x8xf32> to vector<1x8xf32>
    %136 = vector.broadcast %135 : vector<1x8xf32> to vector<16x8xf32>
    %137 = arith.addf %133, %136 : vector<16x8xf32>
    %c0_119 = arith.constant 0 : index
    %c3_120 = arith.constant 3 : index
    %c0_121 = arith.constant 0 : index
    %c0_122 = arith.constant 0 : index
    %138 = vector.load %arg4[%c0_119, %c3_120, %c0_121, %c0_122] : memref<1x4x32x8xf32, #tpu.memory_space<vmem>>, vector<1x1x32x8xf32>
    %139 = vector.shape_cast %138 : vector<1x1x32x8xf32> to vector<32x8xf32>
    %cst_123 = arith.constant dense<0.000000e+00> : vector<16x8xf32>
    %140 = tpu.matmul %3, %139, %cst_123 {dimension_numbers = #tpu.dot_dimension_numbers<[1], [0], [0], [1], [0, 0, 1, 1], [], []>} : vector<16x32xf32>, vector<32x8xf32>, vector<16x8xf32> -> vector<16x8xf32>
    %c0_124 = arith.constant 0 : index
    %c3_125 = arith.constant 3 : index
    %c0_126 = arith.constant 0 : index
    %c0_127 = arith.constant 0 : index
    %141 = vector.load %arg7[%c0_124, %c3_125, %c0_126, %c0_127] : memref<1x4x1x8xf32, #tpu.memory_space<vmem>>, vector<1x1x1x8xf32>
    %142 = vector.shape_cast %141 : vector<1x1x1x8xf32> to vector<1x8xf32>
    %143 = vector.broadcast %142 : vector<1x8xf32> to vector<16x8xf32>
    %144 = arith.addf %140, %143 : vector<16x8xf32>
    %c0_128 = arith.constant 0 : index
    %c3_129 = arith.constant 3 : index
    %c0_130 = arith.constant 0 : index
    %c0_131 = arith.constant 0 : index
    %145 = vector.load %arg5[%c0_128, %c3_129, %c0_130, %c0_131] : memref<1x4x32x8xf32, #tpu.memory_space<vmem>>, vector<1x1x32x8xf32>
    %146 = vector.shape_cast %145 : vector<1x1x32x8xf32> to vector<32x8xf32>
    %cst_132 = arith.constant dense<0.000000e+00> : vector<16x8xf32>
    %147 = tpu.matmul %3, %146, %cst_132 {dimension_numbers = #tpu.dot_dimension_numbers<[1], [0], [0], [1], [0, 0, 1, 1], [], []>} : vector<16x32xf32>, vector<32x8xf32>, vector<16x8xf32> -> vector<16x8xf32>
    %c0_133 = arith.constant 0 : index
    %c3_134 = arith.constant 3 : index
    %c0_135 = arith.constant 0 : index
    %c0_136 = arith.constant 0 : index
    %148 = vector.load %arg8[%c0_133, %c3_134, %c0_135, %c0_136] : memref<1x4x1x8xf32, #tpu.memory_space<vmem>>, vector<1x1x1x8xf32>
    %149 = vector.shape_cast %148 : vector<1x1x1x8xf32> to vector<1x8xf32>
    %150 = vector.broadcast %149 : vector<1x8xf32> to vector<16x8xf32>
    %151 = arith.addf %147, %150 : vector<16x8xf32>
    %152 = vector.shape_cast %137 : vector<16x8xf32> to vector<2x8x8xf32>
    %153 = vector.shape_cast %144 : vector<16x8xf32> to vector<2x8x8xf32>
    %154 = vector.shape_cast %151 : vector<16x8xf32> to vector<2x8x8xf32>
    "tpu.trace_start"() <{level = 10 : i32, message = "bqd,bkd->bqk"}> : () -> ()
    %cst_137 = arith.constant dense<0.000000e+00> : vector<2x8x8xf32>
    %155 = tpu.matmul %152, %153, %cst_137 {dimension_numbers = #tpu.dot_dimension_numbers<[2], [2], [1], [1], [0, 0, 0, 1, 1, 1], [0], [0]>} : vector<2x8x8xf32>, vector<2x8x8xf32>, vector<2x8x8xf32> -> vector<2x8x8xf32>
    "tpu.trace_stop"() : () -> ()
    %cst_138 = arith.constant 0.353553385 : f32
    %156 = vector.broadcast %cst_138 : f32 to vector<2x8x8xf32>
    %157 = arith.mulf %155, %156 : vector<2x8x8xf32>
    %cst_139 = arith.constant dense<0xFF800000> : vector<2x8xf32>
    %158 = vector.multi_reduction <maximumf>, %157, %cst_139 [2] : vector<2x8x8xf32> to vector<2x8xf32>
    %159 = vector.shape_cast %158 : vector<2x8xf32> to vector<2x8x1xf32>
    %160 = vector.broadcast %159 : vector<2x8x1xf32> to vector<2x8x8xf32>
    %161 = arith.subf %157, %160 : vector<2x8x8xf32>
    %162 = math.exp %161 : vector<2x8x8xf32>
    %cst_140 = arith.constant dense<0.000000e+00> : vector<2x8xf32>
    %163 = vector.multi_reduction <add>, %162, %cst_140 [2] : vector<2x8x8xf32> to vector<2x8xf32>
    %164 = vector.shape_cast %163 : vector<2x8xf32> to vector<2x8x1xf32>
    %165 = vector.broadcast %164 : vector<2x8x1xf32> to vector<2x8x8xf32>
    %166 = arith.divf %162, %165 : vector<2x8x8xf32>
    "tpu.trace_start"() <{level = 10 : i32, message = "bqk,bkd->bqd"}> : () -> ()
    %cst_141 = arith.constant dense<0.000000e+00> : vector<2x8x8xf32>
    %167 = tpu.matmul %166, %154, %cst_141 {dimension_numbers = #tpu.dot_dimension_numbers<[2], [1], [1], [2], [0, 0, 0, 1, 1, 2], [0], [0]>} : vector<2x8x8xf32>, vector<2x8x8xf32>, vector<2x8x8xf32> -> vector<2x8x8xf32>
    "tpu.trace_stop"() : () -> ()
    %168 = vector.shape_cast %167 : vector<2x8x8xf32> to vector<16x8xf32>
    %c0_142 = arith.constant 0 : index
    %c3_143 = arith.constant 3 : index
    %c0_144 = arith.constant 0 : index
    %c0_145 = arith.constant 0 : index
    %169 = vector.load %arg9[%c0_142, %c3_143, %c0_144, %c0_145] : memref<1x4x8x32xf32, #tpu.memory_space<vmem>>, vector<1x1x8x32xf32>
    %170 = vector.shape_cast %169 : vector<1x1x8x32xf32> to vector<8x32xf32>
    %cst_146 = arith.constant dense<0.000000e+00> : vector<16x32xf32>
    %171 = tpu.matmul %168, %170, %cst_146 {dimension_numbers = #tpu.dot_dimension_numbers<[1], [0], [0], [1], [0, 0, 1, 1], [], []>} : vector<16x8xf32>, vector<8x32xf32>, vector<16x32xf32> -> vector<16x32xf32>
    %172 = arith.addf %130, %171 : vector<16x32xf32>
    %c0_147 = arith.constant 0 : index
    %c0_148 = arith.constant 0 : index
    %c0_149 = arith.constant 0 : index
    %173 = vector.load %arg10[%c0_147, %c0_148, %c0_149] : memref<1x1x32xf32, #tpu.memory_space<vmem>>, vector<1x1x32xf32>
    %174 = vector.shape_cast %173 : vector<1x1x32xf32> to vector<1x32xf32>
    %175 = vector.broadcast %174 : vector<1x32xf32> to vector<16x32xf32>
    %176 = arith.addf %172, %175 : vector<16x32xf32>
    %177 = arith.addf %3, %176 : vector<16x32xf32>
    %c0_150 = arith.constant 0 : index
    %c0_151 = arith.constant 0 : index
    %c0_152 = arith.constant 0 : index
    %178 = vector.load %arg11[%c0_150, %c0_151, %c0_152] : memref<1x1x32xf32, #tpu.memory_space<vmem>>, vector<1x1x32xf32>
    %179 = vector.shape_cast %178 : vector<1x1x32xf32> to vector<1x32xf32>
    %c0_153 = arith.constant 0 : index
    %c0_154 = arith.constant 0 : index
    %c0_155 = arith.constant 0 : index
    %180 = vector.load %arg12[%c0_153, %c0_154, %c0_155] : memref<1x1x32xf32, #tpu.memory_space<vmem>>, vector<1x1x32xf32>
    %181 = vector.shape_cast %180 : vector<1x1x32xf32> to vector<1x32xf32>
    %cst_156 = arith.constant dense<0.000000e+00> : vector<16xf32>
    %182 = vector.multi_reduction <add>, %177, %cst_156 [1] : vector<16x32xf32> to vector<16xf32>
    %183 = vector.shape_cast %182 : vector<16xf32> to vector<16x1xf32>
    %cst_157 = arith.constant 3.200000e+01 : f32
    %184 = vector.broadcast %cst_157 : f32 to vector<16x1xf32>
    %185 = arith.divf %183, %184 : vector<16x1xf32>
    %186 = vector.broadcast %185 : vector<16x1xf32> to vector<16x32xf32>
    %187 = arith.subf %177, %186 : vector<16x32xf32>
    %188 = arith.mulf %187, %187 : vector<16x32xf32>
    %cst_158 = arith.constant dense<0.000000e+00> : vector<16xf32>
    %189 = vector.multi_reduction <add>, %188, %cst_158 [1] : vector<16x32xf32> to vector<16xf32>
    %190 = vector.shape_cast %189 : vector<16xf32> to vector<16x1xf32>
    %cst_159 = arith.constant 3.200000e+01 : f32
    %191 = vector.broadcast %cst_159 : f32 to vector<16x1xf32>
    %192 = arith.divf %190, %191 : vector<16x1xf32>
    %193 = vector.broadcast %185 : vector<16x1xf32> to vector<16x32xf32>
    %194 = arith.subf %177, %193 : vector<16x32xf32>
    %cst_160 = arith.constant 9.99999974E-6 : f32
    %195 = vector.broadcast %cst_160 : f32 to vector<16x1xf32>
    %196 = arith.addf %192, %195 : vector<16x1xf32>
    %197 = math.rsqrt %196 : vector<16x1xf32>
    %198 = vector.broadcast %197 : vector<16x1xf32> to vector<16x32xf32>
    %199 = arith.mulf %194, %198 : vector<16x32xf32>
    %200 = vector.broadcast %179 : vector<1x32xf32> to vector<16x32xf32>
    %201 = arith.mulf %199, %200 : vector<16x32xf32>
    %202 = vector.broadcast %181 : vector<1x32xf32> to vector<16x32xf32>
    %203 = arith.addf %201, %202 : vector<16x32xf32>
    %cst_161 = arith.constant 0.000000e+00 : f32
    %204 = vector.broadcast %cst_161 : f32 to vector<16x32xf32>
    %c0_162 = arith.constant 0 : index
    %c0_163 = arith.constant 0 : index
    %c0_164 = arith.constant 0 : index
    %205 = vector.load %arg15[%c0_162, %c0_163, %c0_164] : memref<1x32x2048xf32, #tpu.memory_space<vmem>>, vector<1x32x512xf32>
    %206 = vector.shape_cast %205 : vector<1x32x512xf32> to vector<32x512xf32>
    %cst_165 = arith.constant dense<0.000000e+00> : vector<16x512xf32>
    %207 = tpu.matmul %203, %206, %cst_165 {dimension_numbers = #tpu.dot_dimension_numbers<[1], [0], [0], [1], [0, 0, 1, 1], [], []>} : vector<16x32xf32>, vector<32x512xf32>, vector<16x512xf32> -> vector<16x512xf32>
    %c0_166 = arith.constant 0 : index
    %c0_167 = arith.constant 0 : index
    %c0_168 = arith.constant 0 : index
    %208 = vector.load %arg16[%c0_166, %c0_167, %c0_168] : memref<1x1x2048xf32, #tpu.memory_space<vmem>>, vector<1x1x512xf32>
    %209 = vector.shape_cast %208 : vector<1x1x512xf32> to vector<1x512xf32>
    %210 = vector.broadcast %209 : vector<1x512xf32> to vector<16x512xf32>
    %211 = arith.addf %207, %210 : vector<16x512xf32>
    %cst_169 = arith.constant 0.000000e+00 : f32
    %212 = vector.broadcast %cst_169 : f32 to vector<16x512xf32>
    %213 = arith.maximumf %211, %212 : vector<16x512xf32>
    %c0_170 = arith.constant 0 : index
    %c0_171 = arith.constant 0 : index
    %c0_172 = arith.constant 0 : index
    %214 = vector.load %arg17[%c0_170, %c0_171, %c0_172] : memref<1x2048x32xf32, #tpu.memory_space<vmem>>, vector<1x512x32xf32>
    %215 = vector.shape_cast %214 : vector<1x512x32xf32> to vector<512x32xf32>
    %cst_173 = arith.constant dense<0.000000e+00> : vector<16x32xf32>
    %216 = tpu.matmul %213, %215, %cst_173 {dimension_numbers = #tpu.dot_dimension_numbers<[1], [0], [0], [1], [0, 0, 1, 1], [], []>} : vector<16x512xf32>, vector<512x32xf32>, vector<16x32xf32> -> vector<16x32xf32>
    %217 = arith.addf %204, %216 : vector<16x32xf32>
    %c0_174 = arith.constant 0 : index
    %c0_175 = arith.constant 0 : index
    %c512 = arith.constant 512 : index
    %218 = vector.load %arg15[%c0_174, %c0_175, %c512] : memref<1x32x2048xf32, #tpu.memory_space<vmem>>, vector<1x32x512xf32>
    %219 = vector.shape_cast %218 : vector<1x32x512xf32> to vector<32x512xf32>
    %cst_176 = arith.constant dense<0.000000e+00> : vector<16x512xf32>
    %220 = tpu.matmul %203, %219, %cst_176 {dimension_numbers = #tpu.dot_dimension_numbers<[1], [0], [0], [1], [0, 0, 1, 1], [], []>} : vector<16x32xf32>, vector<32x512xf32>, vector<16x512xf32> -> vector<16x512xf32>
    %c0_177 = arith.constant 0 : index
    %c0_178 = arith.constant 0 : index
    %c512_179 = arith.constant 512 : index
    %221 = vector.load %arg16[%c0_177, %c0_178, %c512_179] : memref<1x1x2048xf32, #tpu.memory_space<vmem>>, vector<1x1x512xf32>
    %222 = vector.shape_cast %221 : vector<1x1x512xf32> to vector<1x512xf32>
    %223 = vector.broadcast %222 : vector<1x512xf32> to vector<16x512xf32>
    %224 = arith.addf %220, %223 : vector<16x512xf32>
    %cst_180 = arith.constant 0.000000e+00 : f32
    %225 = vector.broadcast %cst_180 : f32 to vector<16x512xf32>
    %226 = arith.maximumf %224, %225 : vector<16x512xf32>
    %c0_181 = arith.constant 0 : index
    %c512_182 = arith.constant 512 : index
    %c0_183 = arith.constant 0 : index
    %227 = vector.load %arg17[%c0_181, %c512_182, %c0_183] : memref<1x2048x32xf32, #tpu.memory_space<vmem>>, vector<1x512x32xf32>
    %228 = vector.shape_cast %227 : vector<1x512x32xf32> to vector<512x32xf32>
    %cst_184 = arith.constant dense<0.000000e+00> : vector<16x32xf32>
    %229 = tpu.matmul %226, %228, %cst_184 {dimension_numbers = #tpu.dot_dimension_numbers<[1], [0], [0], [1], [0, 0, 1, 1], [], []>} : vector<16x512xf32>, vector<512x32xf32>, vector<16x32xf32> -> vector<16x32xf32>
    %230 = arith.addf %217, %229 : vector<16x32xf32>
    %c0_185 = arith.constant 0 : index
    %c0_186 = arith.constant 0 : index
    %c1024 = arith.constant 1024 : index
    %231 = vector.load %arg15[%c0_185, %c0_186, %c1024] : memref<1x32x2048xf32, #tpu.memory_space<vmem>>, vector<1x32x512xf32>
    %232 = vector.shape_cast %231 : vector<1x32x512xf32> to vector<32x512xf32>
    %cst_187 = arith.constant dense<0.000000e+00> : vector<16x512xf32>
    %233 = tpu.matmul %203, %232, %cst_187 {dimension_numbers = #tpu.dot_dimension_numbers<[1], [0], [0], [1], [0, 0, 1, 1], [], []>} : vector<16x32xf32>, vector<32x512xf32>, vector<16x512xf32> -> vector<16x512xf32>
    %c0_188 = arith.constant 0 : index
    %c0_189 = arith.constant 0 : index
    %c1024_190 = arith.constant 1024 : index
    %234 = vector.load %arg16[%c0_188, %c0_189, %c1024_190] : memref<1x1x2048xf32, #tpu.memory_space<vmem>>, vector<1x1x512xf32>
    %235 = vector.shape_cast %234 : vector<1x1x512xf32> to vector<1x512xf32>
    %236 = vector.broadcast %235 : vector<1x512xf32> to vector<16x512xf32>
    %237 = arith.addf %233, %236 : vector<16x512xf32>
    %cst_191 = arith.constant 0.000000e+00 : f32
    %238 = vector.broadcast %cst_191 : f32 to vector<16x512xf32>
    %239 = arith.maximumf %237, %238 : vector<16x512xf32>
    %c0_192 = arith.constant 0 : index
    %c1024_193 = arith.constant 1024 : index
    %c0_194 = arith.constant 0 : index
    %240 = vector.load %arg17[%c0_192, %c1024_193, %c0_194] : memref<1x2048x32xf32, #tpu.memory_space<vmem>>, vector<1x512x32xf32>
    %241 = vector.shape_cast %240 : vector<1x512x32xf32> to vector<512x32xf32>
    %cst_195 = arith.constant dense<0.000000e+00> : vector<16x32xf32>
    %242 = tpu.matmul %239, %241, %cst_195 {dimension_numbers = #tpu.dot_dimension_numbers<[1], [0], [0], [1], [0, 0, 1, 1], [], []>} : vector<16x512xf32>, vector<512x32xf32>, vector<16x32xf32> -> vector<16x32xf32>
    %243 = arith.addf %230, %242 : vector<16x32xf32>
    %c0_196 = arith.constant 0 : index
    %c0_197 = arith.constant 0 : index
    %c1536 = arith.constant 1536 : index
    %244 = vector.load %arg15[%c0_196, %c0_197, %c1536] : memref<1x32x2048xf32, #tpu.memory_space<vmem>>, vector<1x32x512xf32>
    %245 = vector.shape_cast %244 : vector<1x32x512xf32> to vector<32x512xf32>
    %cst_198 = arith.constant dense<0.000000e+00> : vector<16x512xf32>
    %246 = tpu.matmul %203, %245, %cst_198 {dimension_numbers = #tpu.dot_dimension_numbers<[1], [0], [0], [1], [0, 0, 1, 1], [], []>} : vector<16x32xf32>, vector<32x512xf32>, vector<16x512xf32> -> vector<16x512xf32>
    %c0_199 = arith.constant 0 : index
    %c0_200 = arith.constant 0 : index
    %c1536_201 = arith.constant 1536 : index
    %247 = vector.load %arg16[%c0_199, %c0_200, %c1536_201] : memref<1x1x2048xf32, #tpu.memory_space<vmem>>, vector<1x1x512xf32>
    %248 = vector.shape_cast %247 : vector<1x1x512xf32> to vector<1x512xf32>
    %249 = vector.broadcast %248 : vector<1x512xf32> to vector<16x512xf32>
    %250 = arith.addf %246, %249 : vector<16x512xf32>
    %cst_202 = arith.constant 0.000000e+00 : f32
    %251 = vector.broadcast %cst_202 : f32 to vector<16x512xf32>
    %252 = arith.maximumf %250, %251 : vector<16x512xf32>
    %c0_203 = arith.constant 0 : index
    %c1536_204 = arith.constant 1536 : index
    %c0_205 = arith.constant 0 : index
    %253 = vector.load %arg17[%c0_203, %c1536_204, %c0_205] : memref<1x2048x32xf32, #tpu.memory_space<vmem>>, vector<1x512x32xf32>
    %254 = vector.shape_cast %253 : vector<1x512x32xf32> to vector<512x32xf32>
    %cst_206 = arith.constant dense<0.000000e+00> : vector<16x32xf32>
    %255 = tpu.matmul %252, %254, %cst_206 {dimension_numbers = #tpu.dot_dimension_numbers<[1], [0], [0], [1], [0, 0, 1, 1], [], []>} : vector<16x512xf32>, vector<512x32xf32>, vector<16x32xf32> -> vector<16x32xf32>
    %256 = arith.addf %243, %255 : vector<16x32xf32>
    %c0_207 = arith.constant 0 : index
    %c0_208 = arith.constant 0 : index
    %c0_209 = arith.constant 0 : index
    %257 = vector.load %arg18[%c0_207, %c0_208, %c0_209] : memref<1x1x32xf32, #tpu.memory_space<vmem>>, vector<1x1x32xf32>
    %258 = vector.shape_cast %257 : vector<1x1x32xf32> to vector<1x32xf32>
    %259 = vector.broadcast %258 : vector<1x32xf32> to vector<16x32xf32>
    %260 = arith.addf %256, %259 : vector<16x32xf32>
    %261 = arith.addf %203, %260 : vector<16x32xf32>
    %c0_210 = arith.constant 0 : index
    %c0_211 = arith.constant 0 : index
    %c0_212 = arith.constant 0 : index
    %262 = vector.load %arg13[%c0_210, %c0_211, %c0_212] : memref<1x1x32xf32, #tpu.memory_space<vmem>>, vector<1x1x32xf32>
    %263 = vector.shape_cast %262 : vector<1x1x32xf32> to vector<1x32xf32>
    %c0_213 = arith.constant 0 : index
    %c0_214 = arith.constant 0 : index
    %c0_215 = arith.constant 0 : index
    %264 = vector.load %arg14[%c0_213, %c0_214, %c0_215] : memref<1x1x32xf32, #tpu.memory_space<vmem>>, vector<1x1x32xf32>
    %265 = vector.shape_cast %264 : vector<1x1x32xf32> to vector<1x32xf32>
    %cst_216 = arith.constant dense<0.000000e+00> : vector<16xf32>
    %266 = vector.multi_reduction <add>, %261, %cst_216 [1] : vector<16x32xf32> to vector<16xf32>
    %267 = vector.shape_cast %266 : vector<16xf32> to vector<16x1xf32>
    %cst_217 = arith.constant 3.200000e+01 : f32
    %268 = vector.broadcast %cst_217 : f32 to vector<16x1xf32>
    %269 = arith.divf %267, %268 : vector<16x1xf32>
    %270 = vector.broadcast %269 : vector<16x1xf32> to vector<16x32xf32>
    %271 = arith.subf %261, %270 : vector<16x32xf32>
    %272 = arith.mulf %271, %271 : vector<16x32xf32>
    %cst_218 = arith.constant dense<0.000000e+00> : vector<16xf32>
    %273 = vector.multi_reduction <add>, %272, %cst_218 [1] : vector<16x32xf32> to vector<16xf32>
    %274 = vector.shape_cast %273 : vector<16xf32> to vector<16x1xf32>
    %cst_219 = arith.constant 3.200000e+01 : f32
    %275 = vector.broadcast %cst_219 : f32 to vector<16x1xf32>
    %276 = arith.divf %274, %275 : vector<16x1xf32>
    %277 = vector.broadcast %269 : vector<16x1xf32> to vector<16x32xf32>
    %278 = arith.subf %261, %277 : vector<16x32xf32>
    %cst_220 = arith.constant 9.99999974E-6 : f32
    %279 = vector.broadcast %cst_220 : f32 to vector<16x1xf32>
    %280 = arith.addf %276, %279 : vector<16x1xf32>
    %281 = math.rsqrt %280 : vector<16x1xf32>
    %282 = vector.broadcast %281 : vector<16x1xf32> to vector<16x32xf32>
    %283 = arith.mulf %278, %282 : vector<16x32xf32>
    %284 = vector.broadcast %263 : vector<1x32xf32> to vector<16x32xf32>
    %285 = arith.mulf %283, %284 : vector<16x32xf32>
    %286 = vector.broadcast %265 : vector<1x32xf32> to vector<16x32xf32>
    %287 = arith.addf %285, %286 : vector<16x32xf32>
    %c1_i32 = arith.constant 1 : i32
    %288 = arith.cmpi slt, %arg1, %c1_i32 : i32
    %289 = arith.extui %288 : i1 to i32
    %c0_i32_221 = arith.constant 0 : i32
    %290 = arith.cmpi ne, %289, %c0_i32_221 : i32
    scf.if %290 {
      %c0_224 = arith.constant 0 : index
      %c0_225 = arith.constant 0 : index
      %294 = vector.load %arg20[%c0_224, %c0_225] : memref<16x32xf32, #tpu.memory_space<vmem>>, vector<16x32xf32>
      tpu.vector_store %arg20[%c0_224, %c0_225], %287 {strides = array<i32>} : memref<16x32xf32, #tpu.memory_space<vmem>>, vector<16x32xf32>,
    } else {
    }
    %c1_i32_222 = arith.constant 1 : i32
    %291 = arith.cmpi eq, %arg1, %c1_i32_222 : i32
    %292 = arith.extui %291 : i1 to i32
    %c0_i32_223 = arith.constant 0 : i32
    %293 = arith.cmpi ne, %292, %c0_i32_223 : i32
    scf.if %293 {
      %c0_224 = arith.constant 0 : index
      %c0_225 = arith.constant 0 : index
      %c0_226 = arith.constant 0 : index
      %294 = vector.load %arg19[%c0_224, %c0_225, %c0_226] : memref<1x16x32xf32, #tpu.memory_space<vmem>>, vector<1x16x32xf32>
      %295 = vector.shape_cast %294 : vector<1x16x32xf32> to vector<16x32xf32>
      %296 = vector.shape_cast %287 : vector<16x32xf32> to vector<1x16x32xf32>
      tpu.vector_store %arg19[%c0_224, %c0_225, %c0_226], %296 {strides = array<i32>} : memref<1x16x32xf32, #tpu.memory_space<vmem>>, vector<1x16x32xf32>,
    } else {
    }
    return
  }
  func.func @transform_0(%arg0: i32, %arg1: i32) -> (i32, i32, i32) {
    %c0_i32 = arith.constant 0 : i32
    %c0_i32_0 = arith.constant 0 : i32
    %c0_i32_1 = arith.constant 0 : i32
    return %arg0, %c0_i32, %c0_i32_0 : i32, i32, i32
  }
  func.func @transform_1(%arg0: i32, %arg1: i32) -> (i32, i32, i32, i32) {
    %c0_i32 = arith.constant 0 : i32
    %c0_i32_0 = arith.constant 0 : i32
    %c0_i32_1 = arith.constant 0 : i32
    %c0_i32_2 = arith.constant 0 : i32
    return %arg1, %c0_i32, %c0_i32_0, %c0_i32_1 : i32, i32, i32, i32
  }
  func.func @transform_2(%arg0: i32, %arg1: i32) -> (i32, i32, i32, i32) {
    %c0_i32 = arith.constant 0 : i32
    %c0_i32_0 = arith.constant 0 : i32
    %c0_i32_1 = arith.constant 0 : i32
    %c0_i32_2 = arith.constant 0 : i32
    return %arg1, %c0_i32, %c0_i32_0, %c0_i32_1 : i32, i32, i32, i32
  }
  func.func @transform_3(%arg0: i32, %arg1: i32) -> (i32, i32, i32, i32) {
    %c0_i32 = arith.constant 0 : i32
    %c0_i32_0 = arith.constant 0 : i32
    %c0_i32_1 = arith.constant 0 : i32
    %c0_i32_2 = arith.constant 0 : i32
    return %arg1, %c0_i32, %c0_i32_0, %c0_i32_1 : i32, i32, i32, i32
  }
  func.func @transform_4(%arg0: i32, %arg1: i32) -> (i32, i32, i32, i32) {
    %c0_i32 = arith.constant 0 : i32
    %c0_i32_0 = arith.constant 0 : i32
    %c0_i32_1 = arith.constant 0 : i32
    %c0_i32_2 = arith.constant 0 : i32
    return %arg1, %c0_i32, %c0_i32_0, %c0_i32_1 : i32, i32, i32, i32
  }
  func.func @transform_5(%arg0: i32, %arg1: i32) -> (i32, i32, i32, i32) {
    %c0_i32 = arith.constant 0 : i32
    %c0_i32_0 = arith.constant 0 : i32
    %c0_i32_1 = arith.constant 0 : i32
    %c0_i32_2 = arith.constant 0 : i32
    return %arg1, %c0_i32, %c0_i32_0, %c0_i32_1 : i32, i32, i32, i32
  }
  func.func @transform_6(%arg0: i32, %arg1: i32) -> (i32, i32, i32, i32) {
    %c0_i32 = arith.constant 0 : i32
    %c0_i32_0 = arith.constant 0 : i32
    %c0_i32_1 = arith.constant 0 : i32
    %c0_i32_2 = arith.constant 0 : i32
    return %arg1, %c0_i32, %c0_i32_0, %c0_i32_1 : i32, i32, i32, i32
  }
  func.func @transform_7(%arg0: i32, %arg1: i32) -> (i32, i32, i32, i32) {
    %c0_i32 = arith.constant 0 : i32
    %c0_i32_0 = arith.constant 0 : i32
    %c0_i32_1 = arith.constant 0 : i32
    %c0_i32_2 = arith.constant 0 : i32
    return %arg1, %c0_i32, %c0_i32_0, %c0_i32_1 : i32, i32, i32, i32
  }
  func.func @transform_8(%arg0: i32, %arg1: i32) -> (i32, i32, i32) {
    %c0_i32 = arith.constant 0 : i32
    %c0_i32_0 = arith.constant 0 : i32
    %c0_i32_1 = arith.constant 0 : i32
    return %arg1, %c0_i32, %c0_i32_0 : i32, i32, i32
  }
  func.func @transform_9(%arg0: i32, %arg1: i32) -> (i32, i32, i32) {
    %c0_i32 = arith.constant 0 : i32
    %c0_i32_0 = arith.constant 0 : i32
    %c0_i32_1 = arith.constant 0 : i32
    return %arg1, %c0_i32, %c0_i32_0 : i32, i32, i32
  }
  func.func @transform_10(%arg0: i32, %arg1: i32) -> (i32, i32, i32) {
    %c0_i32 = arith.constant 0 : i32
    %c0_i32_0 = arith.constant 0 : i32
    %c0_i32_1 = arith.constant 0 : i32
    return %arg1, %c0_i32, %c0_i32_0 : i32, i32, i32
  }
  func.func @transform_11(%arg0: i32, %arg1: i32) -> (i32, i32, i32) {
    %c0_i32 = arith.constant 0 : i32
    %c0_i32_0 = arith.constant 0 : i32
    %c0_i32_1 = arith.constant 0 : i32
    return %arg1, %c0_i32, %c0_i32_0 : i32, i32, i32
  }
  func.func @transform_12(%arg0: i32, %arg1: i32) -> (i32, i32, i32) {
    %c0_i32 = arith.constant 0 : i32
    %c0_i32_0 = arith.constant 0 : i32
    %c0_i32_1 = arith.constant 0 : i32
    return %arg1, %c0_i32, %c0_i32_0 : i32, i32, i32
  }
  func.func @transform_13(%arg0: i32, %arg1: i32) -> (i32, i32, i32) {
    %c0_i32 = arith.constant 0 : i32
    %c0_i32_0 = arith.constant 0 : i32
    %c0_i32_1 = arith.constant 0 : i32
    return %arg1, %c0_i32, %c0_i32_0 : i32, i32, i32
  }
  func.func @transform_14(%arg0: i32, %arg1: i32) -> (i32, i32, i32) {
    %c0_i32 = arith.constant 0 : i32
    %c0_i32_0 = arith.constant 0 : i32
    %c0_i32_1 = arith.constant 0 : i32
    return %arg1, %c0_i32, %c0_i32_0 : i32, i32, i32
  }
  func.func @transform_15(%arg0: i32, %arg1: i32) -> (i32, i32, i32) {
    %c0_i32 = arith.constant 0 : i32
    %c0_i32_0 = arith.constant 0 : i32
    %c0_i32_1 = arith.constant 0 : i32
    return %arg1, %c0_i32, %c0_i32_0 : i32, i32, i32
  }
  func.func @transform_16(%arg0: i32, %arg1: i32) -> (i32, i32, i32) {
    %c0_i32 = arith.constant 0 : i32
    %c0_i32_0 = arith.constant 0 : i32
    %c0_i32_1 = arith.constant 0 : i32
    return %arg1, %c0_i32, %c0_i32_0 : i32, i32, i32
  }
  func.func @transform_17(%arg0: i32, %arg1: i32) -> (i32, i32, i32) {
    %c0_i32 = arith.constant 0 : i32
    %c0_i32_0 = arith.constant 0 : i32
    %c0_i32_1 = arith.constant 0 : i32
    return %arg0, %c0_i32, %c0_i32_0 : i32, i32, i32
  }
}

</mosaic_0001>

<bundles_post_ra>
// kernel: tpu_custom_call.1
= control target key start
LH: loop header
LB: loop body
LE: loop exit
PB: predicated region body
PF: predicated region fallthrough
CT: control target
= control target key end

     0   :  { %s7450_s0 = inlined_call_operand.vmem [shape: f32[1,16,32], index: 0, kind: input, shape index: {}]   ;;  %s7451_s1 = inlined_call_operand.vmem [shape: f32[2,4,32,8], index: 1, kind: input, shape index: {}]   ;;  %s7452_s2 = inlined_call_operand.vmem [shape: f32[2,4,32,8], index: 2, kind: input, shape index: {}]   ;;  %s7453_s3 = inlined_call_operand.vmem [shape: f32[2,4,32,8], index: 3, kind: input, shape index: {}]   ;;  %s7454_s4 = inlined_call_operand.vmem [shape: f32[2,4,1,8], index: 4, kind: input, shape index: {}]   ;;  %s7455_s5 = inlined_call_operand.vmem [shape: f32[2,4,1,8], index: 5, kind: input, shape index: {}]   ;;  %s7456_s6 = inlined_call_operand.vmem [shape: f32[2,4,1,8], index: 6, kind: input, shape index: {}]   ;;  %s7457_s7 = inlined_call_operand.vmem [shape: f32[2,4,8,32], index: 7, kind: input, shape index: {}]   ;;  %s7458_s8 = inlined_call_operand.vmem [shape: f32[2,1,32], index: 8, kind: input, shape index: {}]   ;;  %s7459_s9 = inlined_call_operand.vmem [shape: f32[2,1,32], index: 9, kind: input, shape index: {}]   ;;  %s7460_s10 = inlined_call_operand.vmem [shape: f32[2,1,32], index: 10, kind: input, shape index: {}]   ;;  %s7461_s11 = inlined_call_operand.vmem [shape: f32[2,1,32], index: 11, kind: input, shape index: {}]   ;;  %s7462_s12 = inlined_call_operand.vmem [shape: f32[2,1,32], index: 12, kind: input, shape index: {}]   ;;  %s7463_s13 = inlined_call_operand.vmem [shape: f32[2,32,2048], index: 13, kind: input, shape index: {}]   ;;  %s7464_s14 = inlined_call_operand.vmem [shape: f32[2,1,2048], index: 14, kind: input, shape index: {}]   ;;  %s7465_s15 = inlined_call_operand.vmem [shape: f32[2,2048,32], index: 15, kind: input, shape index: {}]   ;;  %s7466_s16 = inlined_call_operand.vmem [shape: f32[2,1,32], index: 16, kind: input, shape index: {}]   ;;  %s7467_s17 = inlined_call_operand.hbm [shape: f32[1,16,32], index: 17, kind: output, shape index: {}]  }
   0x1   :  { %7475 = sst [smem:[#allocation13_spill]] %s7450_s0 }
   0x2   :  { %7476 = sst [smem:[#allocation14_spill]] %s7451_s1 }
   0x3   :  { %7477 = sst [smem:[#allocation15_spill]] %s7452_s2 }
   0x4   :  { %7478 = sst [smem:[#allocation16_spill]] %s7453_s3 }
   0x5   :  { %7479 = sst [smem:[#allocation17_spill]] %s7454_s4 }
   0x6   :  { %7480 = sst [smem:[#allocation18_spill]] %s7455_s5 }
   0x7   :  { %7481 = sst [smem:[#allocation19_spill]] %s7456_s6 }
   0x8   :  { %7482 = sst [smem:[#allocation20_spill]] %s7467_s17 }
   0x9   :  { %22 = vsyncpa [#allocation4], 0  ;;  %s6590_s24 = smov 0   ;;  %s6592_s25 = smov 0  }
   0xa   :  { %s6594_s26 = smov 0  }
   0xb LB: > { %7483 = sst [smem:[#allocation6_spill]] %s6485_s24  ;;  %s37_s28 = sadd.s32 1, %s6489_s25  ;;  %s6493_s26 = sphi %s6594_s26, %s28_s26   ;;  %s6489_s25 = sphi %s6592_s25, %s7514_s25   ;;  %s6485_s24 = sphi %s6590_s24, %s7513_s24  }
   0xc   : > { %7484 = sst [smem:[#allocation7_spill]] %s6489_s25  ;;  %p38_p0 = scmp.ge.s32.totalorder %s37_s28, 2 }
   0xd   : > { %7485 = sst [smem:[#allocation8_spill]] %s6493_s26  ;;  %p5548_p1 = scmp.ge.s32.totalorder %s6493_s26, 1 }
   0xe   : > { %p644_p2 = scmp.lt.s32.totalorder %s6493_s26, 3  ;;  %s7516_s28 = smov (%p38_p0, %s37_s28), 0 }
   0xf   : > { %7486 = sst [smem:[#allocation9_spill]] %s7516_s28 }
  0x10   : > { %p645_p3 = pnand %p5548_p1, %p644_p2 }
  0x12   : > { %648 = sbr.rel (%p645_p3) target bundleno = 5245 (0x147d), region = 88 }
  0x17   : > { %p760_p4 = scmp.lt.s32.totalorder %s6485_s24, 1  ;;  %s7487_s1 = sld [smem:[#allocation14_spill]] }
  0x18   : > { %s7488_s2 = sld [smem:[#allocation15_spill]] }
  0x19   : > { %s6613_s29 = scalar_select %p760_p4, %s6485_s24, 1 }
  0x1a   : > { %s7489_s3 = sld [smem:[#allocation16_spill]] }
  0x1b   : > { %s5710_s0 = sshll.u32 %s6613_s29, 7  ;;  %s5555_s30 = sshll.u32 %s6613_s29, 2 }
  0x1c   : > { %s7491_s4 = sld [smem:[#allocation17_spill]]  ;;  %s5713_s27 = sshll.u32 %s6613_s29, 5 }
  0x1d   : > { %s6620_s20 = scalar_lea.vmem %s7487_s1, %s5710_s0  ;;  %s7493_s5 = sld [smem:[#allocation18_spill]] }
  0x1e   : > { %s6625_s23 = scalar_lea.vmem %s7488_s2, %s5710_s0  ;;  %s7494_s6 = sld [smem:[#allocation19_spill]] }
  0x1f   : > { %s6655_s26 = scalar_lea.vmem %s7457_s7, %s5713_s27 }
  0x20   : > { %s6630_s25 = scalar_lea.vmem %s7489_s3, %s5710_s0  ;;  %s5714_s3 = sshll.u32 %s6613_s29, 9 }
  0x21   : > { %7490 = sst [smem:[#allocation10_spill]] %s6630_s25  ;;  %s6677_s17 = scalar_lea.vmem %s7463_s13, %s5714_s3 }
  0x22   : > { %s6635_s24 = scalar_lea.vmem %s7491_s4, %s5555_s30  ;;  %s5562_s4 = sshll.u32 %s6613_s29, 4 }
  0x23   : > { %7492 = sst [smem:[#allocation11_spill]] %s6635_s24  ;;  %s6640_s1 = scalar_lea.vmem %s7493_s5, %s5555_s30 }
  0x24   : > { %s6645_s2 = scalar_lea.vmem %s7494_s6, %s5555_s30  ;;  %s6683_s5 = scalar_lea.vmem %s7464_s14, %s5562_s4 }
  0x25   : > { %7495 = sst [smem:[#allocation12_spill]] %s6645_s2  ;;  %s5715_s24 = sshll.u32 %s6613_s29, 11 }
  0x26   : > { %s6689_s22 = scalar_lea.vmem %s7465_s15, %s5715_s24  ;;  %s823_s0 = scalar_lea.vmem %s7466_s16, %s6613_s29 }
  0x27   : > { %s7496_s6 = sld [smem:[#allocation6_spill]] }
  0x2d   : > { %p5565_p5 = scmp.ne.s32.totalorder %s7496_s6, 0 }
  0x2e   : > { %s7497_s27 = sld [smem:[#allocation13_spill]] (!%p5565_p5) }
  0x2f   : > { %827 = sbr.rel (%p5565_p5) target bundleno = 54 (0x36), region = 92 }
  0x34   : > { %v828_v0 = vld [vmem:[%s7497_s27] sm:$0xff]  ;;  %vm830_vm0 = vcmask 261120   ;;  %v829_v1 = vld [vmem:[%s7497_s27 + $0x8] sm:$0xff] }
  0x35   : > { %831 = vst.msk [vmem:[#allocation2] sm:$0xff] %vm830_vm0, %v828_v0  ;;  %832 = vst.msk [vmem:[#allocation2 + $0x8] sm:$0xff] %vm830_vm0, %v829_v1 }
  0x36 PF: > { %v931_v2 = vld [vmem:[%s6625_s23 + $0x18] sm:$0xff]  ;;  %v930_v4 = vld [vmem:[%s6625_s23 + $0x10] sm:$0xff]  ;;  %v929_v6 = vld [vmem:[%s6625_s23 + $0x8] sm:$0xff]  ;;  %vm846_vm1 = vcmask 261120   ;;  %s7498_s6 = sld [smem:[#allocation11_spill]]  ;;  %v6495_v12 = vmov 0.0   ;;  %s7502_s30 = scalar_lea.vmem %s7459_s9, %s6613_s29 }
  0x37   : > { %v838_v3 = vld [vmem:[%s6620_s20 + $0x18] sm:$0xff]  ;;  %6147 = vmatprep.subr.mxu1 %v931_v2  ;;  %v837_v5 = vld [vmem:[%s6620_s20 + $0x10] sm:$0xff]  ;;  %v836_v7 = vld [vmem:[%s6620_s20 + $0x8] sm:$0xff]  ;;  %vm6496_vm2 = vmmov 0   ;;  %s7499_s21 = sld [smem:[#allocation10_spill]]  ;;  %vm1100_vm3 = vcmask 64512   ;;  %s7503_s3 = scalar_lea.vmem %s7460_s10, %s6613_s29 }
  0x38   : > { %6136 = vmatprep.subr.mxu0 %v838_v3  ;;  %6148 = vmatpush3.msra.mxu1 %v931_v2  ;;  %v928_v8 = vld [vmem:[%s6625_s23] sm:$0xff]  ;;  %s7500_s18 = sld [smem:[#allocation12_spill]]  ;;  %v5592_v48 = vld [vmem:[%s6625_s23 + $0x38] sm:$0xff]  ;;  %v5591_v56 = vld [vmem:[%s6625_s23 + $0x30] sm:$0xff]  ;;  %s7504_s25 = scalar_lea.vmem %s7461_s11, %s6613_s29 }
  0x39   : > { %6137 = vmatpush3.msra.mxu0 %v838_v3  ;;  %6149 = vmatprep.subr.mxu1 %v930_v4  ;;  %v835_v9 = vld [vmem:[%s6620_s20] sm:$0xff]  ;;  %v5584_v51 = vld [vmem:[%s6620_s20 + $0x38] sm:$0xff]  ;;  %v5590_v58 = vld [vmem:[%s6625_s23 + $0x28] sm:$0xff] }
  0x3a   : > { %6138 = vmatprep.subr.mxu0 %v837_v5  ;;  %6150 = vmatpush3.msra.mxu1 %v930_v4  ;;  %v5569_v15 = vld [vmem:[%s6640_s1] ss:$0 sm:$0xff]  ;;  %v5583_v60 = vld [vmem:[%s6620_s20 + $0x30] sm:$0xff]  ;;  %v5582_v62 = vld [vmem:[%s6620_s20 + $0x28] sm:$0xff] }
  0x3b   : > { %6139 = vmatpush3.msra.mxu0 %v837_v5  ;;  %6151 = vmatprep.subr.mxu1 %v929_v6  ;;  %v5589_v61 = vld [vmem:[%s6625_s23 + $0x20] sm:$0xff] }
  0x3c   : > { %6140 = vmatprep.subr.mxu0 %v836_v7  ;;  %v6710_v10 = vld [vmem:[#allocation2] sm:$0xff]  ;;  %6152 = vmatpush3.msra.mxu1 %v929_v6  ;;  %v6712_v11 = vld [vmem:[#allocation2 + $0x8] sm:$0xff] }
  0x3d   : > { %6141 = vmatpush3.msra.mxu0 %v836_v7  ;;  %6153 = vmatprep.subr.mxu1 %v928_v8  ;;  %v5566_v17 = vld [vmem:[%s7498_s6] ss:$0 sm:$0xff]  ;;  %v1017_v23 = vld [vmem:[%s7499_s21 + $0x18] sm:$0xff]  ;;  %v1016_v24 = vld [vmem:[%s7499_s21 + $0x10] sm:$0xff] }
  0x3e   : > { %6142 = vmatprep.subr.mxu0 %v835_v9  ;;  %6154 = vmatpush3.msra.mxu1 %v928_v8  ;;  %v1015_v25 = vld [vmem:[%s7499_s21 + $0x8] sm:$0xff]  ;;  %v1014_v26 = vld [vmem:[%s7499_s21] sm:$0xff] }
  0x3f   : > { %6155 = vmatprep.mubr.msk.f32.mxu1 %vm846_vm1, %v6710_v10  ;;  %6143 = vmatpush3.msra.mxu0 %v835_v9  ;;  %v5572_v46 = vld [vmem:[%s7500_s18] ss:$0 sm:$0xff]  ;;  %v5594_v5 = vld [vmem:[%s6640_s1 + $0x1] ss:$0 sm:$0xff] }
  0x40   : > { %6144 = vmatprep.mubr.msk.f32.mxu0 %vm846_vm1, %v6710_v10  ;;  %6156 = vmatmul.mubr.msk.f32.vlgmr.msra.gmra.mxu1 %vm846_vm1, %v6712_v11  ;;  %v5581_v63 = vld [vmem:[%s6620_s20 + $0x20] sm:$0xff] }
  0x41   : > { %6145 = vmatmul.mubr.msk.f32.vlgmr.msra.gmra.mxu0 %vm846_vm1, %v6712_v11  ;;  %6169 = vmatprep.subr.mxu1 %v6495_v12  ;;  %v5586_v9 = vld [vmem:[%s7498_s6 + $0x1] ss:$0 sm:$0xff] }
  0x42   : > { %6166 = vmatprep.mubr.msk.f32.mxu0 %vm846_vm1, %v6710_v10  ;;  %6171 = vmatprep.mubr.msk.f32.mxu1 %vm6496_vm2, %v6495_v12 }
  0x43   : > { %6158 = vmatprep.subr.mxu0 %v1017_v23 }
  0x44   : > { %6159 = vmatpush3.msra.mxu0 %v1017_v23 }
  0x45   : > { %6160 = vmatprep.subr.mxu0 %v1016_v24 }
  0x46   : > { %6161 = vmatpush3.msra.mxu0 %v1016_v24 }
  0x47   : > { %6162 = vmatprep.subr.mxu0 %v1015_v25 }
  0x48   : > { %6163 = vmatpush3.msra.mxu0 %v1015_v25 }
  0x49   : > { %6164 = vmatprep.subr.mxu0 %v1014_v26 }
  0x4a   : > { %6165 = vmatpush3.msra.mxu0 %v1014_v26 }
  0x4b   : > { %6167 = vmatmul.mubr.msk.f32.vlgmr.msra.gmra.mxu0 %vm846_vm1, %v6712_v11  ;;  %6179 = vmatprep.subr.mxu0 %v6495_v12 }
  0x4c   : > { %6181 = vmatprep.mubr.msk.f32.mxu0 %vm6496_vm2, %v6495_v12 }
 0x100   : > { %v6157_v13 = vpop.f32.mrf.mxu1 }
 0x101   : > { %v6146_v14 = vpop.f32.mrf.mxu0  ;;  %v1011_v21 = vadd.f32 %v6157_v13, %v5569_v15 }
 0x102   : > { %v1005_v16 = vpop.f32.mrf.mxu1  ;;  %v925_v22 = vadd.f32 %v6146_v14, %v5566_v17 }
 0x103   : > { %v1006_v18 = vadd.f32 %v5569_v15, %v1005_v16  ;;  %v919_v19 = vpop.f32.mrf.mxu0 }
 0x104   : > { %v920_v20 = vadd.f32 %v5566_v17, %v919_v19  ;;  %v5600_v17 = vld [vmem:[%s7499_s21 + $0x38] sm:$0xff]  ;;  %v5598_v19 = vld [vmem:[%s7499_s21 + $0x28] sm:$0xff] }
 0x105   : > { %6170 = vmatpush3.xpose.msk.msra.mxu1 %vm1100_vm3, %v1006_v18  ;;  %v5599_v18 = vld [vmem:[%s7499_s21 + $0x30] sm:$0xff] }
 0x106   : > { %6174 = vmatprep.subr.mxu1 %v6495_v12 }
 0x108   : > { %6172 = vmatmul.mubr.msk.f32.vlgmr.msra.gmra.mxu1 %vm1100_vm3, %v920_v20  ;;  %v5597_v20 = vld [vmem:[%s7499_s21 + $0x20] sm:$0xff] }
 0x109   : > { %6175 = vmatpush3.xpose.msk.msra.mxu1 %vm1100_vm3, %v1011_v21  ;;  %6176 = vmatprep.mubr.msk.f32.mxu1 %vm6496_vm2, %v6495_v12 }
 0x10a   : > { %6184 = vmatprep.subr.mxu1 %v6495_v12 }
 0x10b   : > { %v6168_v45 = vpop.f32.mrf.mxu0 }
 0x10c   : > { %6177 = vmatmul.mubr.msk.f32.vlgmr.msra.gmra.mxu1 %vm1100_vm3, %v925_v22  ;;  %v1097_v47 = vadd.f32 %v6168_v45, %v5572_v46 }
 0x10d   : > { %6186 = vmatprep.mubr.msk.f32.mxu1 %vm6496_vm2, %v6495_v12  ;;  %v1091_v49 = vpop.f32.mrf.mxu0 }
 0x10e   : > { %v1092_v50 = vadd.f32 %v5572_v46, %v1091_v49  ;;  %6185 = vmatpush3.msra.mxu1 %v1097_v47 }
 0x10f   : > { %6200 = vmatprep.subr.mxu1 %v5592_v48 }
 0x110   : > { %6180 = vmatpush3.msra.mxu0 %v1092_v50 }
 0x111   : > { %6189 = vmatprep.subr.mxu0 %v5584_v51 }
 0x1c8   : > { %v1173_v27 = vpop.f32.mrf.mxu1 }
 0x1c9   : > { %v1253_v32 = vmul.f32 0.35355338, %v1173_v27 }
 0x1ca   : > { %v6173_v28 = vpop.f32.mrf.mxu1 }
 0x1cb   : > { %v1255_v34 = vsel %vm1100_vm3, %v1253_v32, -inf }
 0x1cc   : > { %v1249_v29 = vpop.f32.mrf.mxu1 }
 0x1cd   : > { %v1254_v30 = vmul.f32 0.35355338, %v1249_v29 }
 0x1ce   : > { %v6178_v31 = vpop.f32.mrf.mxu1 }
 0x1cf   : > { %v1258_v33 = vsel %vm1100_vm3, %v1254_v30, -inf }
 0x1d0   : > { %1259 = vmax.xlane.f32.xlu0 %v1258_v33 }
 0x1d4   : > { %1256 = vmax.xlane.f32.xlu0 %v1255_v34 }
 0x259   : > { %v1260_v35 = vpop.xlane.xlu0 %1259 }
 0x25a   : > { %v1262_v36 = vsub.f32 %v1254_v30, %v1260_v35 }
 0x25c   : > { %v1265_v37 = vmul.f32 1.442695, %v1262_v36 }
 0x25d   : > { %v1257_v38 = vpop.xlane.xlu0 %1256 }
 0x25e   : > { %6403 = vpow2.f32 %v1265_v37  ;;  %v1261_v39 = vsub.f32 %v1253_v32, %v1257_v38 }
 0x260   : > { %v1263_v40 = vmul.f32 1.442695, %v1261_v39 }
 0x262   : > { %6405 = vpow2.f32 %v1263_v40  ;;  %v5602_v40 = vld [vmem:[%s7500_s18 + $0x1] ss:$0 sm:$0xff] }
 0x26b   : > { %v6404_v41 = vpop.eup %6403 }
 0x26c   : > { %v1270_v42 = vsel %vm1100_vm3, %v6404_v41, 0.0 }
 0x26d   : > { %1271 = vadd.xlane.f32.xlu1 %v1270_v42 }
 0x26f   : > { %v6406_v43 = vpop.eup %6405 }
 0x270   : > { %v1267_v44 = vsel %vm1100_vm3, %v6406_v43, 0.0 }
 0x271   : > { %1268 = vadd.xlane.f32.xlu1 %v1267_v44  ;;  %v1423_v44 = vld [vmem:[%s6655_s26] sm:$0xff] }
 0x2f6   : > { %v1272_v52 = vpop.xlane.xlu1 %1271 }
 0x2f7   : > { %6407 = vrcp.f32 %v1272_v52  ;;  %v5611_v52 = vld [vmem:[%s6655_s26 + $0x8] sm:$0xff] }
 0x2fa   : > { %v1269_v53 = vpop.xlane.xlu1 %1268 }
 0x2fb   : > { %6409 = vrcp.f32 %v1269_v53  ;;  %v5626_v53 = vld [vmem:[%s6625_s23 + $0x50] sm:$0xff] }
 0x304   : > { %v6408_v54 = vpop.eup %6407 }
 0x305   : > { %v1276_v55 = vmul.f32 %v6408_v54, %v6404_v41  ;;  %v5625_v54 = vld [vmem:[%s6625_s23 + $0x48] sm:$0xff] }
 0x307   : > { %6187 = vmatmul.mubr.msk.f32.vlgmr.msra.gmra.mxu1 %vm1100_vm3, %v1276_v55  ;;  %v5619_v55 = vld [vmem:[%s6620_s20 + $0x58] sm:$0xff] }
 0x308   : > { %v6410_v57 = vpop.eup %6409  ;;  %6201 = vmatpush3.msra.mxu1 %v5592_v48  ;;  %6208 = vmatprep.mubr.msk.f32.mxu1 %vm846_vm1, %v6710_v10 }
 0x309   : > { %6202 = vmatprep.subr.mxu1 %v5591_v56  ;;  %v1274_v59 = vmul.f32 %v6410_v57, %v6406_v43 }
 0x30a   : > { %6203 = vmatpush3.msra.mxu1 %v5591_v56  ;;  %v5624_v56 = vld [vmem:[%s6625_s23 + $0x40] sm:$0xff] }
 0x30b   : > { %6204 = vmatprep.subr.mxu1 %v5590_v58  ;;  %6182 = vmatmul.mubr.msk.f32.vlgmr.msra.gmra.mxu0 %vm1100_vm3, %v1274_v59 }
 0x30c   : > { %6190 = vmatpush3.msra.mxu0 %v5584_v51  ;;  %6205 = vmatpush3.msra.mxu1 %v5590_v58  ;;  %v5627_v51 = vld [vmem:[%s6625_s23 + $0x58] sm:$0xff] }
 0x30d   : > { %6191 = vmatprep.subr.mxu0 %v5583_v60  ;;  %6206 = vmatprep.subr.mxu1 %v5589_v61 }
 0x30e   : > { %6192 = vmatpush3.msra.mxu0 %v5583_v60  ;;  %6207 = vmatpush3.msra.mxu1 %v5589_v61  ;;  %v5618_v60 = vld [vmem:[%s6620_s20 + $0x50] sm:$0xff] }
 0x30f   : > { %6193 = vmatprep.subr.mxu0 %v5582_v62  ;;  %6209 = vmatmul.mubr.msk.f32.vlgmr.msra.gmra.mxu1 %vm846_vm1, %v6712_v11 }
 0x310   : > { %6194 = vmatpush3.msra.mxu0 %v5582_v62  ;;  %6197 = vmatprep.mubr.msk.f32.mxu0 %vm846_vm1, %v6710_v10  ;;  %v5617_v62 = vld [vmem:[%s6620_s20 + $0x48] sm:$0xff] }
 0x311   : > { %6195 = vmatprep.subr.mxu0 %v5581_v63  ;;  %6222 = vmatprep.subr.mxu1 %v6495_v12 }
 0x312   : > { %6196 = vmatpush3.msra.mxu0 %v5581_v63  ;;  %6224 = vmatprep.mubr.msk.f32.mxu1 %vm6496_vm2, %v6495_v12  ;;  %v5616_v63 = vld [vmem:[%s6620_s20 + $0x40] sm:$0xff] }
 0x313   : > { %6198 = vmatmul.mubr.msk.f32.vlgmr.msra.gmra.mxu0 %vm846_vm1, %v6712_v11  ;;  %6211 = vmatprep.subr.mxu0 %v5600_v17 }
 0x314   : > { %6219 = vmatprep.mubr.msk.f32.mxu0 %vm846_vm1, %v6710_v10  ;;  %6212 = vmatpush3.msra.mxu0 %v5600_v17  ;;  %v5635_v17 = vld [vmem:[%s7499_s21 + $0x58] sm:$0xff] }
 0x315   : > { %6213 = vmatprep.subr.mxu0 %v5599_v18 }
 0x316   : > { %6214 = vmatpush3.msra.mxu0 %v5599_v18  ;;  %v5634_v18 = vld [vmem:[%s7499_s21 + $0x50] sm:$0xff] }
 0x317   : > { %6215 = vmatprep.subr.mxu0 %v5598_v19 }
 0x318   : > { %6216 = vmatpush3.msra.mxu0 %v5598_v19  ;;  %v5633_v19 = vld [vmem:[%s7499_s21 + $0x48] sm:$0xff] }
 0x319   : > { %6217 = vmatprep.subr.mxu0 %v5597_v20 }
 0x31a   : > { %6218 = vmatpush3.msra.mxu0 %v5597_v20  ;;  %v5632_v20 = vld [vmem:[%s7499_s21 + $0x40] sm:$0xff] }
 0x31b   : > { %6220 = vmatmul.mubr.msk.f32.vlgmr.msra.gmra.mxu0 %vm846_vm1, %v6712_v11  ;;  %6232 = vmatprep.subr.mxu0 %v6495_v12 }
 0x31c   : > { %6234 = vmatprep.mubr.msk.f32.mxu0 %vm6496_vm2, %v6495_v12 }
 0x3c7   : > { %v6776_v0 = vpop.f32.mrf.mxu1 }
 0x3c9   : > { %v6188_v1 = vpop.f32.mrf.mxu1 }
 0x3cb   : > { %v6778_v2 = vpop.f32.mrf.mxu0 }
 0x3cd   : > { %v6183_v3 = vpop.f32.mrf.mxu0 }
 0x3ce   : > { %v5629_v3 = vld [vmem:[%s6640_s1 + $0x2] ss:$0 sm:$0xff] }
 0x3cf   : > { %v6210_v4 = vpop.f32.mrf.mxu1 }
 0x3d0   : > { %v1597_v15 = vadd.f32 %v6210_v4, %v5594_v5 }
 0x3d1   : > { %v1591_v6 = vpop.f32.mrf.mxu1 }
 0x3d2   : > { %v1592_v7 = vadd.f32 %v5594_v5, %v1591_v6 }
 0x3d3   : > { %v6199_v8 = vpop.f32.mrf.mxu0 }
 0x3d4   : > { %6223 = vmatpush3.xpose.msk.msra.mxu1 %vm1100_vm3, %v1592_v7  ;;  %v1509_v16 = vadd.f32 %v6199_v8, %v5586_v9 }
 0x3d5   : > { %v1503_v13 = vpop.f32.mrf.mxu0  ;;  %6227 = vmatprep.subr.mxu1 %v6495_v12 }
 0x3d6   : > { %v1504_v14 = vadd.f32 %v5586_v9, %v1503_v13  ;;  %v5621_v13 = vld [vmem:[%s7498_s6 + $0x2] ss:$0 sm:$0xff] }
 0x3d8   : > { %6225 = vmatmul.mubr.msk.f32.vlgmr.msra.gmra.mxu1 %vm1100_vm3, %v1504_v14 }
 0x3d9   : > { %6228 = vmatpush3.xpose.msk.msra.mxu1 %vm1100_vm3, %v1597_v15  ;;  %6229 = vmatprep.mubr.msk.f32.mxu1 %vm6496_vm2, %v6495_v12 }
 0x3da   : > { %6237 = vmatprep.subr.mxu1 %v6495_v12 }
 0x3db   : > { %v6221_v39 = vpop.f32.mrf.mxu0 }
 0x3dc   : > { %6230 = vmatmul.mubr.msk.f32.vlgmr.msra.gmra.mxu1 %vm1100_vm3, %v1509_v16  ;;  %v1685_v41 = vadd.f32 %v6221_v39, %v5602_v40 }
 0x3dd   : > { %6239 = vmatprep.mubr.msk.f32.mxu1 %vm6496_vm2, %v6495_v12  ;;  %v1679_v42 = vpop.f32.mrf.mxu0 }
 0x3de   : > { %v1680_v43 = vadd.f32 %v5602_v40, %v1679_v42  ;;  %6238 = vmatpush3.msra.mxu1 %v1685_v41  ;;  %v5637_v40 = vld [vmem:[%s7500_s18 + $0x2] ss:$0 sm:$0xff] }
 0x3df   : > { %6247 = vmatprep.subr.mxu1 %v1423_v44 }
 0x3e0   : > { %6233 = vmatpush3.msra.mxu0 %v1680_v43 }
 0x3e1   : > { %6242 = vmatprep.subr.mxu0 %v5611_v52 }
 0x498   : > { %v1760_v21 = vpop.f32.mrf.mxu1 }
 0x499   : > { %v1840_v22 = vmul.f32 0.35355338, %v1760_v21 }
 0x49a   : > { %v6226_v23 = vpop.f32.mrf.mxu1 }
 0x49b   : > { %v1842_v24 = vsel %vm1100_vm3, %v1840_v22, -inf }
 0x49c   : > { %1843 = vmax.xlane.f32.xlu0 %v1842_v24  ;;  %v1836_v25 = vpop.f32.mrf.mxu1 }
 0x49d   : > { %v1841_v26 = vmul.f32 0.35355338, %v1836_v25 }
 0x49e   : > { %v6231_v27 = vpop.f32.mrf.mxu1 }
 0x49f   : > { %v1845_v28 = vsel %vm1100_vm3, %v1841_v26, -inf }
 0x4a0   : > { %1846 = vmax.xlane.f32.xlu1 %v1845_v28 }
 0x525   : > { %v1844_v29 = vpop.xlane.xlu0 %1843 }
 0x526   : > { %v1848_v30 = vsub.f32 %v1840_v22, %v1844_v29 }
 0x528   : > { %v1850_v31 = vmul.f32 1.442695, %v1848_v30 }
 0x529   : > { %v1847_v32 = vpop.xlane.xlu1 %1846 }
 0x52a   : > { %6411 = vpow2.f32 %v1850_v31  ;;  %v1849_v33 = vsub.f32 %v1841_v26, %v1847_v32 }
 0x52c   : > { %v1852_v34 = vmul.f32 1.442695, %v1849_v33 }
 0x52e   : > { %6413 = vpow2.f32 %v1852_v34 }
 0x537   : > { %v6412_v35 = vpop.eup %6411 }
 0x538   : > { %v1854_v36 = vsel %vm1100_vm3, %v6412_v35, 0.0 }
 0x539   : > { %1855 = vadd.xlane.f32.xlu0 %v1854_v36 }
 0x53b   : > { %v6414_v37 = vpop.eup %6413 }
 0x53c   : > { %v1857_v38 = vsel %vm1100_vm3, %v6414_v37, 0.0 }
 0x53d   : > { %1858 = vadd.xlane.f32.xlu1 %v1857_v38 }
 0x5c2   : > { %v1856_v45 = vpop.xlane.xlu0 %1855 }
 0x5c3   : > { %6415 = vrcp.f32 %v1856_v45 }
 0x5c6   : > { %v1859_v46 = vpop.xlane.xlu1 %1858 }
 0x5c7   : > { %6417 = vrcp.f32 %v1859_v46 }
 0x5d0   : > { %v6416_v47 = vpop.eup %6415 }
 0x5d1   : > { %v1861_v48 = vmul.f32 %v6416_v47, %v6412_v35 }
 0x5d3   : > { %6235 = vmatmul.mubr.msk.f32.vlgmr.msra.gmra.mxu0 %vm1100_vm3, %v1861_v48 }
 0x5d4   : > { %v6418_v49 = vpop.eup %6417  ;;  %6243 = vmatpush3.msra.mxu0 %v5611_v52  ;;  %v5652_v52 = vld [vmem:[%s6620_s20 + $0x78] sm:$0xff] }
 0x5d5   : > { %v1863_v50 = vmul.f32 %v6418_v49, %v6414_v37  ;;  %6252 = vmatprep.subr.mxu0 %v5619_v55 }
 0x5d7   : > { %6240 = vmatmul.mubr.msk.f32.vlgmr.msra.gmra.mxu1 %vm1100_vm3, %v1863_v50  ;;  %v5646_v50 = vld [vmem:[%s6655_s26 + $0x10] sm:$0xff] }
 0x5d8   : > { %6249 = vmatprep.mubr.msk.f32.mxu1 %vm1100_vm3, %v6778_v2  ;;  %6248 = vmatpush3.msra.mxu1 %v1423_v44 }
 0x5d9   : > { %6263 = vmatprep.subr.mxu1 %v5627_v51 }
 0x5db   : > { %6250 = vmatmul.mubr.msk.f32.vlgmr.msra.gmra.mxu1 %vm1100_vm3, %v6776_v0 }
 0x5dc   : > { %6264 = vmatpush3.msra.mxu1 %v5627_v51  ;;  %6271 = vmatprep.mubr.msk.f32.mxu1 %vm846_vm1, %v6710_v10  ;;  %v5660_v51 = vld [vmem:[%s6625_s23 + $0x78] sm:$0xff] }
 0x5dd   : > { %6265 = vmatprep.subr.mxu1 %v5626_v53 }
 0x5de   : > { %6266 = vmatpush3.msra.mxu1 %v5626_v53  ;;  %v5651_v53 = vld [vmem:[%s6620_s20 + $0x70] sm:$0xff] }
 0x5df   : > { %6267 = vmatprep.subr.mxu1 %v5625_v54 }
 0x5e0   : > { %6268 = vmatpush3.msra.mxu1 %v5625_v54  ;;  %v5650_v54 = vld [vmem:[%s6620_s20 + $0x68] sm:$0xff] }
 0x5e1   : > { %6269 = vmatprep.subr.mxu1 %v5624_v56 }
 0x5e2   : > { %6270 = vmatpush3.msra.mxu1 %v5624_v56 }
 0x5e3   : > { %6272 = vmatmul.mubr.msk.f32.vlgmr.msra.gmra.mxu1 %vm846_vm1, %v6712_v11  ;;  %6285 = vmatprep.subr.mxu1 %v6495_v12 }
 0x5e4   : > { %6287 = vmatprep.mubr.msk.f32.mxu1 %vm6496_vm2, %v6495_v12 }
 0x693   : > { %v1933_v57 = vpop.f32.mrf.mxu0 }
 0x694   : > { %6244 = vmatprep.mubr.msk.f32.mxu0 %vm1100_vm3, %v1933_v57 }
 0x695   : > { %v6236_v58 = vpop.f32.mrf.mxu0 }
 0x697   : > { %v2006_v59 = vpop.f32.mrf.mxu1 }
 0x698   : > { %6245 = vmatmul.mubr.msk.f32.vlgmr.msra.gmra.mxu0 %vm1100_vm3, %v2006_v59  ;;  %v5659_v59 = vld [vmem:[%s6625_s23 + $0x70] sm:$0xff] }
 0x699   : > { %6253 = vmatpush3.msra.mxu0 %v5619_v55  ;;  %v6241_v61 = vpop.f32.mrf.mxu1  ;;  %6260 = vmatprep.mubr.msk.f32.mxu0 %vm846_vm1, %v6710_v10  ;;  %v5649_v55 = vld [vmem:[%s6620_s20 + $0x60] sm:$0xff] }
 0x69a   : > { %6254 = vmatprep.subr.mxu0 %v5618_v60  ;;  %v5658_v61 = vld [vmem:[%s6625_s23 + $0x68] sm:$0xff] }
 0x69b   : > { %6255 = vmatpush3.msra.mxu0 %v5618_v60  ;;  %v6837_v0 = vpop.f32.mrf.mxu1 }
 0x69c   : > { %6256 = vmatprep.subr.mxu0 %v5617_v62 }
 0x69d   : > { %6257 = vmatpush3.msra.mxu0 %v5617_v62  ;;  %v6839_v1 = vpop.f32.mrf.mxu1  ;;  %v5657_v62 = vld [vmem:[%s6625_s23 + $0x60] sm:$0xff] }
 0x69e   : > { %6258 = vmatprep.subr.mxu0 %v5616_v63 }
 0x69f   : > { %6259 = vmatpush3.msra.mxu0 %v5616_v63 }
 0x6a0   : > { %6261 = vmatmul.mubr.msk.f32.vlgmr.msra.gmra.mxu0 %vm846_vm1, %v6712_v11  ;;  %6274 = vmatprep.subr.mxu0 %v5635_v17 }
 0x6a1   : > { %6282 = vmatprep.mubr.msk.f32.mxu0 %vm846_vm1, %v6710_v10  ;;  %6275 = vmatpush3.msra.mxu0 %v5635_v17 }
 0x6a2   : > { %6276 = vmatprep.subr.mxu0 %v5634_v18 }
 0x6a3   : > { %v6273_v2 = vpop.f32.mrf.mxu1  ;;  %6277 = vmatpush3.msra.mxu0 %v5634_v18 }
 0x6a4   : > { %v2347_v4 = vadd.f32 %v6273_v2, %v5629_v3  ;;  %6278 = vmatprep.subr.mxu0 %v5633_v19 }
 0x6a5   : > { %v2341_v5 = vpop.f32.mrf.mxu1  ;;  %6279 = vmatpush3.msra.mxu0 %v5633_v19  ;;  %v5667_v19 = vld [vmem:[%s7499_s21 + $0x70] sm:$0xff] }
 0x6a6   : > { %v2342_v6 = vadd.f32 %v5629_v3, %v2341_v5  ;;  %6280 = vmatprep.subr.mxu0 %v5632_v20 }
 0x6a7   : > { %6281 = vmatpush3.msra.mxu0 %v5632_v20  ;;  %v5666_v20 = vld [vmem:[%s7499_s21 + $0x68] sm:$0xff] }
 0x6a8   : > { %6286 = vmatpush3.xpose.msk.msra.mxu1 %vm1100_vm3, %v2342_v6  ;;  %6283 = vmatmul.mubr.msk.f32.vlgmr.msra.gmra.mxu0 %vm846_vm1, %v6712_v11 }
 0x6a9   : > { %6290 = vmatprep.subr.mxu1 %v6495_v12  ;;  %6295 = vmatprep.subr.mxu0 %v6495_v12 }
 0x6aa   : > { %6297 = vmatprep.mubr.msk.f32.mxu0 %vm6496_vm2, %v6495_v12 }
 0x758   : > { %v6844_v7 = vpop.f32.mrf.mxu0 }
 0x759   : > { %v2171_v63 = vadd.f32 %v6837_v0, %v6844_v7 }
 0x75a   : > { %v6846_v8 = vpop.f32.mrf.mxu0 }
 0x75b   : > { %v2166_v3 = vadd.f32 %v6839_v1, %v6846_v8  ;;  %v5668_v8 = vld [vmem:[%s7499_s21 + $0x78] sm:$0xff] }
 0x760   : > { %v6262_v9 = vpop.f32.mrf.mxu0 }
 0x761   : > { %v2259_v16 = vadd.f32 %v6262_v9, %v5621_v13 }
 0x762   : > { %v2253_v14 = vpop.f32.mrf.mxu0 }
 0x763   : > { %v2254_v15 = vadd.f32 %v5621_v13, %v2253_v14  ;;  %v5662_v14 = vld [vmem:[%s6640_s1 + $0x3] ss:$0 sm:$0xff]  ;;  %s7501_s1 = scalar_lea.vmem %s7458_s8, %s6613_s29 }
 0x765   : > { %6288 = vmatmul.mubr.msk.f32.vlgmr.msra.gmra.mxu1 %vm1100_vm3, %v2254_v15 }
 0x766   : > { %6291 = vmatpush3.xpose.msk.msra.mxu1 %vm1100_vm3, %v2347_v4  ;;  %6292 = vmatprep.mubr.msk.f32.mxu1 %vm6496_vm2, %v6495_v12 }
 0x767   : > { %6300 = vmatprep.subr.mxu1 %v6495_v12 }
 0x768   : > { %v6284_v39 = vpop.f32.mrf.mxu0 }
 0x769   : > { %6293 = vmatmul.mubr.msk.f32.vlgmr.msra.gmra.mxu1 %vm1100_vm3, %v2259_v16  ;;  %v2435_v41 = vadd.f32 %v6284_v39, %v5637_v40  ;;  %v5654_v16 = vld [vmem:[%s7498_s6 + $0x3] ss:$0 sm:$0xff]  ;;  %s7505_s6 = scalar_lea.vmem %s7462_s12, %s6613_s29 }
 0x76a   : > { %6302 = vmatprep.mubr.msk.f32.mxu1 %vm6496_vm2, %v6495_v12  ;;  %v2429_v42 = vpop.f32.mrf.mxu0 }
 0x76b   : > { %v2430_v43 = vadd.f32 %v5637_v40, %v2429_v42  ;;  %6301 = vmatpush3.msra.mxu1 %v2435_v41  ;;  %v5670_v41 = vld [vmem:[%s7500_s18 + $0x3] ss:$0 sm:$0xff] }
 0x76c   : > { %6310 = vmatprep.subr.mxu1 %v5652_v52 }
 0x76d   : > { %6296 = vmatpush3.msra.mxu0 %v2430_v43 }
 0x76e   : > { %6305 = vmatprep.subr.mxu0 %v5646_v50 }
 0x825   : > { %v2510_v21 = vpop.f32.mrf.mxu1 }
 0x826   : > { %v2590_v22 = vmul.f32 0.35355338, %v2510_v21  ;;  %v5665_v21 = vld [vmem:[%s7499_s21 + $0x60] sm:$0xff]  ;;  %s7506_s21 = sld [smem:[#allocation6_spill]] }
 0x827   : > { %v6289_v23 = vpop.f32.mrf.mxu1 }
 0x828   : > { %v2592_v24 = vsel %vm1100_vm3, %v2590_v22, -inf }
 0x829   : > { %2593 = vmax.xlane.f32.xlu0 %v2592_v24  ;;  %v2586_v25 = vpop.f32.mrf.mxu1 }
 0x82a   : > { %v2591_v26 = vmul.f32 0.35355338, %v2586_v25 }
 0x82b   : > { %v6294_v27 = vpop.f32.mrf.mxu1 }
 0x82c   : > { %v2595_v28 = vsel %vm1100_vm3, %v2591_v26, -inf  ;;  %p5704_p6 = scmp.ge.s32.totalorder %s7506_s21, 1 }
 0x82d   : > { %2596 = vmax.xlane.f32.xlu1 %v2595_v28 }
 0x8b2   : > { %v2594_v29 = vpop.xlane.xlu0 %2593 }
 0x8b3   : > { %v2598_v30 = vsub.f32 %v2590_v22, %v2594_v29 }
 0x8b5   : > { %v2600_v31 = vmul.f32 1.442695, %v2598_v30 }
 0x8b6   : > { %v2597_v32 = vpop.xlane.xlu1 %2596 }
 0x8b7   : > { %6419 = vpow2.f32 %v2600_v31  ;;  %v2599_v33 = vsub.f32 %v2591_v26, %v2597_v32 }
 0x8b9   : > { %v2602_v34 = vmul.f32 1.442695, %v2599_v33 }
 0x8bb   : > { %6421 = vpow2.f32 %v2602_v34 }
 0x8c4   : > { %v6420_v35 = vpop.eup %6419 }
 0x8c5   : > { %v2604_v36 = vsel %vm1100_vm3, %v6420_v35, 0.0 }
 0x8c6   : > { %2605 = vadd.xlane.f32.xlu0 %v2604_v36 }
 0x8c8   : > { %v6422_v37 = vpop.eup %6421 }
 0x8c9   : > { %v2607_v38 = vsel %vm1100_vm3, %v6422_v37, 0.0 }
 0x8ca   : > { %2608 = vadd.xlane.f32.xlu1 %v2607_v38 }
 0x94f   : > { %v2606_v44 = vpop.xlane.xlu0 %2605 }
 0x950   : > { %6423 = vrcp.f32 %v2606_v44 }
 0x953   : > { %v2609_v45 = vpop.xlane.xlu1 %2608 }
 0x954   : > { %6425 = vrcp.f32 %v2609_v45 }
 0x95d   : > { %v6424_v46 = vpop.eup %6423 }
 0x95e   : > { %v2611_v47 = vmul.f32 %v6424_v46, %v6420_v35 }
 0x960   : > { %6298 = vmatmul.mubr.msk.f32.vlgmr.msra.gmra.mxu0 %vm1100_vm3, %v2611_v47 }
 0x961   : > { %v6426_v48 = vpop.eup %6425  ;;  %6306 = vmatpush3.msra.mxu0 %v5646_v50 }
 0x962   : > { %v2613_v49 = vmul.f32 %v6426_v48, %v6422_v37  ;;  %6321 = vmatprep.subr.mxu0 %v5660_v51 }
 0x964   : > { %6303 = vmatmul.mubr.msk.f32.vlgmr.msra.gmra.mxu1 %vm1100_vm3, %v2613_v49 }
 0x965   : > { %6318 = vmatprep.mubr.msk.f32.mxu1 %vm846_vm1, %v6710_v10  ;;  %6311 = vmatpush3.msra.mxu1 %v5652_v52 }
 0x966   : > { %6312 = vmatprep.subr.mxu1 %v5651_v53 }
 0x967   : > { %6313 = vmatpush3.msra.mxu1 %v5651_v53 }
 0x968   : > { %6314 = vmatprep.subr.mxu1 %v5650_v54 }
 0x969   : > { %6315 = vmatpush3.msra.mxu1 %v5650_v54 }
 0x96a   : > { %6316 = vmatprep.subr.mxu1 %v5649_v55 }
 0x96b   : > { %6317 = vmatpush3.msra.mxu1 %v5649_v55 }
 0x96c   : > { %6319 = vmatmul.mubr.msk.f32.vlgmr.msra.gmra.mxu1 %vm846_vm1, %v6712_v11  ;;  %6332 = vmatprep.subr.mxu1 %v5668_v8 }
 0x96d   : > { %6340 = vmatprep.mubr.msk.f32.mxu1 %vm846_vm1, %v6710_v10  ;;  %6333 = vmatpush3.msra.mxu1 %v5668_v8  ;;  %v3581_v8 = vld [vmem:[%s6677_s17 + $0x108] sm:$0xff] }
 0x96e   : > { %6334 = vmatprep.subr.mxu1 %v5667_v19 }
 0x96f   : > { %6335 = vmatpush3.msra.mxu1 %v5667_v19  ;;  %v3583_v19 = vld [vmem:[%s6677_s17 + $0x118] sm:$0xff] }
 0x970   : > { %6336 = vmatprep.subr.mxu1 %v5666_v20 }
 0x971   : > { %6337 = vmatpush3.msra.mxu1 %v5666_v20  ;;  %v3580_v20 = vld [vmem:[%s6677_s17 + $0x100] sm:$0xff] }
 0x972   : > { %6338 = vmatprep.subr.mxu1 %v5665_v21 }
 0x973   : > { %6339 = vmatpush3.msra.mxu1 %v5665_v21  ;;  %v3582_v21 = vld [vmem:[%s6677_s17 + $0x110] sm:$0xff] }
 0x974   : > { %6341 = vmatmul.mubr.msk.f32.vlgmr.msra.gmra.mxu1 %vm846_vm1, %v6712_v11  ;;  %6353 = vmatprep.subr.mxu1 %v6495_v12 }
 0x975   : > { %6355 = vmatprep.mubr.msk.f32.mxu1 %vm6496_vm2, %v6495_v12 }
 0xa20   : > { %v2683_v56 = vpop.f32.mrf.mxu0 }
 0xa21   : > { %6307 = vmatprep.mubr.msk.f32.mxu0 %vm1100_vm3, %v2683_v56 }
 0xa22   : > { %v6299_v57 = vpop.f32.mrf.mxu0 }
 0xa23   : > { %v5682_v57 = vld [vmem:[%s7501_s1] ss:$0 sm:$0xff] }
 0xa24   : > { %v2756_v58 = vpop.f32.mrf.mxu1 }
 0xa25   : > { %6308 = vmatmul.mubr.msk.f32.vlgmr.msra.gmra.mxu0 %vm1100_vm3, %v2756_v58 }
 0xa26   : > { %6322 = vmatpush3.msra.mxu0 %v5660_v51  ;;  %v6304_v60 = vpop.f32.mrf.mxu1  ;;  %6329 = vmatprep.mubr.msk.f32.mxu0 %vm846_vm1, %v6710_v10  ;;  %v5679_v51 = vld [vmem:[%s6655_s26 + $0x18] sm:$0xff] }
 0xa27   : > { %6323 = vmatprep.subr.mxu0 %v5659_v59 }
 0xa28   : > { %6324 = vmatpush3.msra.mxu0 %v5659_v59 }
 0xa29   : > { %6325 = vmatprep.subr.mxu0 %v5658_v61 }
 0xa2a   : > { %6326 = vmatpush3.msra.mxu0 %v5658_v61 }
 0xa2b   : > { %6327 = vmatprep.subr.mxu0 %v5657_v62 }
 0xa2c   : > { %6328 = vmatpush3.msra.mxu0 %v5657_v62  ;;  %v6320_v9 = vpop.f32.mrf.mxu1 }
 0xa2d   : > { %6330 = vmatmul.mubr.msk.f32.vlgmr.msra.gmra.mxu0 %vm846_vm1, %v6712_v11  ;;  %6343 = vmatprep.subr.mxu0 %v6495_v12  ;;  %v2930_v7 = vadd.f32 %v6320_v9, %v5654_v16 }
 0xa2e   : > { %6345 = vmatprep.mubr.msk.f32.mxu0 %vm6496_vm2, %v6495_v12  ;;  %v2924_v18 = vpop.f32.mrf.mxu1 }
 0xa2f   : > { %v2925_v0 = vadd.f32 %v5654_v16, %v2924_v18  ;;  %v3585_v18 = vld [vmem:[%s6677_s17 + $0x188] sm:$0xff] }
 0xa34   : > { %v6342_v40 = vpop.f32.mrf.mxu1 }
 0xa35   : > { %v3106_v42 = vadd.f32 %v6342_v40, %v5670_v41 }
 0xa36   : > { %v3100_v43 = vpop.f32.mrf.mxu1 }
 0xa37   : > { %v3101_v44 = vadd.f32 %v5670_v41, %v3100_v43  ;;  %v5683_v41 = vld [vmem:[%s7502_s30] ss:$0 sm:$0xff] }
 0xa39   : > { %6354 = vmatpush3.msra.mxu1 %v3101_v44  ;;  %v5684_v44 = vld [vmem:[%s7503_s3] ss:$0 sm:$0xff] }
 0xa3a   : > { %6363 = vmatprep.subr.mxu1 %v5679_v51 }
 0xae5   : > { %v6309_v2 = vpop.f32.mrf.mxu0 }
 0xae6   : > { %v6901_v4 = vadd.f32 %v6309_v2, %v2171_v63 }
 0xae7   : > { %v2834_v5 = vpop.f32.mrf.mxu0 }
 0xae8   : > { %v6903_v6 = vadd.f32 %v2834_v5, %v2166_v3 }
 0xaed   : > { %v6331_v13 = vpop.f32.mrf.mxu0 }
 0xaee   : > { %v3018_v1 = vadd.f32 %v6331_v13, %v5662_v14 }
 0xaef   : > { %v3012_v15 = vpop.f32.mrf.mxu0 }
 0xaf0   : > { %v3013_v17 = vadd.f32 %v5662_v14, %v3012_v15 }
 0xaf2   : > { %6344 = vmatpush3.xpose.msk.msra.mxu0 %vm1100_vm3, %v3013_v17 }
 0xaf3   : > { %6348 = vmatprep.subr.mxu0 %v6495_v12 }
 0xaf5   : > { %6346 = vmatmul.mubr.msk.f32.vlgmr.msra.gmra.mxu0 %vm1100_vm3, %v2925_v0  ;;  %v3587_v0 = vld [vmem:[%s6677_s17 + $0x198] sm:$0xff] }
 0xaf6   : > { %6349 = vmatpush3.xpose.msk.msra.mxu0 %vm1100_vm3, %v3018_v1  ;;  %6350 = vmatprep.mubr.msk.f32.mxu0 %vm6496_vm2, %v6495_v12  ;;  %v3584_v1 = vld [vmem:[%s6677_s17 + $0x180] sm:$0xff] }
 0xaf7   : > { %6358 = vmatprep.subr.mxu0 %v6495_v12 }
 0xaf9   : > { %6351 = vmatmul.mubr.msk.f32.vlgmr.msra.gmra.mxu0 %vm1100_vm3, %v2930_v7  ;;  %v3586_v7 = vld [vmem:[%s6677_s17 + $0x190] sm:$0xff] }
 0xafa   : > { %6360 = vmatprep.mubr.msk.f32.mxu0 %vm6496_vm2, %v6495_v12  ;;  %6359 = vmatpush3.msra.mxu0 %v3106_v42 }
 0xafb   : > { %3640 = vmatprep.subr.mxu0 %v3585_v18  ;;  %v4086_v18 = vld [vmem:[%s6689_s22 + $0x360] sm:$0xff] }
 0xbb5   : > { %v3181_v22 = vpop.f32.mrf.mxu0 }
 0xbb6   : > { %v3261_v23 = vmul.f32 0.35355338, %v3181_v22  ;;  %v3577_v22 = vld [vmem:[%s6677_s17 + $0x88] sm:$0xff] }
 0xbb7   : > { %v6347_v24 = vpop.f32.mrf.mxu0 }
 0xbb8   : > { %v3263_v25 = vsel %vm1100_vm3, %v3261_v23, -inf  ;;  %v3576_v24 = vld [vmem:[%s6677_s17 + $0x80] sm:$0xff] }
 0xbb9   : > { %3264 = vmax.xlane.f32.xlu0 %v3263_v25  ;;  %v3257_v26 = vpop.f32.mrf.mxu0  ;;  %v3578_v25 = vld [vmem:[%s6677_s17 + $0x90] sm:$0xff] }
 0xbba   : > { %v3262_v27 = vmul.f32 0.35355338, %v3257_v26  ;;  %v3573_v26 = vld [vmem:[%s6677_s17 + $0x8] sm:$0xff] }
 0xbbb   : > { %v6352_v28 = vpop.f32.mrf.mxu0 }
 0xbbc   : > { %v3266_v29 = vsel %vm1100_vm3, %v3262_v27, -inf  ;;  %v3572_v28 = vld [vmem:[%s6677_s17] sm:$0xff] }
 0xbbd   : > { %3267 = vmax.xlane.f32.xlu1 %v3266_v29  ;;  %v3574_v29 = vld [vmem:[%s6677_s17 + $0x10] sm:$0xff] }
 0xc42   : > { %v3265_v30 = vpop.xlane.xlu0 %3264 }
 0xc43   : > { %v3269_v31 = vsub.f32 %v3261_v23, %v3265_v30  ;;  %v3579_v23 = vld [vmem:[%s6677_s17 + $0x98] sm:$0xff]  ;;  %v3855_v30 = vld [vmem:[%s6677_s17 + $0x1a8] sm:$0xff] }
 0xc45   : > { %v3271_v32 = vmul.f32 1.442695, %v3269_v31  ;;  %v3857_v31 = vld [vmem:[%s6677_s17 + $0x1b8] sm:$0xff] }
 0xc46   : > { %v3268_v33 = vpop.xlane.xlu1 %3267 }
 0xc47   : > { %6427 = vpow2.f32 %v3271_v32  ;;  %v3270_v34 = vsub.f32 %v3262_v27, %v3268_v33  ;;  %v3575_v27 = vld [vmem:[%s6677_s17 + $0x18] sm:$0xff] }
 0xc49   : > { %v3273_v35 = vmul.f32 1.442695, %v3270_v34 }
 0xc4b   : > { %6429 = vpow2.f32 %v3273_v35 }
 0xc54   : > { %v6428_v36 = vpop.eup %6427 }
 0xc55   : > { %v3275_v37 = vsel %vm1100_vm3, %v6428_v36, 0.0 }
 0xc56   : > { %3276 = vadd.xlane.f32.xlu0 %v3275_v37 }
 0xc58   : > { %v6430_v38 = vpop.eup %6429 }
 0xc59   : > { %v3278_v39 = vsel %vm1100_vm3, %v6430_v38, 0.0 }
 0xc5a   : > { %3279 = vadd.xlane.f32.xlu1 %v3278_v39 }
 0xcdf   : > { %v3277_v45 = vpop.xlane.xlu0 %3276 }
 0xce0   : > { %6431 = vrcp.f32 %v3277_v45 }
 0xce3   : > { %v3280_v46 = vpop.xlane.xlu1 %3279 }
 0xce4   : > { %6433 = vrcp.f32 %v3280_v46  ;;  %v3854_v46 = vld [vmem:[%s6677_s17 + $0x1a0] sm:$0xff] }
 0xced   : > { %v6432_v47 = vpop.eup %6431 }
 0xcee   : > { %v3282_v48 = vmul.f32 %v6432_v47, %v6428_v36  ;;  %v3856_v47 = vld [vmem:[%s6677_s17 + $0x1b0] sm:$0xff] }
 0xcf0   : > { %6356 = vmatmul.mubr.msk.f32.vlgmr.msra.gmra.mxu1 %vm1100_vm3, %v3282_v48 }
 0xcf1   : > { %v6434_v49 = vpop.eup %6433  ;;  %6364 = vmatpush3.msra.mxu1 %v5679_v51  ;;  %v3850_v51 = vld [vmem:[%s6677_s17 + $0x120] sm:$0xff] }
 0xcf2   : > { %v3284_v50 = vmul.f32 %v6434_v49, %v6430_v38  ;;  %3717 = vmatprep.subr.mxu1 %v3587_v0  ;;  %v3851_v49 = vld [vmem:[%s6677_s17 + $0x128] sm:$0xff]  ;;  %v4069_v0 = vld [vmem:[%s6689_s22 + $0x2d8] sm:$0xff] }
 0xcf4   : > { %6361 = vmatmul.mubr.msk.f32.vlgmr.msra.gmra.mxu0 %vm1100_vm3, %v3284_v50  ;;  %v3853_v50 = vld [vmem:[%s6677_s17 + $0x138] sm:$0xff] }
 0xcf5   : > { %3680 = vmatprep.mubr.f32.mxu0 %v6495_v12  ;;  %3641 = vmatpush1.msra.mxu0 %v3584_v1  ;;  %v4101_v1 = vld [vmem:[%s6689_s22 + $0x3d8] sm:$0xff] }
 0xcf6   : > { %3642 = vmatprep.subr.mxu0 %v3581_v8  ;;  %v4085_v8 = vld [vmem:[%s6689_s22 + $0x358] sm:$0xff] }
 0xcf7   : > { %3643 = vmatpush1.msra.mxu0 %v3580_v20  ;;  %v4100_v20 = vld [vmem:[%s6689_s22 + $0x3d0] sm:$0xff] }
 0xcf8   : > { %3644 = vmatprep.subr.mxu0 %v3577_v22  ;;  %v4084_v22 = vld [vmem:[%s6689_s22 + $0x350] sm:$0xff] }
 0xcf9   : > { %3645 = vmatpush1.msra.mxu0 %v3576_v24  ;;  %v4099_v24 = vld [vmem:[%s6689_s22 + $0x3c8] sm:$0xff] }
 0xcfa   : > { %3646 = vmatprep.subr.mxu0 %v3573_v26  ;;  %v4083_v26 = vld [vmem:[%s6689_s22 + $0x348] sm:$0xff] }
 0xcfb   : > { %3647 = vmatpush1.msra.mxu0 %v3572_v28  ;;  %v4098_v28 = vld [vmem:[%s6689_s22 + $0x3c0] sm:$0xff] }
 0xcfc   : > { %3904 = vmatprep.subr.mxu0 %v3855_v30  ;;  %v4082_v30 = vld [vmem:[%s6689_s22 + $0x340] sm:$0xff] }
 0xdb0   : > { %v3354_v52 = vpop.f32.mrf.mxu1 }
 0xdb1   : > { %6365 = vmatprep.mubr.msk.f32.mxu1 %vm1100_vm3, %v3354_v52  ;;  %v3852_v52 = vld [vmem:[%s6677_s17 + $0x130] sm:$0xff] }
 0xdb2   : > { %v6357_v53 = vpop.f32.mrf.mxu1 }
 0xdb4   : > { %v3427_v54 = vpop.f32.mrf.mxu0 }
 0xdb5   : > { %6366 = vmatmul.mubr.msk.f32.vlgmr.msra.gmra.mxu1 %vm1100_vm3, %v3427_v54  ;;  %v3847_v54 = vld [vmem:[%s6677_s17 + $0xa8] sm:$0xff] }
 0xdb6   : > { %v6362_v55 = vpop.f32.mrf.mxu0  ;;  %3757 = vmatprep.mubr.f32.mxu1 %v6495_v12  ;;  %3718 = vmatpush1.msra.mxu1 %v3586_v7  ;;  %v4053_v7 = vld [vmem:[%s6689_s22 + $0x258] sm:$0xff] }
 0xdb7   : > { %3719 = vmatprep.subr.mxu1 %v3583_v19  ;;  %v3849_v55 = vld [vmem:[%s6677_s17 + $0xb8] sm:$0xff]  ;;  %v4068_v19 = vld [vmem:[%s6689_s22 + $0x2d0] sm:$0xff] }
 0xdb8   : > { %3720 = vmatpush1.msra.mxu1 %v3582_v21  ;;  %v4052_v21 = vld [vmem:[%s6689_s22 + $0x250] sm:$0xff] }
 0xdb9   : > { %3721 = vmatprep.subr.mxu1 %v3579_v23  ;;  %v4067_v23 = vld [vmem:[%s6689_s22 + $0x2c8] sm:$0xff] }
 0xdba   : > { %3722 = vmatpush1.msra.mxu1 %v3578_v25  ;;  %v4051_v25 = vld [vmem:[%s6689_s22 + $0x248] sm:$0xff] }
 0xdbb   : > { %3723 = vmatprep.subr.mxu1 %v3575_v27  ;;  %v4066_v27 = vld [vmem:[%s6689_s22 + $0x2c0] sm:$0xff] }
 0xdbc   : > { %3724 = vmatpush1.msra.mxu1 %v3574_v29  ;;  %v4050_v29 = vld [vmem:[%s6689_s22 + $0x240] sm:$0xff] }
 0xdbd   : > { %3981 = vmatprep.subr.mxu1 %v3857_v31  ;;  %v4065_v31 = vld [vmem:[%s6689_s22 + $0x2b8] sm:$0xff] }
 0xe75   : > { %v6367_v56 = vpop.f32.mrf.mxu1 }
 0xe76   : > { %v3515_v58 = vadd.f32 %v6367_v56, %v6901_v4  ;;  %v3846_v56 = vld [vmem:[%s6677_s17 + $0xa0] sm:$0xff] }
 0xe77   : > { %v3505_v59 = vpop.f32.mrf.mxu1 }
 0xe78   : > { %v3524_v60 = vadd.f32 %v5682_v57, %v3515_v58  ;;  %v3514_v61 = vadd.f32 %v3505_v59, %v6903_v6  ;;  %v3843_v58 = vld [vmem:[%s6677_s17 + $0x28] sm:$0xff]  ;;  %v3845_v59 = vld [vmem:[%s6677_s17 + $0x38] sm:$0xff] }
 0xe7a   : > { %v3523_v62 = vadd.f32 %v5682_v57, %v3514_v61  ;;  %v3526_v63 = vadd.f32 %v3524_v60, %v6712_v11  ;;  %v3848_v57 = vld [vmem:[%s6677_s17 + $0xb0] sm:$0xff]  ;;  %v3842_v60 = vld [vmem:[%s6677_s17 + $0x20] sm:$0xff] }
 0xe7b   : > { %v3844_v61 = vld [vmem:[%s6677_s17 + $0x30] sm:$0xff] }
 0xe7c   : > { %v3532_v2 = vsel %vm846_vm1, %v3526_v63, 0.0  ;;  %v3525_v3 = vadd.f32 %v3523_v62, %v6710_v10  ;;  %v4073_v62 = vld [vmem:[%s6689_s22 + $0x2f8] sm:$0xff] }
 0xe7d   : > { %3533 = vadd.xlane.f32.xlu1 %v3532_v2  ;;  %v4057_v2 = vld [vmem:[%s6689_s22 + $0x278] sm:$0xff] }
 0xe7e   : > { %v3529_v5 = vsel %vm846_vm1, %v3525_v3, 0.0 }
 0xe7f   : > { %3530 = vadd.xlane.f32.xlu0 %v3529_v5  ;;  %v4072_v5 = vld [vmem:[%s6689_s22 + $0x2f0] sm:$0xff] }
 0xf06   : > { %v3534_v9 = vpop.xlane.xlu1 %3533 }
 0xf07   : > { %v3537_v4 = vmul.f32 0.03125, %v3534_v9  ;;  %v4104_v9 = vld [vmem:[%s6689_s22 + $0x3f0] sm:$0xff] }
 0xf08   : > { %v3531_v13 = vpop.xlane.xlu0 %3530 }
 0xf09   : > { %v3539_v14 = vsub.f32 %v3526_v63, %v3537_v4  ;;  %v3536_v6 = vmul.f32 0.03125, %v3531_v13  ;;  %v4105_v63 = vld [vmem:[%s6689_s22 + $0x3f8] sm:$0xff]  ;;  %v4056_v4 = vld [vmem:[%s6689_s22 + $0x270] sm:$0xff] }
 0xf0a   : > { %v4088_v13 = vld [vmem:[%s6689_s22 + $0x370] sm:$0xff] }
 0xf0b   : > { %v3538_v15 = vsub.f32 %v3525_v3, %v3536_v6  ;;  %v3541_v11 = vmul.f32 %v3539_v14, %v3539_v14  ;;  %v4089_v3 = vld [vmem:[%s6689_s22 + $0x378] sm:$0xff]  ;;  %v4103_v6 = vld [vmem:[%s6689_s22 + $0x3e8] sm:$0xff] }
 0xf0d   : > { %v3545_v16 = vsel %vm846_vm1, %v3541_v11, 0.0  ;;  %v3540_v10 = vmul.f32 %v3538_v15, %v3538_v15  ;;  %v4087_v11 = vld [vmem:[%s6689_s22 + $0x368] sm:$0xff] }
 0xf0e   : > { %3546 = vadd.xlane.f32.xlu1 %v3545_v16  ;;  %v4070_v16 = vld [vmem:[%s6689_s22 + $0x2e0] sm:$0xff] }
 0xf0f   : > { %v3542_v17 = vsel %vm846_vm1, %v3540_v10, 0.0  ;;  %v4102_v10 = vld [vmem:[%s6689_s22 + $0x3e0] sm:$0xff] }
 0xf10   : > { %3543 = vadd.xlane.f32.xlu0 %v3542_v17  ;;  %v4054_v17 = vld [vmem:[%s6689_s22 + $0x260] sm:$0xff] }
 0xf97   : > { %v3547_v32 = vpop.xlane.xlu1 %3546 }
 0xf98   : > { %v3549_v33 = vmul.f32 0.03125, %v3547_v32  ;;  %v4097_v32 = vld [vmem:[%s6689_s22 + $0x3b8] sm:$0xff] }
 0xf99   : > { %v3544_v34 = vpop.xlane.xlu0 %3543 }
 0xf9a   : > { %v3551_v35 = vadd.f32 1e-05, %v3549_v33  ;;  %v3548_v36 = vmul.f32 0.03125, %v3544_v34  ;;  %v4049_v33 = vld [vmem:[%s6689_s22 + $0x238] sm:$0xff] }
 0xf9b   : > { %v4081_v34 = vld [vmem:[%s6689_s22 + $0x338] sm:$0xff] }
 0xf9c   : > { %v3550_v37 = vadd.f32 1e-05, %v3548_v36  ;;  %6435 = vrsqrt.f32 %v3551_v35  ;;  %v4064_v35 = vld [vmem:[%s6689_s22 + $0x2b0] sm:$0xff] }
 0xf9d   : > { %v4096_v36 = vld [vmem:[%s6689_s22 + $0x3b0] sm:$0xff] }
 0xf9e   : > { %6437 = vrsqrt.f32 %v3550_v37  ;;  %v4048_v37 = vld [vmem:[%s6689_s22 + $0x230] sm:$0xff] }
 0xfa9   : > { %v6436_v38 = vpop.eup %6435 }
 0xfaa   : > { %v3555_v42 = vmul.f32 %v6436_v38, %v3539_v14  ;;  %v4071_v14 = vld [vmem:[%s6689_s22 + $0x2e8] sm:$0xff]  ;;  %v4080_v38 = vld [vmem:[%s6689_s22 + $0x330] sm:$0xff] }
 0xfab   : > { %v6438_v39 = vpop.eup %6437 }
 0xfac   : > { %v3554_v40 = vmul.f32 %v6438_v39, %v3538_v15  ;;  %v3563_v48 = vmul.f32 %v5683_v41, %v3555_v42  ;;  %v4055_v15 = vld [vmem:[%s6689_s22 + $0x268] sm:$0xff] }
 0xfad   : > { %v4063_v39 = vld [vmem:[%s6689_s22 + $0x2a8] sm:$0xff] }
 0xfae   : > { %v3562_v43 = vmul.f32 %v5683_v41, %v3554_v40  ;;  %v6991_v53 = vadd.f32 %v5684_v44, %v3563_v48  ;;  %v4095_v40 = vld [vmem:[%s6689_s22 + $0x3a8] sm:$0xff]  ;;  %v4061_v48 = vld [vmem:[%s6689_s22 + $0x298] sm:$0xff] }
 0xfaf   : > { %v4047_v41 = vld [vmem:[%s6689_s22 + $0x228] sm:$0xff] }
 0xfb0   : > { %v6979_v45 = vadd.f32 %v5684_v44, %v3562_v43  ;;  %v4079_v42 = vld [vmem:[%s6689_s22 + $0x328] sm:$0xff]  ;;  %v4062_v43 = vld [vmem:[%s6689_s22 + $0x2a0] sm:$0xff] }
 0xfb1   : > { %v4094_v44 = vld [vmem:[%s6689_s22 + $0x3a0] sm:$0xff] }
 0xfb2   : > { %5685 = vmatmul.mubr.msk.f32.vlgmr.msra.gmra.mxu0 %vm846_vm1, %v6979_v45  ;;  %5687 = vmatmul.mubr.msk.f32.vlgmr.msra.gmra.mxu1 %vm846_vm1, %v6979_v45 }
 0xfb3   : > { %3905 = vmatpush1.msra.mxu0 %v3854_v46  ;;  %3982 = vmatpush1.msra.mxu1 %v3856_v47  ;;  %v4046_v46 = vld [vmem:[%s6689_s22 + $0x220] sm:$0xff] }
 0xfb4   : > { %3906 = vmatprep.subr.mxu0 %v3851_v49  ;;  %3983 = vmatprep.subr.mxu1 %v3853_v50  ;;  %v4078_v47 = vld [vmem:[%s6689_s22 + $0x320] sm:$0xff]  ;;  %v4093_v49 = vld [vmem:[%s6689_s22 + $0x398] sm:$0xff] }
 0xfb5   : > { %3686 = vmatprep.mubr.f32.mxu0 %v6495_v12  ;;  %3763 = vmatprep.mubr.f32.mxu1 %v6495_v12  ;;  %v4045_v50 = vld [vmem:[%s6689_s22 + $0x218] sm:$0xff] }
 0xfb6   : > { %3907 = vmatpush1.msra.mxu0 %v3850_v51  ;;  %3984 = vmatpush1.msra.mxu1 %v3852_v52  ;;  %v4077_v51 = vld [vmem:[%s6689_s22 + $0x318] sm:$0xff]  ;;  %v4060_v52 = vld [vmem:[%s6689_s22 + $0x290] sm:$0xff] }
 0xfb7   : > { %5686 = vmatmul.mubr.msk.f32.gmra.mxu0 %vm846_vm1, %v6991_v53  ;;  %5688 = vmatmul.mubr.msk.f32.gmra.mxu1 %vm846_vm1, %v6991_v53 }
 0xfb8   : > { %3908 = vmatprep.subr.mxu0 %v3847_v54  ;;  %3985 = vmatprep.subr.mxu1 %v3849_v55  ;;  %v4092_v54 = vld [vmem:[%s6689_s22 + $0x390] sm:$0xff] }
 0xfb9   : > { %3909 = vmatpush1.msra.mxu0 %v3846_v56  ;;  %3986 = vmatpush1.msra.mxu1 %v3848_v57  ;;  %v4044_v55 = vld [vmem:[%s6689_s22 + $0x210] sm:$0xff]  ;;  %v4059_v57 = vld [vmem:[%s6689_s22 + $0x288] sm:$0xff] }
 0xfba   : > { %3910 = vmatprep.subr.mxu0 %v3843_v58  ;;  %3987 = vmatprep.subr.mxu1 %v3845_v59  ;;  %v4076_v56 = vld [vmem:[%s6689_s22 + $0x310] sm:$0xff]  ;;  %v4091_v58 = vld [vmem:[%s6689_s22 + $0x388] sm:$0xff] }
 0xfbb   : > { %3911 = vmatpush1.msra.mxu0 %v3842_v60  ;;  %3944 = vmatprep.mubr.f32.mxu0 %v6495_v12  ;;  %v4043_v59 = vld [vmem:[%s6689_s22 + $0x208] sm:$0xff] }
 0xfbc   : > { %3988 = vmatpush1.msra.mxu1 %v3844_v61  ;;  %4021 = vmatprep.mubr.f32.mxu1 %v6495_v12  ;;  %v4075_v60 = vld [vmem:[%s6689_s22 + $0x308] sm:$0xff]  ;;  %v4058_v61 = vld [vmem:[%s6689_s22 + $0x280] sm:$0xff] }
 0xfbd   : > { %5689 = vmatmul.mubr.msk.f32.vlgmr.msra.gmra.mxu0 %vm846_vm1, %v6979_v45  ;;  %5691 = vmatmul.mubr.msk.f32.vlgmr.msra.gmra.mxu1 %vm846_vm1, %v6979_v45 }
 0xfbe   : > { %3950 = vmatprep.mubr.f32.mxu0 %v6495_v12  ;;  %4027 = vmatprep.mubr.f32.mxu1 %v6495_v12 }
 0xfbf   : > { %5832 = vmatprep.subr.mxu0 %v4073_v62  ;;  %5870 = vmatprep.subr.mxu1 %v4105_v63  ;;  %v4090_v62 = vld [vmem:[%s6689_s22 + $0x380] sm:$0xff] }
 0xfc0   : > { %5833 = vmatpush3.msra.mxu0 %v4057_v2  ;;  %5871 = vmatpush3.msra.mxu1 %v4089_v3  ;;  %v4042_v63 = vld [vmem:[%s6689_s22 + $0x200] sm:$0xff]  ;;  %v3809_v3 = vld [vmem:[%s6689_s22 + $0xf8] sm:$0xff] }
 0xfc1   : > { %5690 = vmatmul.mubr.msk.f32.gmra.mxu0 %vm846_vm1, %v6991_v53  ;;  %5692 = vmatmul.mubr.msk.f32.gmra.mxu1 %vm846_vm1, %v6991_v53  ;;  %v4074_v2 = vld [vmem:[%s6689_s22 + $0x300] sm:$0xff] }
 0xfc2   : > { %5834 = vmatprep.subr.mxu0 %v4072_v5  ;;  %5872 = vmatprep.subr.mxu1 %v4104_v9  ;;  %v3841_v5 = vld [vmem:[%s6689_s22 + $0x1f8] sm:$0xff]  ;;  %v3590_v9 = vlaneseq }
 0xfc3   : > { %5835 = vmatpush3.msra.mxu0 %v4056_v4  ;;  %5873 = vmatpush3.msra.mxu1 %v4088_v13 }
 0xfc4   : > { %5836 = vmatprep.subr.mxu0 %v4071_v14  ;;  %5874 = vmatprep.subr.mxu1 %v4103_v6 }
 0xfc5   : > { %5837 = vmatpush3.msra.mxu0 %v4055_v15  ;;  %5875 = vmatpush3.msra.mxu1 %v4087_v11  ;;  %v3591_v15 = vshrl.u32 %v3590_v9, 7 }
 0xfc6   : > { %5838 = vmatprep.subr.mxu0 %v4070_v16  ;;  %5876 = vmatprep.subr.mxu1 %v4102_v10  ;;  %v3858_v10 = vld [vmem:[%s6683_s5 + $0x4] sm:$0xf] }
 0xfc7   : > { %5839 = vmatpush3.msra.mxu0 %v4054_v17  ;;  %5877 = vmatpush3.msra.mxu1 %v4086_v18  ;;  %v7094_v17 = vsub.s32 0, %v3591_v15  ;;  %v7096_v18 = vsub.s32 2, %v3591_v15 }
 0xfc8   : > { %5840 = vmatprep.subr.mxu0 %v4069_v0  ;;  %5878 = vmatprep.subr.mxu1 %v4101_v1 }
 0xfc9   : > { %5841 = vmatpush3.msra.mxu0 %v4053_v7  ;;  %5879 = vmatpush3.msra.mxu1 %v4085_v8  ;;  %v7102_v7 = vsub.s32 1, %v3591_v15  ;;  %v7104_v8 = vsub.s32 3, %v3591_v15  ;;  %v3805_v15 = vld [vmem:[%s6689_s22 + $0xd8] sm:$0xff] }
 0xfca   : > { %5842 = vmatprep.subr.mxu0 %v4068_v19  ;;  %5880 = vmatprep.subr.mxu1 %v4100_v20  ;;  %v3863_v19 = vrot.slane %v3858_v10, %v7094_v17  ;;  %v3871_v20 = vrot.slane %v3858_v10, %v7096_v18 }
 0xfcb   : > { %5843 = vmatpush3.msra.mxu0 %v4052_v21  ;;  %5881 = vmatpush3.msra.mxu1 %v4084_v22  ;;  %v3867_v21 = vrot.slane %v3858_v10, %v7102_v7  ;;  %v3875_v22 = vrot.slane %v3858_v10, %v7104_v8  ;;  %v3837_v10 = vld [vmem:[%s6689_s22 + $0x1d8] sm:$0xff] }
 0xfcc   : > { %5844 = vmatprep.subr.mxu0 %v4067_v23  ;;  %5882 = vmatprep.subr.mxu1 %v4099_v24 }
 0xfcd   : > { %5845 = vmatpush3.msra.mxu0 %v4051_v25  ;;  %5883 = vmatpush3.msra.mxu1 %v4083_v26 }
 0xfce   : > { %5846 = vmatprep.subr.mxu0 %v4066_v27  ;;  %5884 = vmatprep.subr.mxu1 %v4098_v28 }
 0xfcf   : > { %5847 = vmatpush3.msra.mxu0 %v4050_v29  ;;  %5885 = vmatpush3.msra.mxu1 %v4082_v30 }
 0xfd0   : > { %5848 = vmatprep.subr.mxu0 %v4065_v31  ;;  %5886 = vmatprep.subr.mxu1 %v4097_v32 }
 0xfd1   : > { %5849 = vmatpush3.msra.mxu0 %v4049_v33  ;;  %5887 = vmatpush3.msra.mxu1 %v4081_v34  ;;  %v7111_v33 = vld [vmem:[%s6683_s5] sm:$0xf] }
 0xfd2   : > { %5850 = vmatprep.subr.mxu0 %v4064_v35  ;;  %5888 = vmatprep.subr.mxu1 %v4096_v36  ;;  %v7115_v36 = vrot.slane %v7111_v33, %v7102_v7 }
 0xfd3   : > { %5851 = vmatpush3.msra.mxu0 %v4048_v37  ;;  %5889 = vmatpush3.msra.mxu1 %v4080_v38 }
 0xfd4   : > { %5852 = vmatprep.subr.mxu0 %v4063_v39  ;;  %5890 = vmatprep.subr.mxu1 %v4095_v40 }
 0xfd5   : > { %5853 = vmatpush3.msra.mxu0 %v4047_v41  ;;  %5891 = vmatpush3.msra.mxu1 %v4079_v42  ;;  %v3793_v41 = vld [vmem:[%s6689_s22 + $0x78] sm:$0xff] }
 0xfd6   : > { %5854 = vmatprep.subr.mxu0 %v4062_v43  ;;  %5892 = vmatprep.subr.mxu1 %v4094_v44  ;;  %v3825_v42 = vld [vmem:[%s6689_s22 + $0x178] sm:$0xff]  ;;  %v7121_v43 = vrot.slane %v7111_v33, %v7104_v8 }
 0xfd7   : > { %5855 = vmatpush3.msra.mxu0 %v4046_v46  ;;  %5893 = vmatpush3.msra.mxu1 %v4078_v47  ;;  %v3808_v47 = vld [vmem:[%s6689_s22 + $0xf0] sm:$0xff] }
 0xfd8   : > { %5856 = vmatprep.subr.mxu0 %v4061_v48  ;;  %5894 = vmatprep.subr.mxu1 %v4093_v49  ;;  %v3840_v48 = vld [vmem:[%s6689_s22 + $0x1f0] sm:$0xff] }
 0xfd9   : > { %5857 = vmatpush3.msra.mxu0 %v4045_v50  ;;  %5895 = vmatpush3.msra.mxu1 %v4077_v51  ;;  %v3792_v51 = vld [vmem:[%s6689_s22 + $0x70] sm:$0xff] }
 0xfda   : > { %5858 = vmatprep.subr.mxu0 %v4060_v52  ;;  %5896 = vmatprep.subr.mxu1 %v4092_v54  ;;  %v3824_v52 = vld [vmem:[%s6689_s22 + $0x170] sm:$0xff] }
 0xfdb   : > { %5859 = vmatpush3.msra.mxu0 %v4044_v55  ;;  %5897 = vmatpush3.msra.mxu1 %v4076_v56 }
 0xfdc   : > { %5860 = vmatprep.subr.mxu0 %v4059_v57  ;;  %5898 = vmatprep.subr.mxu1 %v4091_v58  ;;  %v3807_v57 = vld [vmem:[%s6689_s22 + $0xe8] sm:$0xff] }
 0xfdd   : > { %5861 = vmatpush3.msra.mxu0 %v4043_v59  ;;  %5899 = vmatpush3.msra.mxu1 %v4075_v60  ;;  %v3839_v58 = vld [vmem:[%s6689_s22 + $0x1e8] sm:$0xff] }
 0xfde   : > { %5862 = vmatprep.subr.mxu0 %v4058_v61  ;;  %5900 = vmatprep.subr.mxu1 %v4090_v62  ;;  %v3791_v62 = vld [vmem:[%s6689_s22 + $0x68] sm:$0xff] }
 0xfdf   : > { %5863 = vmatpush3.msra.mxu0 %v4042_v63  ;;  %5901 = vmatpush3.msra.mxu1 %v4074_v2  ;;  %v3823_v63 = vld [vmem:[%s6689_s22 + $0x168] sm:$0xff]  ;;  %v3806_v2 = vld [vmem:[%s6689_s22 + $0xe0] sm:$0xff] }
 0xfe0   : > { %5908 = vmatprep.subr.mxu0 %v3809_v3  ;;  %5946 = vmatprep.subr.mxu1 %v3841_v5  ;;  %v3838_v5 = vld [vmem:[%s6689_s22 + $0x1e0] sm:$0xff] }
0x1072   : > { %v7085_v4 = vpop.f32.mrf.mxu0  ;;  %v7087_v13 = vpop.f32.mrf.mxu1 }
0x1074   : > { %v3684_v14 = vpop.f32.mrf.mxu0  ;;  %v3761_v6 = vpop.f32.mrf.mxu1 }
0x1075   : > { %v3685_v56 = vadd.f32 %v3684_v14, %v7115_v36  ;;  %v3762_v59 = vadd.f32 %v3761_v6, %v7121_v43  ;;  %v3790_v14 = vld [vmem:[%s6689_s22 + $0x60] sm:$0xff] }
0x1076   : > { %v3822_v6 = vld [vmem:[%s6689_s22 + $0x160] sm:$0xff] }
0x1077   : > { %v7089_v11 = vpop.f32.mrf.mxu0  ;;  %v7091_v16 = vpop.f32.mrf.mxu1  ;;  %v3771_v3 = vmax.f32 %v3685_v56, 0.0  ;;  %v3773_v9 = vmax.f32 %v3762_v59, 0.0  ;;  %v3593_v56 = vrot.slane %v7111_v33, %v7094_v17  ;;  %v3813_v59 = vld [vmem:[%s6689_s22 + $0x118] sm:$0xff] }
0x1079   : > { %v7098_v0 = vpop.f32.mrf.mxu0  ;;  %v7100_v1 = vpop.f32.mrf.mxu1 }
0x107d   : > { %v3946_v23 = vpop.f32.mrf.mxu0  ;;  %v4023_v24 = vpop.f32.mrf.mxu1 }
0x107e   : > { %v3947_v25 = vadd.f32 %v3946_v23, %v3863_v19  ;;  %v4024_v26 = vadd.f32 %v4023_v24, %v3871_v20  ;;  %v3788_v23 = vld [vmem:[%s6689_s22 + $0x50] sm:$0xff] }
0x107f   : > { %v3948_v27 = vpop.f32.mrf.mxu0  ;;  %v4025_v28 = vpop.f32.mrf.mxu1  ;;  %v3820_v24 = vld [vmem:[%s6689_s22 + $0x150] sm:$0xff] }
0x1080   : > { %v3949_v29 = vadd.f32 %v3948_v27, %v3867_v21  ;;  %v4026_v30 = vadd.f32 %v4025_v28, %v3875_v22  ;;  %v4034_v37 = vmax.f32 %v3947_v25, 0.0  ;;  %v4036_v38 = vmax.f32 %v4024_v26, 0.0  ;;  %v3803_v25 = vld [vmem:[%s6689_s22 + $0xc8] sm:$0xff] }
0x1081   : > { %v3952_v31 = vpop.f32.mrf.mxu0  ;;  %v4029_v32 = vpop.f32.mrf.mxu1  ;;  %v3835_v26 = vld [vmem:[%s6689_s22 + $0x1c8] sm:$0xff] }
0x1082   : > { %v4035_v34 = vmax.f32 %v3949_v29, 0.0  ;;  %v4037_v35 = vmax.f32 %v4026_v30, 0.0  ;;  %v3953_v49 = vadd.f32 %v3952_v31, %v3863_v19  ;;  %v4030_v50 = vadd.f32 %v4029_v32, %v3871_v20  ;;  %v3789_v19 = vld [vmem:[%s6689_s22 + $0x58] sm:$0xff]  ;;  %v3787_v27 = vld [vmem:[%s6689_s22 + $0x48] sm:$0xff]  ;;  %v3802_v29 = vld [vmem:[%s6689_s22 + $0xc0] sm:$0xff] }
0x1083   : > { %v3954_v39 = vpop.f32.mrf.mxu0  ;;  %v4031_v40 = vpop.f32.mrf.mxu1  ;;  %v3821_v20 = vld [vmem:[%s6689_s22 + $0x158] sm:$0xff]  ;;  %v3819_v28 = vld [vmem:[%s6689_s22 + $0x148] sm:$0xff]  ;;  %v3834_v30 = vld [vmem:[%s6689_s22 + $0x1c0] sm:$0xff] }
0x1084   : > { %v3955_v44 = vadd.f32 %v3954_v39, %v3867_v21  ;;  %v4032_v46 = vadd.f32 %v4031_v40, %v3875_v22  ;;  %4170 = vmatprep.mubr.f32.mxu0 %v4035_v34  ;;  %4245 = vmatprep.mubr.f32.mxu1 %v4037_v35  ;;  %v4038_v60 = vmax.f32 %v3953_v49, 0.0  ;;  %v4040_v61 = vmax.f32 %v4030_v50, 0.0  ;;  %v3804_v21 = vld [vmem:[%s6689_s22 + $0xd0] sm:$0xff]  ;;  %v3786_v31 = vld [vmem:[%s6689_s22 + $0x40] sm:$0xff]  ;;  %v3801_v34 = vld [vmem:[%s6689_s22 + $0xb8] sm:$0xff] }
0x1085   : > { %4171 = vmatmul.mubr.f32.vlgmr.msra.gmra.mxu0 %v4034_v37  ;;  %4246 = vmatmul.mubr.f32.vlgmr.msra.gmra.mxu1 %v4036_v38  ;;  %v3836_v22 = vld [vmem:[%s6689_s22 + $0x1d0] sm:$0xff]  ;;  %v3818_v32 = vld [vmem:[%s6689_s22 + $0x140] sm:$0xff]  ;;  %v3833_v35 = vld [vmem:[%s6689_s22 + $0x1b8] sm:$0xff] }
0x1086   : > { %v4039_v54 = vmax.f32 %v3955_v44, 0.0  ;;  %v4041_v55 = vmax.f32 %v4032_v46, 0.0  ;;  %5909 = vmatpush3.msra.mxu0 %v3793_v41  ;;  %5947 = vmatpush3.msra.mxu1 %v3825_v42  ;;  %v3785_v37 = vld [vmem:[%s6689_s22 + $0x38] sm:$0xff]  ;;  %v3800_v39 = vld [vmem:[%s6689_s22 + $0xb0] sm:$0xff]  ;;  %v3799_v44 = vld [vmem:[%s6689_s22 + $0xa8] sm:$0xff] }
0x1087   : > { %5910 = vmatprep.subr.mxu0 %v3808_v47  ;;  %5948 = vmatprep.subr.mxu1 %v3840_v48  ;;  %v3817_v38 = vld [vmem:[%s6689_s22 + $0x138] sm:$0xff]  ;;  %v3832_v40 = vld [vmem:[%s6689_s22 + $0x1b0] sm:$0xff]  ;;  %v3831_v46 = vld [vmem:[%s6689_s22 + $0x1a8] sm:$0xff] }
0x1088   : > { %5911 = vmatpush3.msra.mxu0 %v3792_v51  ;;  %5949 = vmatpush3.msra.mxu1 %v3824_v52  ;;  %v3784_v41 = vld [vmem:[%s6689_s22 + $0x30] sm:$0xff]  ;;  %v3783_v47 = vld [vmem:[%s6689_s22 + $0x28] sm:$0xff]  ;;  %v3798_v49 = vld [vmem:[%s6689_s22 + $0xa0] sm:$0xff] }
0x1089   : > { %4175 = vmatprep.mubr.f32.mxu0 %v4039_v54  ;;  %4250 = vmatprep.mubr.f32.mxu1 %v4041_v55  ;;  %v3816_v42 = vld [vmem:[%s6689_s22 + $0x130] sm:$0xff]  ;;  %v3815_v48 = vld [vmem:[%s6689_s22 + $0x128] sm:$0xff]  ;;  %v3830_v50 = vld [vmem:[%s6689_s22 + $0x1a0] sm:$0xff] }
0x108a   : > { %5912 = vmatprep.subr.mxu0 %v3807_v57  ;;  %5950 = vmatprep.subr.mxu1 %v3839_v58  ;;  %v3782_v51 = vld [vmem:[%s6689_s22 + $0x20] sm:$0xff]  ;;  %v3797_v54 = vld [vmem:[%s6689_s22 + $0x98] sm:$0xff]  ;;  %v3601_v57 = vrot.slane %v7111_v33, %v7096_v18  ;;  %v3795_v33 = vld [vmem:[%s6689_s22 + $0x88] sm:$0xff] }
0x108b   : > { %4176 = vmatmul.mubr.f32.gmra.mxu0 %v4038_v60  ;;  %4251 = vmatmul.mubr.f32.gmra.mxu1 %v4040_v61  ;;  %v3814_v52 = vld [vmem:[%s6689_s22 + $0x120] sm:$0xff]  ;;  %v3829_v55 = vld [vmem:[%s6689_s22 + $0x198] sm:$0xff]  ;;  %v3796_v60 = vld [vmem:[%s6689_s22 + $0x90] sm:$0xff] }
0x108c   : > { %5913 = vmatpush3.msra.mxu0 %v3791_v62  ;;  %5951 = vmatpush3.msra.mxu1 %v3823_v63  ;;  %v3781_v58 = vld [vmem:[%s6689_s22 + $0x18] sm:$0xff]  ;;  %v3828_v61 = vld [vmem:[%s6689_s22 + $0x190] sm:$0xff] }
0x108d   : > { %5914 = vmatprep.subr.mxu0 %v3806_v2  ;;  %4320 = vmatprep.mubr.f32.mxu0 %v3771_v3  ;;  %v3780_v62 = vld [vmem:[%s6689_s22 + $0x10] sm:$0xff]  ;;  %v3827_v2 = vld [vmem:[%s6689_s22 + $0x188] sm:$0xff]  ;;  %v3683_v3 = vadd.f32 %v7085_v4, %v3593_v56  ;;  %v3778_v4 = vld [vmem:[%s6689_s22] sm:$0xff] }
0x108e   : > { %5952 = vmatprep.subr.mxu1 %v3838_v5  ;;  %4395 = vmatprep.mubr.f32.mxu1 %v3773_v9  ;;  %v3812_v63 = vld [vmem:[%s6689_s22 + $0x110] sm:$0xff]  ;;  %v3760_v5 = vadd.f32 %v7087_v13, %v3601_v57  ;;  %v3779_v9 = vld [vmem:[%s6689_s22 + $0x8] sm:$0xff]  ;;  %v3810_v13 = vld [vmem:[%s6689_s22 + $0x100] sm:$0xff] }
0x108f   : > { %5915 = vmatpush3.msra.mxu0 %v3790_v14  ;;  %5953 = vmatpush3.msra.mxu1 %v3822_v6  ;;  %v3811_v14 = vld [vmem:[%s6689_s22 + $0x108] sm:$0xff]  ;;  %v3794_v6 = vld [vmem:[%s6689_s22 + $0x80] sm:$0xff] }
0x1090   : > { %5916 = vmatprep.subr.mxu0 %v3805_v15  ;;  %5954 = vmatprep.subr.mxu1 %v3837_v10  ;;  %v3826_v15 = vld [vmem:[%s6689_s22 + $0x180] sm:$0xff]  ;;  %v3691_v10 = vadd.f32 %v7098_v0, %v7115_v36  ;;  %v3689_v0 = vadd.f32 %v7089_v11, %v3593_v56  ;;  %v4416_v11 = vld [vmem:[%s6677_s17 + $0x150] sm:$0xff] }
0x1091   : > { %5917 = vmatpush3.msra.mxu0 %v3789_v19  ;;  %5955 = vmatpush3.msra.mxu1 %v3821_v20  ;;  %v3768_v19 = vadd.f32 %v7100_v1, %v7121_v43  ;;  %v3770_v20 = vmax.f32 %v3683_v3, 0.0  ;;  %v3766_v1 = vadd.f32 %v7091_v16, %v3601_v57  ;;  %v4666_v56 = vld [vmem:[%s6689_s22 + $0x5e0] sm:$0xff]  ;;  %v4648_v3 = vld [vmem:[%s6689_s22 + $0x550] sm:$0xff] }
0x1092   : > { %5918 = vmatprep.subr.mxu0 %v3804_v21  ;;  %5956 = vmatprep.subr.mxu1 %v3836_v22  ;;  %v3772_v21 = vmax.f32 %v3760_v5, 0.0  ;;  %v4419_v22 = vld [vmem:[%s6677_s17 + $0x1c8] sm:$0xff]  ;;  %v3775_v36 = vmax.f32 %v3691_v10, 0.0  ;;  %v3774_v16 = vmax.f32 %v3689_v0, 0.0  ;;  %v4618_v57 = vld [vmem:[%s6689_s22 + $0x460] sm:$0xff]  ;;  %v4660_v0 = vld [vmem:[%s6689_s22 + $0x5b0] sm:$0xff] }
0x1093   : > { %5919 = vmatpush3.msra.mxu0 %v3788_v23  ;;  %5957 = vmatpush3.msra.mxu1 %v3820_v24  ;;  %v4421_v23 = vld [vmem:[%s6677_s17 + $0x1d8] sm:$0xff]  ;;  %v3777_v43 = vmax.f32 %v3768_v19, 0.0  ;;  %v4418_v24 = vld [vmem:[%s6677_s17 + $0x1c0] sm:$0xff]  ;;  %v4631_v5 = vld [vmem:[%s6689_s22 + $0x4c8] sm:$0xff] }
0x1094   : > { %5920 = vmatprep.subr.mxu0 %v3803_v25  ;;  %5958 = vmatprep.subr.mxu1 %v3835_v26  ;;  %v4420_v25 = vld [vmem:[%s6677_s17 + $0x1d0] sm:$0xff]  ;;  %v4415_v26 = vld [vmem:[%s6677_s17 + $0x148] sm:$0xff]  ;;  %v4662_v10 = vld [vmem:[%s6689_s22 + $0x5c0] sm:$0xff] }
0x1095   : > { %5921 = vmatpush3.msra.mxu0 %v3787_v27  ;;  %5959 = vmatpush3.msra.mxu1 %v3819_v28  ;;  %v4417_v27 = vld [vmem:[%s6677_s17 + $0x158] sm:$0xff]  ;;  %v4414_v28 = vld [vmem:[%s6677_s17 + $0x140] sm:$0xff] }
0x1096   : > { %5922 = vmatprep.subr.mxu0 %v3802_v29  ;;  %5960 = vmatprep.subr.mxu1 %v3834_v30  ;;  %v3776_v29 = vmax.f32 %v3766_v1, 0.0  ;;  %v4411_v30 = vld [vmem:[%s6677_s17 + $0xc8] sm:$0xff]  ;;  %v4614_v19 = vld [vmem:[%s6689_s22 + $0x440] sm:$0xff]  ;;  %v4612_v1 = vld [vmem:[%s6689_s22 + $0x430] sm:$0xff] }
0x1097   : > { %5923 = vmatpush3.msra.mxu0 %v3786_v31  ;;  %5961 = vmatpush3.msra.mxu1 %v3818_v32  ;;  %v4413_v31 = vld [vmem:[%s6677_s17 + $0xd8] sm:$0xff]  ;;  %v4410_v32 = vld [vmem:[%s6677_s17 + $0xc0] sm:$0xff] }
0x1098   : > { %5924 = vmatprep.subr.mxu0 %v3801_v34  ;;  %5962 = vmatprep.subr.mxu1 %v3833_v35  ;;  %v4412_v34 = vld [vmem:[%s6677_s17 + $0xd0] sm:$0xff]  ;;  %v4407_v35 = vld [vmem:[%s6677_s17 + $0x48] sm:$0xff] }
0x1099   : > { %5925 = vmatpush3.msra.mxu0 %v3785_v37  ;;  %5963 = vmatpush3.msra.mxu1 %v3817_v38  ;;  %v4409_v37 = vld [vmem:[%s6677_s17 + $0x58] sm:$0xff]  ;;  %v4406_v38 = vld [vmem:[%s6677_s17 + $0x40] sm:$0xff] }
0x109a   : > { %5926 = vmatprep.subr.mxu0 %v3800_v39  ;;  %5964 = vmatprep.subr.mxu1 %v3832_v40  ;;  %v4408_v39 = vld [vmem:[%s6677_s17 + $0x50] sm:$0xff]  ;;  %v4637_v40 = vld [vmem:[%s6689_s22 + $0x4f8] sm:$0xff] }
0x109b   : > { %5927 = vmatpush3.msra.mxu0 %v3784_v41  ;;  %5965 = vmatpush3.msra.mxu1 %v3816_v42  ;;  %v4669_v41 = vld [vmem:[%s6689_s22 + $0x5f8] sm:$0xff] }
0x109c   : > { %5928 = vmatprep.subr.mxu0 %v3799_v44  ;;  %5966 = vmatprep.subr.mxu1 %v3831_v46  ;;  %v4621_v42 = vld [vmem:[%s6689_s22 + $0x478] sm:$0xff]  ;;  %v4636_v46 = vld [vmem:[%s6689_s22 + $0x4f0] sm:$0xff] }
0x109d   : > { %5929 = vmatpush3.msra.mxu0 %v3783_v47  ;;  %5967 = vmatpush3.msra.mxu1 %v3815_v48  ;;  %v4653_v44 = vld [vmem:[%s6689_s22 + $0x578] sm:$0xff]  ;;  %v4668_v47 = vld [vmem:[%s6689_s22 + $0x5f0] sm:$0xff] }
0x109e   : > { %5930 = vmatprep.subr.mxu0 %v3798_v49  ;;  %5968 = vmatprep.subr.mxu1 %v3830_v50  ;;  %v4620_v48 = vld [vmem:[%s6689_s22 + $0x470] sm:$0xff]  ;;  %v4635_v50 = vld [vmem:[%s6689_s22 + $0x4e8] sm:$0xff] }
0x109f   : > { %5931 = vmatpush3.msra.mxu0 %v3782_v51  ;;  %5969 = vmatpush3.msra.mxu1 %v3814_v52  ;;  %v4652_v49 = vld [vmem:[%s6689_s22 + $0x570] sm:$0xff]  ;;  %v4667_v51 = vld [vmem:[%s6689_s22 + $0x5e8] sm:$0xff] }
0x10a0   : > { %5932 = vmatprep.subr.mxu0 %v3797_v54  ;;  %5970 = vmatprep.subr.mxu1 %v3829_v55  ;;  %v4619_v52 = vld [vmem:[%s6689_s22 + $0x468] sm:$0xff]  ;;  %v4634_v55 = vld [vmem:[%s6689_s22 + $0x4e0] sm:$0xff] }
0x10a1   : > { %5933 = vmatpush3.msra.mxu0 %v3781_v58  ;;  %5971 = vmatpush3.msra.mxu1 %v3813_v59  ;;  %v4651_v54 = vld [vmem:[%s6689_s22 + $0x568] sm:$0xff]  ;;  %v4650_v58 = vld [vmem:[%s6689_s22 + $0x560] sm:$0xff]  ;;  %v4633_v59 = vld [vmem:[%s6689_s22 + $0x4d8] sm:$0xff] }
0x10a2   : > { %5934 = vmatprep.subr.mxu0 %v3796_v60  ;;  %5972 = vmatprep.subr.mxu1 %v3828_v61  ;;  %v4665_v60 = vld [vmem:[%s6689_s22 + $0x5d8] sm:$0xff] }
0x10a3   : > { %5935 = vmatpush3.msra.mxu0 %v3780_v62  ;;  %5973 = vmatpush3.msra.mxu1 %v3812_v63  ;;  %v4617_v61 = vld [vmem:[%s6689_s22 + $0x458] sm:$0xff]  ;;  %v4632_v63 = vld [vmem:[%s6689_s22 + $0x4d0] sm:$0xff] }
0x10a4   : > { %5936 = vmatprep.subr.mxu0 %v3795_v33  ;;  %5974 = vmatprep.subr.mxu1 %v3827_v2  ;;  %v4649_v62 = vld [vmem:[%s6689_s22 + $0x558] sm:$0xff]  ;;  %v4664_v33 = vld [vmem:[%s6689_s22 + $0x5d0] sm:$0xff] }
0x10a5   : > { %5937 = vmatpush3.msra.mxu0 %v3779_v9  ;;  %5975 = vmatpush3.msra.mxu1 %v3811_v14  ;;  %v4616_v2 = vld [vmem:[%s6689_s22 + $0x450] sm:$0xff]  ;;  %v4663_v9 = vld [vmem:[%s6689_s22 + $0x5c8] sm:$0xff] }
0x10a6   : > { %5938 = vmatprep.subr.mxu0 %v3794_v6  ;;  %5976 = vmatprep.subr.mxu1 %v3826_v15  ;;  %v4615_v14 = vld [vmem:[%s6689_s22 + $0x448] sm:$0xff]  ;;  %v4630_v15 = vld [vmem:[%s6689_s22 + $0x4c0] sm:$0xff] }
0x10a7   : > { %5939 = vmatpush3.msra.mxu0 %v3778_v4  ;;  %5977 = vmatpush3.msra.mxu1 %v3810_v13  ;;  %v4647_v6 = vld [vmem:[%s6689_s22 + $0x548] sm:$0xff]  ;;  %v4646_v4 = vld [vmem:[%s6689_s22 + $0x540] sm:$0xff]  ;;  %v4629_v13 = vld [vmem:[%s6689_s22 + $0x4b8] sm:$0xff] }
0x10a8   : > { %4321 = vmatmul.mubr.f32.vlgmr.msra.gmra.mxu0 %v3770_v20  ;;  %4396 = vmatmul.mubr.f32.vlgmr.msra.gmra.mxu1 %v3772_v21  ;;  %v4661_v20 = vld [vmem:[%s6689_s22 + $0x5b8] sm:$0xff] }
0x10a9   : > { %4468 = vmatprep.subr.mxu0 %v4419_v22  ;;  %4545 = vmatprep.subr.mxu1 %v4421_v23  ;;  %v4613_v21 = vld [vmem:[%s6689_s22 + $0x438] sm:$0xff]  ;;  %v4628_v23 = vld [vmem:[%s6689_s22 + $0x4b0] sm:$0xff] }
0x10aa   : > { %4325 = vmatprep.mubr.f32.mxu0 %v3775_v36  ;;  %4400 = vmatprep.mubr.f32.mxu1 %v3777_v43  ;;  %v4645_v22 = vld [vmem:[%s6689_s22 + $0x538] sm:$0xff]  ;;  %v4644_v36 = vld [vmem:[%s6689_s22 + $0x530] sm:$0xff]  ;;  %v4627_v43 = vld [vmem:[%s6689_s22 + $0x4a8] sm:$0xff] }
0x10ab   : > { %4469 = vmatpush1.msra.mxu0 %v4418_v24  ;;  %4546 = vmatpush1.msra.mxu1 %v4420_v25  ;;  %v4659_v24 = vld [vmem:[%s6689_s22 + $0x5a8] sm:$0xff] }
0x10ac   : > { %4470 = vmatprep.subr.mxu0 %v4415_v26  ;;  %4547 = vmatprep.subr.mxu1 %v4417_v27  ;;  %v4611_v25 = vld [vmem:[%s6689_s22 + $0x428] sm:$0xff]  ;;  %v4626_v27 = vld [vmem:[%s6689_s22 + $0x4a0] sm:$0xff] }
0x10ad   : > { %4471 = vmatpush1.msra.mxu0 %v4414_v28  ;;  %4548 = vmatpush1.msra.mxu1 %v4416_v11  ;;  %v4643_v26 = vld [vmem:[%s6689_s22 + $0x528] sm:$0xff]  ;;  %v4658_v28 = vld [vmem:[%s6689_s22 + $0x5a0] sm:$0xff] }
0x10ae   : > { %4326 = vmatmul.mubr.f32.gmra.mxu0 %v3774_v16  ;;  %4401 = vmatmul.mubr.f32.gmra.mxu1 %v3776_v29  ;;  %v4610_v11 = vld [vmem:[%s6689_s22 + $0x420] sm:$0xff]  ;;  %v4625_v29 = vld [vmem:[%s6689_s22 + $0x498] sm:$0xff] }
0x10af   : > { %4472 = vmatprep.subr.mxu0 %v4411_v30  ;;  %4549 = vmatprep.subr.mxu1 %v4413_v31  ;;  %v4642_v16 = vld [vmem:[%s6689_s22 + $0x520] sm:$0xff]  ;;  %v4657_v30 = vld [vmem:[%s6689_s22 + $0x598] sm:$0xff] }
0x10b0   : > { %4473 = vmatpush1.msra.mxu0 %v4410_v32  ;;  %4550 = vmatpush1.msra.mxu1 %v4412_v34  ;;  %v4609_v31 = vld [vmem:[%s6689_s22 + $0x418] sm:$0xff]  ;;  %v4624_v34 = vld [vmem:[%s6689_s22 + $0x490] sm:$0xff] }
0x10b1   : > { %4474 = vmatprep.subr.mxu0 %v4407_v35  ;;  %4551 = vmatprep.subr.mxu1 %v4409_v37  ;;  %v4641_v32 = vld [vmem:[%s6689_s22 + $0x518] sm:$0xff]  ;;  %v4656_v35 = vld [vmem:[%s6689_s22 + $0x590] sm:$0xff] }
0x10b2   : > { %4475 = vmatpush1.msra.mxu0 %v4406_v38  ;;  %4508 = vmatprep.mubr.f32.mxu0 %v6495_v12  ;;  %v4608_v37 = vld [vmem:[%s6689_s22 + $0x410] sm:$0xff] }
0x10b3   : > { %4552 = vmatpush1.msra.mxu1 %v4408_v39  ;;  %4585 = vmatprep.mubr.f32.mxu1 %v6495_v12  ;;  %v4640_v38 = vld [vmem:[%s6689_s22 + $0x510] sm:$0xff]  ;;  %v4623_v39 = vld [vmem:[%s6689_s22 + $0x488] sm:$0xff] }
0x10b4   : > { %5693 = vmatmul.mubr.msk.f32.vlgmr.msra.gmra.mxu0 %vm846_vm1, %v6979_v45  ;;  %5695 = vmatmul.mubr.msk.f32.vlgmr.msra.gmra.mxu1 %vm846_vm1, %v6979_v45 }
0x10b5   : > { %4514 = vmatprep.mubr.f32.mxu0 %v6495_v12  ;;  %4591 = vmatprep.mubr.f32.mxu1 %v6495_v12 }
0x10b6   : > { %5984 = vmatprep.subr.mxu0 %v4637_v40  ;;  %6022 = vmatprep.subr.mxu1 %v4669_v41  ;;  %v4655_v40 = vld [vmem:[%s6689_s22 + $0x588] sm:$0xff] }
0x10b7   : > { %5985 = vmatpush3.msra.mxu0 %v4621_v42  ;;  %6023 = vmatpush3.msra.mxu1 %v4653_v44  ;;  %v4607_v41 = vld [vmem:[%s6689_s22 + $0x408] sm:$0xff]  ;;  %v4622_v44 = vld [vmem:[%s6689_s22 + $0x480] sm:$0xff] }
0x10b8   : > { %5694 = vmatmul.mubr.msk.f32.gmra.mxu0 %vm846_vm1, %v6991_v53  ;;  %5696 = vmatmul.mubr.msk.f32.gmra.mxu1 %vm846_vm1, %v6991_v53  ;;  %v4639_v42 = vld [vmem:[%s6689_s22 + $0x508] sm:$0xff] }
0x10b9   : > { %5986 = vmatprep.subr.mxu0 %v4636_v46  ;;  %6024 = vmatprep.subr.mxu1 %v4668_v47  ;;  %v4654_v46 = vld [vmem:[%s6689_s22 + $0x580] sm:$0xff] }
0x10ba   : > { %5987 = vmatpush3.msra.mxu0 %v4620_v48  ;;  %6025 = vmatpush3.msra.mxu1 %v4652_v49  ;;  %v4606_v47 = vld [vmem:[%s6689_s22 + $0x400] sm:$0xff]  ;;  %v4835_v49 = vld [vmem:[%s6677_s17 + $0x1e8] sm:$0xff] }
0x10bb   : > { %5988 = vmatprep.subr.mxu0 %v4635_v50  ;;  %6026 = vmatprep.subr.mxu1 %v4667_v51  ;;  %v4638_v48 = vld [vmem:[%s6689_s22 + $0x500] sm:$0xff]  ;;  %v4837_v50 = vld [vmem:[%s6677_s17 + $0x1f8] sm:$0xff] }
0x10bc   : > { %5989 = vmatpush3.msra.mxu0 %v4619_v52  ;;  %6027 = vmatpush3.msra.mxu1 %v4651_v54 }
0x10bd   : > { %5990 = vmatprep.subr.mxu0 %v4634_v55  ;;  %6028 = vmatprep.subr.mxu1 %v4666_v56 }
0x10be   : > { %5991 = vmatpush3.msra.mxu0 %v4618_v57  ;;  %6029 = vmatpush3.msra.mxu1 %v4650_v58 }
0x10bf   : > { %5992 = vmatprep.subr.mxu0 %v4633_v59  ;;  %6030 = vmatprep.subr.mxu1 %v4665_v60 }
0x10c0   : > { %5993 = vmatpush3.msra.mxu0 %v4617_v61  ;;  %6031 = vmatpush3.msra.mxu1 %v4649_v62 }
0x10c1   : > { %5994 = vmatprep.subr.mxu0 %v4632_v63  ;;  %6032 = vmatprep.subr.mxu1 %v4664_v33 }
0x10c2   : > { %5995 = vmatpush3.msra.mxu0 %v4616_v2  ;;  %6033 = vmatpush3.msra.mxu1 %v4648_v3 }
0x10c3   : > { %5996 = vmatprep.subr.mxu0 %v4631_v5  ;;  %6034 = vmatprep.subr.mxu1 %v4663_v9 }
0x10c4   : > { %5997 = vmatpush3.msra.mxu0 %v4615_v14  ;;  %6035 = vmatpush3.msra.mxu1 %v4647_v6 }
0x10c5   : > { %5998 = vmatprep.subr.mxu0 %v4630_v15  ;;  %6036 = vmatprep.subr.mxu1 %v4662_v10 }
0x10c6   : > { %5999 = vmatpush3.msra.mxu0 %v4614_v19  ;;  %6037 = vmatpush3.msra.mxu1 %v4646_v4 }
0x10c7   : > { %6000 = vmatprep.subr.mxu0 %v4629_v13  ;;  %6038 = vmatprep.subr.mxu1 %v4661_v20  ;;  %v4422_v20 = vld [vmem:[%s6683_s5 + $0x8] sm:$0xf] }
0x10c8   : > { %6001 = vmatpush3.msra.mxu0 %v4613_v21  ;;  %6039 = vmatpush3.msra.mxu1 %v4645_v22 }
0x10c9   : > { %6002 = vmatprep.subr.mxu0 %v4628_v23  ;;  %6040 = vmatprep.subr.mxu1 %v4660_v0 }
0x10ca   : > { %6003 = vmatpush3.msra.mxu0 %v4612_v1  ;;  %6041 = vmatpush3.msra.mxu1 %v4644_v36  ;;  %v4427_v1 = vrot.slane %v4422_v20, %v7094_v17  ;;  %v4435_v36 = vrot.slane %v4422_v20, %v7096_v18 }
0x10cb   : > { %6004 = vmatprep.subr.mxu0 %v4627_v43  ;;  %6042 = vmatprep.subr.mxu1 %v4659_v24  ;;  %v4431_v24 = vrot.slane %v4422_v20, %v7102_v7 }
0x10cc   : > { %6005 = vmatpush3.msra.mxu0 %v4611_v25  ;;  %6043 = vmatpush3.msra.mxu1 %v4643_v26  ;;  %v4439_v25 = vrot.slane %v4422_v20, %v7104_v8  ;;  %v5068_v20 = vld [vmem:[%s6689_s22 + $0x770] sm:$0xff] }
0x10cd   : > { %6006 = vmatprep.subr.mxu0 %v4626_v27  ;;  %6044 = vmatprep.subr.mxu1 %v4658_v28 }
0x10ce   : > { %6007 = vmatpush3.msra.mxu0 %v4610_v11  ;;  %6045 = vmatpush3.msra.mxu1 %v4642_v16 }
0x10cf   : > { %6008 = vmatprep.subr.mxu0 %v4625_v29  ;;  %6046 = vmatprep.subr.mxu1 %v4657_v30 }
0x10d0   : > { %6009 = vmatpush3.msra.mxu0 %v4609_v31  ;;  %6047 = vmatpush3.msra.mxu1 %v4641_v32 }
0x10d1   : > { %6010 = vmatprep.subr.mxu0 %v4624_v34  ;;  %6048 = vmatprep.subr.mxu1 %v4656_v35 }
0x10d2   : > { %6011 = vmatpush3.msra.mxu0 %v4608_v37  ;;  %6049 = vmatpush3.msra.mxu1 %v4640_v38 }
0x10d3   : > { %6012 = vmatprep.subr.mxu0 %v4623_v39  ;;  %6050 = vmatprep.subr.mxu1 %v4655_v40 }
0x10d4   : > { %6013 = vmatpush3.msra.mxu0 %v4607_v41  ;;  %6051 = vmatpush3.msra.mxu1 %v4639_v42 }
0x10d5   : > { %6014 = vmatprep.subr.mxu0 %v4622_v44  ;;  %6052 = vmatprep.subr.mxu1 %v4654_v46  ;;  %v4834_v46 = vld [vmem:[%s6677_s17 + $0x1e0] sm:$0xff] }
0x10d6   : > { %6015 = vmatpush3.msra.mxu0 %v4606_v47  ;;  %6053 = vmatpush3.msra.mxu1 %v4638_v48  ;;  %v4836_v47 = vld [vmem:[%s6677_s17 + $0x1f0] sm:$0xff] }
0x10d7   : > { %4884 = vmatprep.subr.mxu0 %v4835_v49  ;;  %4961 = vmatprep.subr.mxu1 %v4837_v50 }
0x1145   : > { %v5864_v51 = vpop.f32.mrf.mxu0  ;;  %v5902_v52 = vpop.f32.mrf.mxu1 }
0x1147   : > { %v5865_v54 = vpop.f32.mrf.mxu0  ;;  %v5903_v55 = vpop.f32.mrf.mxu1 }
0x1148   : > { %v5866_v56 = vadd.f32 %v5865_v54, %v5864_v51  ;;  %v5904_v57 = vadd.f32 %v5903_v55, %v5902_v52  ;;  %v4831_v51 = vld [vmem:[%s6677_s17 + $0x168] sm:$0xff]  ;;  %v4833_v52 = vld [vmem:[%s6677_s17 + $0x178] sm:$0xff] }
0x114a   : > { %v4248_v58 = vadd.f32 %v5904_v57, %v5866_v56  ;;  %v4830_v56 = vld [vmem:[%s6677_s17 + $0x160] sm:$0xff]  ;;  %v4832_v57 = vld [vmem:[%s6677_s17 + $0x170] sm:$0xff] }
0x114b   : > { %v5867_v59 = vpop.f32.mrf.mxu0  ;;  %v5905_v60 = vpop.f32.mrf.mxu1 }
0x114d   : > { %v5868_v61 = vpop.f32.mrf.mxu0  ;;  %v5906_v62 = vpop.f32.mrf.mxu1 }
0x114e   : > { %v5869_v63 = vadd.f32 %v5868_v61, %v5867_v59  ;;  %v5907_v33 = vadd.f32 %v5906_v62, %v5905_v60  ;;  %v4827_v60 = vld [vmem:[%s6677_s17 + $0xe8] sm:$0xff]  ;;  %v4829_v61 = vld [vmem:[%s6677_s17 + $0xf8] sm:$0xff]  ;;  %v4826_v62 = vld [vmem:[%s6677_s17 + $0xe0] sm:$0xff] }
0x1150   : > { %v4253_v2 = vadd.f32 %v5907_v33, %v5869_v63  ;;  %v4828_v63 = vld [vmem:[%s6677_s17 + $0xf0] sm:$0xff]  ;;  %v4823_v33 = vld [vmem:[%s6677_s17 + $0x68] sm:$0xff] }
0x1168   : > { %v5940_v3 = vpop.f32.mrf.mxu0  ;;  %v5978_v5 = vpop.f32.mrf.mxu1 }
0x116a   : > { %v5941_v9 = vpop.f32.mrf.mxu0  ;;  %v5979_v14 = vpop.f32.mrf.mxu1 }
0x116b   : > { %v5942_v6 = vadd.f32 %v5941_v9, %v5940_v3  ;;  %v5980_v15 = vadd.f32 %v5979_v14, %v5978_v5  ;;  %v4822_v3 = vld [vmem:[%s6677_s17 + $0x60] sm:$0xff]  ;;  %v4824_v5 = vld [vmem:[%s6677_s17 + $0x70] sm:$0xff]  ;;  %v5053_v9 = vld [vmem:[%s6689_s22 + $0x6f8] sm:$0xff] }
0x116c   : > { %v5085_v14 = vld [vmem:[%s6689_s22 + $0x7f8] sm:$0xff] }
0x116d   : > { %v4323_v10 = vadd.f32 %v5942_v6, %v4248_v58  ;;  %v5037_v6 = vld [vmem:[%s6689_s22 + $0x678] sm:$0xff] }
0x116e   : > { %v5943_v19 = vpop.f32.mrf.mxu0  ;;  %v5981_v4 = vpop.f32.mrf.mxu1 }
0x116f   : > { %v7291_v13 = vadd.f32 %v5980_v15, %v4323_v10  ;;  %v5069_v15 = vld [vmem:[%s6689_s22 + $0x778] sm:$0xff]  ;;  %v5052_v10 = vld [vmem:[%s6689_s22 + $0x6f0] sm:$0xff] }
0x1170   : > { %v5944_v21 = vpop.f32.mrf.mxu0  ;;  %v5982_v22 = vpop.f32.mrf.mxu1 }
0x1171   : > { %v5945_v23 = vadd.f32 %v5944_v21, %v5943_v19  ;;  %v5983_v0 = vadd.f32 %v5982_v22, %v5981_v4  ;;  %v5084_v19 = vld [vmem:[%s6689_s22 + $0x7f0] sm:$0xff]  ;;  %v5083_v21 = vld [vmem:[%s6689_s22 + $0x7e8] sm:$0xff] }
0x1172   : > { %v5036_v4 = vld [vmem:[%s6689_s22 + $0x670] sm:$0xff]  ;;  %v5035_v22 = vld [vmem:[%s6689_s22 + $0x668] sm:$0xff] }
0x1173   : > { %v4328_v43 = vadd.f32 %v5945_v23, %v4253_v2  ;;  %v4825_v2 = vld [vmem:[%s6677_s17 + $0x78] sm:$0xff]  ;;  %v5067_v23 = vld [vmem:[%s6689_s22 + $0x768] sm:$0xff] }
0x1174   : > { %v4510_v26 = vpop.f32.mrf.mxu0  ;;  %v4587_v27 = vpop.f32.mrf.mxu1 }
0x1175   : > { %v7298_v28 = vadd.f32 %v5983_v0, %v4328_v43  ;;  %v4511_v11 = vadd.f32 %v4510_v26, %v4427_v1  ;;  %v4588_v16 = vadd.f32 %v4587_v27, %v4435_v36  ;;  %v5050_v0 = vld [vmem:[%s6689_s22 + $0x6e0] sm:$0xff]  ;;  %v5033_v26 = vld [vmem:[%s6689_s22 + $0x658] sm:$0xff] }
0x1176   : > { %v4512_v29 = vpop.f32.mrf.mxu0  ;;  %v4589_v30 = vpop.f32.mrf.mxu1  ;;  %v5066_v43 = vld [vmem:[%s6689_s22 + $0x760] sm:$0xff]  ;;  %v5065_v27 = vld [vmem:[%s6689_s22 + $0x758] sm:$0xff] }
0x1177   : > { %v4513_v31 = vadd.f32 %v4512_v29, %v4431_v24  ;;  %v4590_v32 = vadd.f32 %v4589_v30, %v4439_v25  ;;  %v4598_v39 = vmax.f32 %v4511_v11, 0.0  ;;  %v4600_v40 = vmax.f32 %v4588_v16, 0.0  ;;  %v5048_v11 = vld [vmem:[%s6689_s22 + $0x6d0] sm:$0xff] }
0x1178   : > { %v4516_v34 = vpop.f32.mrf.mxu0  ;;  %v4593_v35 = vpop.f32.mrf.mxu1  ;;  %v5080_v16 = vld [vmem:[%s6689_s22 + $0x7d0] sm:$0xff] }
0x1179   : > { %v4599_v37 = vmax.f32 %v4513_v31, 0.0  ;;  %v4601_v38 = vmax.f32 %v4590_v32, 0.0  ;;  %v4517_v41 = vadd.f32 %v4516_v34, %v4427_v1  ;;  %v4594_v48 = vadd.f32 %v4593_v35, %v4435_v36  ;;  %v5082_v1 = vld [vmem:[%s6689_s22 + $0x7e0] sm:$0xff]  ;;  %v5032_v29 = vld [vmem:[%s6689_s22 + $0x650] sm:$0xff]  ;;  %v5047_v31 = vld [vmem:[%s6689_s22 + $0x6c8] sm:$0xff] }
0x117a   : > { %v4518_v42 = vpop.f32.mrf.mxu0  ;;  %v4595_v44 = vpop.f32.mrf.mxu1  ;;  %v5034_v36 = vld [vmem:[%s6689_s22 + $0x660] sm:$0xff]  ;;  %v5064_v30 = vld [vmem:[%s6689_s22 + $0x750] sm:$0xff]  ;;  %v5079_v32 = vld [vmem:[%s6689_s22 + $0x7c8] sm:$0xff] }
0x117b   : > { %v4519_v49 = vadd.f32 %v4518_v42, %v4431_v24  ;;  %v4596_v50 = vadd.f32 %v4595_v44, %v4439_v25  ;;  %4734 = vmatprep.mubr.f32.mxu0 %v4599_v37  ;;  %4809 = vmatprep.mubr.f32.mxu1 %v4601_v38  ;;  %v4602_v58 = vmax.f32 %v4517_v41, 0.0  ;;  %v4604_v59 = vmax.f32 %v4594_v48, 0.0  ;;  %v5049_v24 = vld [vmem:[%s6689_s22 + $0x6d8] sm:$0xff]  ;;  %v5031_v34 = vld [vmem:[%s6689_s22 + $0x648] sm:$0xff]  ;;  %v5046_v37 = vld [vmem:[%s6689_s22 + $0x6c0] sm:$0xff] }
0x117c   : > { %4735 = vmatmul.mubr.f32.vlgmr.msra.gmra.mxu0 %v4598_v39  ;;  %4810 = vmatmul.mubr.f32.vlgmr.msra.gmra.mxu1 %v4600_v40  ;;  %v5081_v25 = vld [vmem:[%s6689_s22 + $0x7d8] sm:$0xff]  ;;  %v5063_v35 = vld [vmem:[%s6689_s22 + $0x748] sm:$0xff]  ;;  %v5078_v38 = vld [vmem:[%s6689_s22 + $0x7c0] sm:$0xff] }
0x117d   : > { %v4603_v54 = vmax.f32 %v4519_v49, 0.0  ;;  %v4605_v55 = vmax.f32 %v4596_v50, 0.0  ;;  %4885 = vmatpush1.msra.mxu0 %v4834_v46  ;;  %4962 = vmatpush1.msra.mxu1 %v4836_v47  ;;  %v5030_v39 = vld [vmem:[%s6689_s22 + $0x640] sm:$0xff]  ;;  %v5045_v41 = vld [vmem:[%s6689_s22 + $0x6b8] sm:$0xff]  ;;  %v5044_v47 = vld [vmem:[%s6689_s22 + $0x6b0] sm:$0xff] }
0x117e   : > { %4886 = vmatprep.subr.mxu0 %v4831_v51  ;;  %4963 = vmatprep.subr.mxu1 %v4833_v52  ;;  %v5062_v40 = vld [vmem:[%s6689_s22 + $0x740] sm:$0xff]  ;;  %v5077_v42 = vld [vmem:[%s6689_s22 + $0x7b8] sm:$0xff]  ;;  %v5076_v48 = vld [vmem:[%s6689_s22 + $0x7b0] sm:$0xff] }
0x117f   : > { %4739 = vmatprep.mubr.f32.mxu0 %v4603_v54  ;;  %4814 = vmatprep.mubr.f32.mxu1 %v4605_v55  ;;  %v5029_v44 = vld [vmem:[%s6689_s22 + $0x638] sm:$0xff]  ;;  %v5028_v49 = vld [vmem:[%s6689_s22 + $0x630] sm:$0xff]  ;;  %v5043_v51 = vld [vmem:[%s6689_s22 + $0x6a8] sm:$0xff] }
0x1180   : > { %4887 = vmatpush1.msra.mxu0 %v4830_v56  ;;  %4964 = vmatpush1.msra.mxu1 %v4832_v57  ;;  %v5061_v46 = vld [vmem:[%s6689_s22 + $0x738] sm:$0xff]  ;;  %v5060_v50 = vld [vmem:[%s6689_s22 + $0x730] sm:$0xff]  ;;  %v5075_v52 = vld [vmem:[%s6689_s22 + $0x7a8] sm:$0xff] }
0x1181   : > { %4740 = vmatmul.mubr.f32.gmra.mxu0 %v4602_v58  ;;  %4815 = vmatmul.mubr.f32.gmra.mxu1 %v4604_v59  ;;  %v5027_v54 = vld [vmem:[%s6689_s22 + $0x628] sm:$0xff]  ;;  %v5042_v56 = vld [vmem:[%s6689_s22 + $0x6a0] sm:$0xff] }
0x1182   : > { %4888 = vmatprep.subr.mxu0 %v4827_v60  ;;  %4965 = vmatprep.subr.mxu1 %v4829_v61  ;;  %v5059_v55 = vld [vmem:[%s6689_s22 + $0x728] sm:$0xff]  ;;  %v5074_v57 = vld [vmem:[%s6689_s22 + $0x7a0] sm:$0xff]  ;;  %v5041_v60 = vld [vmem:[%s6689_s22 + $0x698] sm:$0xff] }
0x1183   : > { %4889 = vmatpush1.msra.mxu0 %v4826_v62  ;;  %4966 = vmatpush1.msra.mxu1 %v4828_v63  ;;  %v5026_v58 = vld [vmem:[%s6689_s22 + $0x620] sm:$0xff]  ;;  %v5073_v61 = vld [vmem:[%s6689_s22 + $0x798] sm:$0xff] }
0x1184   : > { %4890 = vmatprep.subr.mxu0 %v4823_v33  ;;  %4967 = vmatprep.subr.mxu1 %v4825_v2  ;;  %v5058_v59 = vld [vmem:[%s6689_s22 + $0x720] sm:$0xff]  ;;  %v5025_v62 = vld [vmem:[%s6689_s22 + $0x618] sm:$0xff]  ;;  %v5040_v33 = vld [vmem:[%s6689_s22 + $0x690] sm:$0xff] }
0x1185   : > { %4891 = vmatpush1.msra.mxu0 %v4822_v3  ;;  %4924 = vmatprep.mubr.f32.mxu0 %v6495_v12  ;;  %v5057_v63 = vld [vmem:[%s6689_s22 + $0x718] sm:$0xff]  ;;  %v5072_v2 = vld [vmem:[%s6689_s22 + $0x790] sm:$0xff] }
0x1186   : > { %4968 = vmatpush1.msra.mxu1 %v4824_v5  ;;  %5001 = vmatprep.mubr.f32.mxu1 %v6495_v12  ;;  %v5024_v3 = vld [vmem:[%s6689_s22 + $0x610] sm:$0xff] }
0x1187   : > { %5697 = vmatmul.mubr.msk.f32.vlgmr.msra.gmra.mxu0 %vm846_vm1, %v6979_v45  ;;  %5699 = vmatmul.mubr.msk.f32.vlgmr.msra.gmra.mxu1 %vm846_vm1, %v6979_v45  ;;  %v5056_v5 = vld [vmem:[%s6689_s22 + $0x710] sm:$0xff] }
0x1188   : > { %4930 = vmatprep.mubr.f32.mxu0 %v6495_v12  ;;  %5007 = vmatprep.mubr.f32.mxu1 %v6495_v12  ;;  %v5051_v12 = vld [vmem:[%s6689_s22 + $0x6e8] sm:$0xff] }
0x1189   : > { %6060 = vmatprep.subr.mxu0 %v5053_v9  ;;  %6098 = vmatprep.subr.mxu1 %v5085_v14  ;;  %v5039_v9 = vld [vmem:[%s6689_s22 + $0x688] sm:$0xff] }
0x118a   : > { %6061 = vmatpush3.msra.mxu0 %v5037_v6  ;;  %6099 = vmatpush3.msra.mxu1 %v5069_v15  ;;  %v5071_v14 = vld [vmem:[%s6689_s22 + $0x788] sm:$0xff] }
0x118b   : > { %5698 = vmatmul.mubr.msk.f32.gmra.mxu0 %vm846_vm1, %v6991_v53  ;;  %5700 = vmatmul.mubr.msk.f32.gmra.mxu1 %vm846_vm1, %v6991_v53  ;;  %v5023_v6 = vld [vmem:[%s6689_s22 + $0x608] sm:$0xff] }
0x118c   : > { %6062 = vmatprep.subr.mxu0 %v5052_v10  ;;  %6100 = vmatprep.subr.mxu1 %v5084_v19  ;;  %v5055_v15 = vld [vmem:[%s6689_s22 + $0x708] sm:$0xff]  ;;  %v5038_v10 = vld [vmem:[%s6689_s22 + $0x680] sm:$0xff] }
0x118d   : > { %6063 = vmatpush3.msra.mxu0 %v5036_v4  ;;  %6101 = vmatpush3.msra.mxu1 %v5068_v20  ;;  %v5070_v19 = vld [vmem:[%s6689_s22 + $0x780] sm:$0xff] }
0x118e   : > { %6064 = vmatprep.subr.mxu0 %v5051_v12  ;;  %6102 = vmatprep.subr.mxu1 %v5083_v21  ;;  %v5022_v4 = vld [vmem:[%s6689_s22 + $0x600] sm:$0xff] }
0x118f   : > { %6065 = vmatpush3.msra.mxu0 %v5035_v22  ;;  %6103 = vmatpush3.msra.mxu1 %v5067_v23  ;;  %v5054_v20 = vld [vmem:[%s6689_s22 + $0x700] sm:$0xff] }
0x1190   : > { %6066 = vmatprep.subr.mxu0 %v5050_v0  ;;  %6104 = vmatprep.subr.mxu1 %v5082_v1 }
0x1191   : > { %6067 = vmatpush3.msra.mxu0 %v5034_v36  ;;  %6105 = vmatpush3.msra.mxu1 %v5066_v43 }
0x1192   : > { %6068 = vmatprep.subr.mxu0 %v5049_v24  ;;  %6106 = vmatprep.subr.mxu1 %v5081_v25  ;;  %v4838_v25 = vld [vmem:[%s6683_s5 + $0xc] sm:$0xf] }
0x1193   : > { %6069 = vmatpush3.msra.mxu0 %v5033_v26  ;;  %6107 = vmatpush3.msra.mxu1 %v5065_v27 }
0x1194   : > { %6070 = vmatprep.subr.mxu0 %v5048_v11  ;;  %6108 = vmatprep.subr.mxu1 %v5080_v16 }
0x1195   : > { %6071 = vmatpush3.msra.mxu0 %v5032_v29  ;;  %6109 = vmatpush3.msra.mxu1 %v5064_v30  ;;  %v4843_v30 = vrot.slane %v4838_v25, %v7094_v17 }
0x1196   : > { %6072 = vmatprep.subr.mxu0 %v5047_v31  ;;  %6110 = vmatprep.subr.mxu1 %v5079_v32  ;;  %v4851_v31 = vrot.slane %v4838_v25, %v7096_v18 }
0x1197   : > { %6073 = vmatpush3.msra.mxu0 %v5031_v34  ;;  %6111 = vmatpush3.msra.mxu1 %v5063_v35  ;;  %v4847_v34 = vrot.slane %v4838_v25, %v7102_v7  ;;  %v4855_v35 = vrot.slane %v4838_v25, %v7104_v8 }
0x1198   : > { %6074 = vmatprep.subr.mxu0 %v5046_v37  ;;  %6112 = vmatprep.subr.mxu1 %v5078_v38 }
0x1199   : > { %6075 = vmatpush3.msra.mxu0 %v5030_v39  ;;  %6113 = vmatpush3.msra.mxu1 %v5062_v40 }
0x119a   : > { %6076 = vmatprep.subr.mxu0 %v5045_v41  ;;  %6114 = vmatprep.subr.mxu1 %v5077_v42 }
0x119b   : > { %6077 = vmatpush3.msra.mxu0 %v5029_v44  ;;  %6115 = vmatpush3.msra.mxu1 %v5061_v46 }
0x119c   : > { %6078 = vmatprep.subr.mxu0 %v5044_v47  ;;  %6116 = vmatprep.subr.mxu1 %v5076_v48 }
0x119d   : > { %6079 = vmatpush3.msra.mxu0 %v5028_v49  ;;  %6117 = vmatpush3.msra.mxu1 %v5060_v50 }
0x119e   : > { %6080 = vmatprep.subr.mxu0 %v5043_v51  ;;  %6118 = vmatprep.subr.mxu1 %v5075_v52 }
0x119f   : > { %6081 = vmatpush3.msra.mxu0 %v5027_v54  ;;  %6119 = vmatpush3.msra.mxu1 %v5059_v55 }
0x11a0   : > { %6082 = vmatprep.subr.mxu0 %v5042_v56  ;;  %6120 = vmatprep.subr.mxu1 %v5074_v57 }
0x11a1   : > { %6083 = vmatpush3.msra.mxu0 %v5026_v58  ;;  %6121 = vmatpush3.msra.mxu1 %v5058_v59 }
0x11a2   : > { %6084 = vmatprep.subr.mxu0 %v5041_v60  ;;  %6122 = vmatprep.subr.mxu1 %v5073_v61 }
0x11a3   : > { %6085 = vmatpush3.msra.mxu0 %v5025_v62  ;;  %6123 = vmatpush3.msra.mxu1 %v5057_v63 }
0x11a4   : > { %6086 = vmatprep.subr.mxu0 %v5040_v33  ;;  %6124 = vmatprep.subr.mxu1 %v5072_v2 }
0x11a5   : > { %6087 = vmatpush3.msra.mxu0 %v5024_v3  ;;  %6125 = vmatpush3.msra.mxu1 %v5056_v5 }
0x11a6   : > { %6088 = vmatprep.subr.mxu0 %v5039_v9  ;;  %6126 = vmatprep.subr.mxu1 %v5071_v14 }
0x11a7   : > { %6089 = vmatpush3.msra.mxu0 %v5023_v6  ;;  %6127 = vmatpush3.msra.mxu1 %v5055_v15  ;;  %v5701_v6 = vld [vmem:[%s823_s0] ss:$0 sm:$0xff] }
0x11a8   : > { %6090 = vmatprep.subr.mxu0 %v5038_v10  ;;  %6128 = vmatprep.subr.mxu1 %v5070_v19 }
0x11a9   : > { %6091 = vmatpush3.msra.mxu0 %v5022_v4  ;;  %6129 = vmatpush3.msra.mxu1 %v5054_v20 }
0x123c   : > { %v6016_v12 = vpop.f32.mrf.mxu0  ;;  %v6054_v21 = vpop.f32.mrf.mxu1 }
0x123e   : > { %v6017_v22 = vpop.f32.mrf.mxu0  ;;  %v6055_v23 = vpop.f32.mrf.mxu1 }
0x123f   : > { %v6018_v0 = vadd.f32 %v6017_v22, %v6016_v12  ;;  %v6056_v1 = vadd.f32 %v6055_v23, %v6054_v21 }
0x1241   : > { %v4812_v36 = vadd.f32 %v6056_v1, %v6018_v0  ;;  %v6019_v43 = vpop.f32.mrf.mxu0  ;;  %v6057_v24 = vpop.f32.mrf.mxu1 }
0x1243   : > { %v4820_v26 = vadd.f32 %v4812_v36, %v7291_v13  ;;  %v6020_v27 = vpop.f32.mrf.mxu0  ;;  %v6058_v11 = vpop.f32.mrf.mxu1 }
0x1244   : > { %v6021_v16 = vadd.f32 %v6020_v27, %v6019_v43  ;;  %v6059_v29 = vadd.f32 %v6058_v11, %v6057_v24 }
0x1246   : > { %v4817_v32 = vadd.f32 %v6059_v29, %v6021_v16 }
0x1247   : > { %v4926_v37 = vpop.f32.mrf.mxu0  ;;  %v5003_v38 = vpop.f32.mrf.mxu1 }
0x1248   : > { %v4821_v39 = vadd.f32 %v4817_v32, %v7298_v28  ;;  %v4927_v40 = vadd.f32 %v4926_v37, %v4843_v30  ;;  %v5004_v41 = vadd.f32 %v5003_v38, %v4851_v31  ;;  %v5702_v38 = vld [vmem:[%s7504_s25] ss:$0 sm:$0xff] }
0x1249   : > { %v4928_v13 = vpop.f32.mrf.mxu0  ;;  %v5005_v42 = vpop.f32.mrf.mxu1 }
0x124a   : > { %v4929_v44 = vadd.f32 %v4928_v13, %v4847_v34  ;;  %v5006_v46 = vadd.f32 %v5005_v42, %v4855_v35  ;;  %v5014_v18 = vmax.f32 %v4927_v40, 0.0  ;;  %v5016_v50 = vmax.f32 %v5004_v41, 0.0  ;;  %v5703_v40 = vld [vmem:[%s7505_s6] ss:$0 sm:$0xff] }
0x124b   : > { %v4932_v47 = vpop.f32.mrf.mxu0  ;;  %v5009_v48 = vpop.f32.mrf.mxu1 }
0x124c   : > { %v5015_v17 = vmax.f32 %v4929_v44, 0.0  ;;  %v5017_v49 = vmax.f32 %v5006_v46, 0.0  ;;  %v4933_v51 = vadd.f32 %v4932_v47, %v4843_v30  ;;  %v5010_v7 = vadd.f32 %v5009_v48, %v4851_v31 }
0x124d   : > { %v4934_v52 = vpop.f32.mrf.mxu0  ;;  %v5011_v8 = vpop.f32.mrf.mxu1 }
0x124e   : > { %v4935_v54 = vadd.f32 %v4934_v52, %v4847_v34  ;;  %v5012_v55 = vadd.f32 %v5011_v8, %v4855_v35  ;;  %5150 = vmatprep.mubr.f32.mxu0 %v5015_v17  ;;  %5225 = vmatprep.mubr.f32.mxu1 %v5017_v49  ;;  %v5018_v57 = vmax.f32 %v4933_v51, 0.0  ;;  %v5020_v58 = vmax.f32 %v5010_v7, 0.0 }
0x124f   : > { %5151 = vmatmul.mubr.f32.vlgmr.msra.gmra.mxu0 %v5014_v18  ;;  %5226 = vmatmul.mubr.f32.vlgmr.msra.gmra.mxu1 %v5016_v50 }
0x1250   : > { %v5019_v28 = vmax.f32 %v4935_v54, 0.0  ;;  %v5021_v56 = vmax.f32 %v5012_v55, 0.0 }
0x1252   : > { %5155 = vmatprep.mubr.f32.mxu0 %v5019_v28  ;;  %5230 = vmatprep.mubr.f32.mxu1 %v5021_v56 }
0x1253   : > { %5156 = vmatmul.mubr.f32.gmra.mxu0 %v5018_v57  ;;  %5231 = vmatmul.mubr.f32.gmra.mxu1 %v5020_v58 }
0x130f   : > { %v6092_v59 = vpop.f32.mrf.mxu0  ;;  %v6130_v60 = vpop.f32.mrf.mxu1 }
0x1311   : > { %v6093_v61 = vpop.f32.mrf.mxu0  ;;  %v6131_v62 = vpop.f32.mrf.mxu1 }
0x1312   : > { %v6094_v63 = vadd.f32 %v6093_v61, %v6092_v59  ;;  %v6132_v33 = vadd.f32 %v6131_v62, %v6130_v60 }
0x1313   : > { %v6095_v2 = vpop.f32.mrf.mxu0  ;;  %v6133_v3 = vpop.f32.mrf.mxu1 }
0x1314   : > { %v5228_v5 = vadd.f32 %v6132_v33, %v6094_v63 }
0x1315   : > { %v6096_v9 = vpop.f32.mrf.mxu0  ;;  %v6134_v14 = vpop.f32.mrf.mxu1 }
0x1316   : > { %v5236_v15 = vadd.f32 %v5228_v5, %v4820_v26  ;;  %v6097_v10 = vadd.f32 %v6096_v9, %v6095_v2  ;;  %v6135_v19 = vadd.f32 %v6134_v14, %v6133_v3 }
0x1318   : > { %v5233_v4 = vadd.f32 %v6135_v19, %v6097_v10  ;;  %v5245_v20 = vadd.f32 %v5701_v6, %v5236_v15 }
0x131a   : > { %v5237_v12 = vadd.f32 %v5233_v4, %v4821_v39  ;;  %v5247_v21 = vadd.f32 %v5245_v20, %v6979_v45 }
0x131c   : > { %v5251_v22 = vsel %vm846_vm1, %v5247_v21, 0.0  ;;  %v5246_v23 = vadd.f32 %v5701_v6, %v5237_v12 }
0x131d   : > { %5252 = vadd.xlane.f32.xlu0 %v5251_v22 }
0x131e   : > { %v5248_v0 = vadd.f32 %v5246_v23, %v6991_v53 }
0x1320   : > { %v5254_v1 = vsel %vm846_vm1, %v5248_v0, 0.0 }
0x1321   : > { %5255 = vadd.xlane.f32.xlu1 %v5254_v1 }
0x13a6   : > { %v5253_v36 = vpop.xlane.xlu0 %5252 }
0x13a7   : > { %v5257_v43 = vmul.f32 0.03125, %v5253_v36 }
0x13a9   : > { %v5259_v24 = vsub.f32 %v5247_v21, %v5257_v43 }
0x13aa   : > { %v5256_v25 = vpop.xlane.xlu1 %5255 }
0x13ab   : > { %v5258_v26 = vmul.f32 0.03125, %v5256_v25  ;;  %v5261_v27 = vmul.f32 %v5259_v24, %v5259_v24 }
0x13ad   : > { %v5260_v11 = vsub.f32 %v5248_v0, %v5258_v26  ;;  %v5263_v16 = vsel %vm846_vm1, %v5261_v27, 0.0 }
0x13ae   : > { %5264 = vadd.xlane.f32.xlu0 %v5263_v16 }
0x13af   : > { %v5262_v45 = vmul.f32 %v5260_v11, %v5260_v11 }
0x13b1   : > { %v5266_v29 = vsel %vm846_vm1, %v5262_v45, 0.0 }
0x13b2   : > { %5267 = vadd.xlane.f32.xlu1 %v5266_v29 }
0x1437   : > { %v5265_v53 = vpop.xlane.xlu0 %5264 }
0x1438   : > { %v5269_v30 = vmul.f32 0.03125, %v5265_v53 }
0x143a   : > { %v5271_v31 = vadd.f32 1e-05, %v5269_v30 }
0x143b   : > { %v5268_v32 = vpop.xlane.xlu1 %5267 }
0x143c   : > { %6439 = vrsqrt.f32 %v5271_v31  ;;  %v5270_v34 = vmul.f32 0.03125, %v5268_v32 }
0x143e   : > { %v5272_v35 = vadd.f32 1e-05, %v5270_v34 }
0x1440   : > { %6441 = vrsqrt.f32 %v5272_v35 }
0x1449   : > { %v6440_v37 = vpop.eup %6439 }
0x144a   : > { %v5275_v39 = vmul.f32 %v6440_v37, %v5259_v24 }
0x144c   : > { %v5283_v41 = vmul.f32 %v5702_v38, %v5275_v39 }
0x144d   : > { %v6442_v13 = vpop.eup %6441 }
0x144e   : > { %v5291_v42 = vadd.f32 %v5703_v40, %v5283_v41  ;;  %v5276_v44 = vmul.f32 %v6442_v13, %v5260_v11  ;;  %5296 = sbr.rel (%p5704_p6) target bundleno = 5205 (0x1455), region = 96 }
0x1450   : > { %v5284_v46 = vmul.f32 %v5702_v38, %v5276_v44 }
0x1452   : > { %v5292_v47 = vadd.f32 %v5703_v40, %v5284_v46 }
0x1453   : > { %5297 = vst.msk [vmem:[#allocation2] sm:$0xff] %vm846_vm1, %v5291_v42 }
0x1454   : > { %5298 = vst.msk [vmem:[#allocation2 + $0x8] sm:$0xff] %vm846_vm1, %v5292_v47 }
0x1455 PF: > { %s7507_s18 = sld [smem:[#allocation6_spill]] }
0x145b   : > { %p5705_p7 = scmp.ne.s32.totalorder %s7507_s18, 1 }
0x145d   : > { %5302 = sbr.rel (%p5705_p7) target bundleno = 5219 (0x1463), region = 100 }
0x1462   : > { %5303 = vst.msk [vmem:[#allocation3] sm:$0xff] %vm846_vm1, %v5291_v42  ;;  %5304 = vst.msk [vmem:[#allocation3 + $0x8] sm:$0xff] %vm846_vm1, %v5292_v47 }
0x1463 PF: > { %s7508_s29 = sld [smem:[#allocation8_spill]]  ;;  %s6497_s1 = smov [#allocation3]  }
0x1464   : > { %s5314_s26 = sshll.u32 %s6497_s1, 4  ;;  %s5315_s26 = int_to_ptr.vmem [resolvable:$true] %s5314_s26 }
0x1465   : > { %s6443_s24 = scalar_lea.vmem %s5315_s26, 256  ;;  %p6450_p12 = scmp.lt.s32.totalorder %s5315_s26, %s5315_s26 }
0x1466   : > { %p6444_p9 = scmp.ne.s32.totalorder %s5315_s26, %s6443_s24  ;;  %p6451_p13 = scmp.lt.s32.totalorder %s6443_s24, %s6443_s24 }
0x1468   : > { %p6452_p0 = por %p6451_p13, %p6450_p12 }
0x1469   : > { %s7509_s20 = sadd.s32 4294967295, %s7508_s29  }
0x146a   : > { %p7426_p8 = scmp.eq.s32.totalorder %s7509_s20, 1 }
0x146c   : > { %p6445_p10 = pnand %p6444_p9, %p7426_p8 }
0x146e   : > { %p6446_p11 = pneg %p6445_p10 }
0x1470   : > { %p6453_p1 = pnand %p6452_p0, %p6446_p11 }
0x1472   : > { %6456 = shalt.err (!%p6453_p1)
}
0x1473   : > { %s6498_s30 = smov 128   ;;  %s6499_s2 = smov 8  }
0x1474   : > { %s7511_s17 = sld [smem:[#allocation20_spill]] }
0x147a   : > { %6369 = dma.vmem_to_hbm [thread:$0]  (%p7426_p8), %s5315_s26, 256, %s7511_s17, [#allocation4], %s6498_s30, %s6498_s30, %s6499_s2  }
0x147b   : > { %6480 = dma.done.wait (%p7426_p8), [#allocation4], 256  }
0x147c   : > { %6482 = vsyncadd (%p7426_p8), [#allocation4], 4294967040 }
0x147d PF: > { %s7512_s5 = sld [smem:[#allocation8_spill]] }
0x147e   : > { %s7513_s24 = sld [smem:[#allocation7_spill]] }
0x147f   : > { %s7514_s25 = sld [smem:[#allocation9_spill]] }
0x1483   : > { %s28_s26 = sadd.s32 1, %s7512_s5  }
0x1484   : > { %p25_p2 = scmp.ge.s32.totalorder %s28_s26, 4  }
0x1486   :  { %27 = sbr.rel (!%p25_p2) target bundleno = 11 (0xb), region = 197 }
0x148b   :  { %5330 = vsyncpa [#allocation4], 1 }
0x148c   :  { %5332 = vsyncpa [#allocation4 + $0x1], 1 }

</bundles_post_ra>
